<compile_context>
chip_gen: v7x
topology: tpu7x:2x2x1
jax: 0.10.0
libtpu: 0.0.40
codegen_flags: <defaults>
</compile_context>

<pallas_src>
import jax
import jax.numpy as jnp
import numpy as np
from jax import lax
from jax.experimental import pallas as pl
from jax.experimental.pallas import tpu as pltpu


def _make_kernel(T, B, P, D_g, D_p, D_e):
    NEG = -1e30

    def kernel(u2_ref, uc2_ref, qm_ref, esw_ref,
               g_wih_uc_ref, g_wih_q_ref, g_whh_ref, g_bih_ref, g_bhh_ref,
               p_wih_u_ref, p_wih_c_ref, p_whh_ref, p_bih_ref, p_bhh_ref,
               e_whi_ref, e_bhi_ref, e_uhh_ref, e_buhh_ref, att_w_ref,
               e_out_ref, alpha_out_ref,
               g_hist_ref, scores_ref, gi_pre_ref, pi_pre_ref):
        f32 = jnp.float32

        # ---- hoisted, batched input projections (M = T*B rows, fused gates) -
        gi_pre_ref[...] = (jnp.dot(uc2_ref[...], g_wih_uc_ref[...],
                                   preferred_element_type=f32)
                           + g_bih_ref[...])
        pi_pre_ref[...] = (jnp.dot(u2_ref[...], p_wih_u_ref[...],
                                   preferred_element_type=f32)
                           + p_bih_ref[...])

        # history scratch must be zero so masked-out rows never inject NaN/Inf
        g_hist_ref[...] = jnp.zeros_like(g_hist_ref)
        scores_ref[...] = jnp.zeros_like(scores_ref)

        # hoist weight loads (and their broadcasts) out of the recurrence
        att_w = att_w_ref[...]        # (1, D_g)
        g_wih_q = g_wih_q_ref[...]
        g_whh = g_whh_ref[...]
        g_bhh = g_bhh_ref[...]
        p_wih_c = p_wih_c_ref[...]
        p_whh = p_whh_ref[...]
        p_bhh = p_bhh_ref[...]
        e_whi = e_whi_ref[...]
        e_bhi = e_bhi_ref[...]
        e_uhh = e_uhh_ref[...]
        e_buhh = e_buhh_ref[...]

        def step(t, carry):
            g_prev, q_cat, e_prev = carry   # (B,D_g), (P*B,D_p), (B,D_e)

            row = pl.multiple_of(t * B, B)
            gi_uc = gi_pre_ref[pl.ds(row, B), :]   # (B, 3*D_g), bias included
            pi_u = pi_pre_ref[pl.ds(row, B), :]    # (B, 3*D_p), bias included
            qm = qm_ref[t]                         # (B, P) speaker one-hot
            esw = esw_ref[t]                       # (B, 1) emotion-shift prob

            # speaker selection: one-hot(argmax(qmask)), first-max tiebreak
            iota_bp = lax.broadcasted_iota(jnp.int32, (B, P), 1)
            qmax = jnp.max(qm, axis=1, keepdims=True)
            idx = jnp.min(jnp.where(qm >= qmax, iota_bp, P), axis=1,
                          keepdims=True)
            sel = (iota_bp == idx).astype(f32)     # (B, P)

            q0_sel = jnp.zeros((B, D_p), f32)
            for p in range(P):
                q0_sel = q0_sel + sel[:, p:p + 1] * q_cat[p * B:(p + 1) * B, :]

            # ---- g_cell: GRUCell(cat[U_context, q0_sel], g_prev), fused ----
            gi = gi_uc + jnp.dot(q0_sel, g_wih_q, preferred_element_type=f32)
            gh = jnp.dot(g_prev, g_whh, preferred_element_type=f32) + g_bhh
            r = jax.nn.sigmoid(gi[:, :D_g] + gh[:, :D_g])
            z = jax.nn.sigmoid(gi[:, D_g:2 * D_g] + gh[:, D_g:2 * D_g])
            n = jnp.tanh(gi[:, 2 * D_g:] + r * gh[:, 2 * D_g:])
            g_new = (1.0 - z) * n + z * g_prev     # (B, D_g)
            # TODO(synk): dropout is treated as identity (eval mode).

            # running attention score for the new g (never re-derived later)
            g_hist_ref[t] = g_new
            scores_ref[t] = jnp.sum(g_new * att_w, axis=-1, keepdims=True)

            # ---- SimpleAttention over g_hist[0:t] (length-masked softmax) --
            sc_all = scores_ref[...]               # (T, B, 1)
            g_all = g_hist_ref[...]                # (T, B, D_g)
            step_iota = lax.broadcasted_iota(jnp.int32, (T, B, 1), 0)
            valid = step_iota < t
            s_msk = jnp.where(valid, sc_all, NEG)
            m = jnp.max(s_msk, axis=0, keepdims=True)
            ex = jnp.where(valid, jnp.exp(s_msk - m), 0.0)
            denom = jnp.sum(ex, axis=0, keepdims=True)
            inv = pl.reciprocal(jnp.maximum(denom, 1e-30), approx=True)
            alpha = ex * inv                       # (T, B, 1); all-zero at t==0
            c_ = jnp.sum(alpha * g_all, axis=0)    # (B, D_g); zeros at t==0

            # ---- p_cell: GRUCell(cat[U, c_], q0) batched over parties ------
            pi = pi_u + jnp.dot(c_, p_wih_c, preferred_element_type=f32)
            ph = jnp.dot(q_cat, p_whh, preferred_element_type=f32) + p_bhh
            pi_rep = jnp.concatenate([pi] * P, axis=0)          # (P*B, 3*D_p)
            rp = jax.nn.sigmoid(pi_rep[:, :D_p] + ph[:, :D_p])
            zp = jax.nn.sigmoid(pi_rep[:, D_p:2 * D_p] + ph[:, D_p:2 * D_p])
            nn_ = jnp.tanh(pi_rep[:, 2 * D_p:] + rp * ph[:, 2 * D_p:])
            qs = (1.0 - zp) * nn_ + zp * q_cat                  # (P*B, D_p)
            qm_rep = jnp.concatenate([qm[:, p:p + 1] for p in range(P)], axis=0)
            q_new = q_cat * (1.0 - qm_rep) + qs * qm_rep        # (P*B, D_p)

            s_t = jnp.zeros((B, D_p), f32)
            for p in range(P):
                s_t = s_t + sel[:, p:p + 1] * q_new[p * B:(p + 1) * B, :]

            # ---- e_cell: new_gru_cell(s_t, e0, r_t = 1 - shift_prob) -------
            r_t = 1.0 - esw
            cand = jnp.tanh(
                jnp.dot(s_t, e_whi, preferred_element_type=f32) + e_bhi
                + jnp.dot(r_t * e_prev, e_uhh, preferred_element_type=f32)
                + e_buhh)
            e_new = r_t * e_prev + (1.0 - r_t) * cand           # (B, D_e)

            e_out_ref[t] = e_new
            return g_new, q_new, e_new

        init = (jnp.zeros((B, D_g), f32),
                jnp.zeros((P * B, D_p), f32),
                jnp.zeros((B, D_e), f32))
        lax.fori_loop(0, T, step, init, unroll=True)

        # ---- all alphas in one vectorized pass + one bulk store -------------
        sc2 = jnp.sum(g_hist_ref[...] * att_w, axis=-1)         # (T, B)
        sb = jnp.broadcast_to(sc2[None, :, :], (T, T, B))
        ti = lax.broadcasted_iota(jnp.int32, (T, T, B), 0)      # target step
        si = lax.broadcasted_iota(jnp.int32, (T, T, B), 1)      # source step
        valid = si < ti
        s_msk = jnp.where(valid, sb, NEG)
        m = jnp.max(s_msk, axis=1, keepdims=True)
        ex = jnp.where(valid, jnp.exp(s_msk - m), 0.0)
        denom = jnp.sum(ex, axis=1, keepdims=True)
        alpha_out_ref[...] = ex * pl.reciprocal(
            jnp.maximum(denom, 1e-30), approx=True)

    return kernel


def multilogue_net_pallas(U, U_context, qmask, emotion_shift_prob, params):
    T, B, D_mp = U.shape
    D_mc = U_context.shape[-1]
    P = qmask.shape[-1]
    D_g = params["g_whh"].shape[-1]
    D_p = params["p_whh"].shape[-1]
    D_e = params["e_uhh"].shape[-1]
    f32 = jnp.float32

    # glue: flatten time for the batched projections, fuse [r,z,n] gate
    # weights along the output dim, slice the emotion-shift probability.
    U2 = U.reshape(T * B, D_mp).astype(f32)
    UC2 = U_context.reshape(T * B, D_mc).astype(f32)
    esw = emotion_shift_prob[:, :, 1:2].astype(f32)

    def fuse_w(w):   # (3, in, out) -> (in, 3*out)
        return jnp.concatenate([w[0], w[1], w[2]], axis=1)

    def fuse_b(b):   # (3, out) -> (1, 3*out)
        return jnp.concatenate([b[0], b[1], b[2]], axis=0)[None, :]

    inputs = [
        U2, UC2, qmask.astype(f32), esw,
        fuse_w(params["g_wih_uc"]), fuse_w(params["g_wih_q"]),
        fuse_w(params["g_whh"]), fuse_b(params["g_bih"]), fuse_b(params["g_bhh"]),
        fuse_w(params["p_wih_u"]), fuse_w(params["p_wih_c"]),
        fuse_w(params["p_whh"]), fuse_b(params["p_bih"]), fuse_b(params["p_bhh"]),
        params["e_whi"], params["e_bhi"], params["e_uhh"], params["e_buhh"],
        params["att_w"],
    ]

    def full_spec(shape):
        nd = len(shape)
        return pl.BlockSpec(shape, lambda i, _n=nd: (0,) * _n)

    in_specs = [full_spec(x.shape) for x in inputs]
    out_specs = (full_spec((T, B, D_e)), full_spec((T, T, B)))
    out_shape = (jax.ShapeDtypeStruct((T, B, D_e), f32),
                 jax.ShapeDtypeStruct((T, T, B), f32))

    kernel = _make_kernel(T, B, P, D_g, D_p, D_e)

    e_seq, alpha_full = pl.pallas_call(
        kernel,
        out_shape=out_shape,
        grid_spec=pltpu.PrefetchScalarGridSpec(
            num_scalar_prefetch=0,
            grid=(1,),
            in_specs=in_specs,
            out_specs=out_specs,
            scratch_shapes=[
                pltpu.VMEM((T, B, D_g), f32),        # g history
                pltpu.VMEM((T, B, 1), f32),          # running attention scores
                pltpu.VMEM((T * B, 3 * D_g), f32),   # hoisted U_context proj
                pltpu.VMEM((T * B, 3 * D_p), f32),   # hoisted U proj
            ]),
        compiler_params=pltpu.CompilerParams(
            dimension_semantics=("arbitrary",)),
    )(*inputs)

    # alpha list (variable length per step, like the PyTorch module)
    alphas = [jnp.transpose(alpha_full[t, :t, :]) for t in range(1, T)]
    return e_seq, alphas


def init_params(key, D_mp, D_mc, D_g, D_p, D_e, scale=0.1):
    shapes = {
        "g_wih_uc": (3, D_mc, D_g), "g_wih_q": (3, D_p, D_g),
        "g_whh": (3, D_g, D_g), "g_bih": (3, D_g), "g_bhh": (3, D_g),
        "p_wih_u": (3, D_mp, D_p), "p_wih_c": (3, D_g, D_p),
        "p_whh": (3, D_p, D_p), "p_bih": (3, D_p), "p_bhh": (3, D_p),
        "e_whi": (D_p, D_e), "e_bhi": (1, D_e),
        "e_uhh": (D_e, D_e), "e_buhh": (1, D_e),
        "att_w": (1, D_g),
    }
    keys = jax.random.split(key, len(shapes))
    params = {}
    for k_, (name, shp) in zip(keys, sorted(shapes.items())):
        params[name] = scale * jax.random.normal(k_, shp, jnp.float32)
    return params


def reference_forward(U, UC, qmask, esp, prm):
    """Pure-JAX reimplementation of the PyTorch forward (eval-mode dropout)."""
    T, B, _ = U.shape
    P = qmask.shape[-1]
    D_g = prm["g_whh"].shape[-1]
    D_p = prm["p_whh"].shape[-1]
    D_e = prm["e_uhh"].shape[-1]
    g_w_ih = jnp.concatenate([prm["g_wih_uc"], prm["g_wih_q"]], axis=1)
    p_w_ih = jnp.concatenate([prm["p_wih_u"], prm["p_wih_c"]], axis=1)

    def gru(x, h, w_ih, w_hh, b_ih, b_hh):
        r = jax.nn.sigmoid(x @ w_ih[0] + b_ih[0] + h @ w_hh[0] + b_hh[0])
        z = jax.nn.sigmoid(x @ w_ih[1] + b_ih[1] + h @ w_hh[1] + b_hh[1])
        n = jnp.tanh(x @ w_ih[2] + b_ih[2] + r * (h @ w_hh[2] + b_hh[2]))
        return (1 - z) * n + z * h

    g_hist, e_list, alpha_list = [], [], []
    q = jnp.zeros((B, P, D_p), jnp.float32)
    e = jnp.zeros((B, D_e), jnp.float32)
    bidx = jnp.arange(B)
    for t in range(T):
        u, uc, qm, es = U[t], UC[t], qmask[t], esp[t]
        idx = jnp.argmax(qm, axis=1)
        q0_sel = q[bidx, idx]
        g_prev = g_hist[-1] if g_hist else jnp.zeros((B, D_g), jnp.float32)
        g_ = gru(jnp.concatenate([uc, q0_sel], axis=1), g_prev,
                 g_w_ih, prm["g_whh"], prm["g_bih"], prm["g_bhh"])
        if g_hist:
            M = jnp.stack(g_hist, axis=0)
            scale = jnp.einsum("tbd,d->tb", M, prm["att_w"][0])
            al = jax.nn.softmax(scale, axis=0)
            c_ = jnp.einsum("tb,tbd->bd", al, M)
            alpha_list.append(al.T)
        else:
            c_ = jnp.zeros((B, D_g), jnp.float32)
        x_p = jnp.concatenate([u, c_], axis=1)
        x_p = jnp.broadcast_to(x_p[:, None, :], (B, P, x_p.shape[-1])).reshape(B * P, -1)
        qs = gru(x_p, q.reshape(B * P, D_p),
                 p_w_ih, prm["p_whh"], prm["p_bih"], prm["p_bhh"]).reshape(B, P, D_p)
        q = q * (1 - qm[:, :, None]) + qs * qm[:, :, None]
        r_t = 1 - es[:, 1:2]
        s_t = q[bidx, idx]
        cand = jnp.tanh(s_t @ prm["e_whi"] + prm["e_bhi"][0]
                        + (r_t * e) @ prm["e_uhh"] + prm["e_buhh"][0])
        e = r_t * e + (1 - r_t) * cand
        g_hist.append(g_)
        e_list.append(e)
    return jnp.stack(e_list, 0), alpha_list


if __name__ == "__main__":
    T, B, P = 6, 8, 2
    D_mp, D_mc, D_g, D_p, D_e = 16, 24, 32, 32, 32

    key = jax.random.PRNGKey(0)
    k_u, k_uc, k_sp, k_es, k_par = jax.random.split(key, 5)
    U = jax.random.normal(k_u, (T, B, D_mp), jnp.float32)
    UC = jax.random.normal(k_uc, (T, B, D_mc), jnp.float32)
    speaker = jax.random.randint(k_sp, (T, B), 0, P)
    qmask = jax.nn.one_hot(speaker, P, dtype=jnp.float32)
    emotion_shift_prob = jax.nn.softmax(
        jax.random.normal(k_es, (T, B, 2), jnp.float32), axis=-1)
    params = init_params(k_par, D_mp, D_mc, D_g, D_p, D_e)

    e_seq, alphas = multilogue_net_pallas(U, UC, qmask, emotion_shift_prob, params)
    e_seq = jax.block_until_ready(e_seq)

    e_ref, alphas_ref = reference_forward(U, UC, qmask, emotion_shift_prob, params)
    np.testing.assert_allclose(np.asarray(e_seq), np.asarray(e_ref),
                               rtol=1e-2, atol=1e-2)
    assert len(alphas) == len(alphas_ref)
    for a, ar in zip(alphas, alphas_ref):
        np.testing.assert_allclose(np.asarray(a), np.asarray(ar),
                                   rtol=1e-2, atol=1e-2)
    print("KERNEL_OK")
</pallas_src>

<mosaic_0001>
module attributes {stable_mosaic.version = 11 : i64} {
  func.func @kernel(%arg0: i32, %arg1: memref<48x16xf32, #tpu.memory_space<vmem>>, %arg2: memref<48x24xf32, #tpu.memory_space<vmem>>, %arg3: memref<6x8x2xf32, #tpu.memory_space<vmem>>, %arg4: memref<6x8x1xf32, #tpu.memory_space<vmem>>, %arg5: memref<24x96xf32, #tpu.memory_space<vmem>>, %arg6: memref<32x96xf32, #tpu.memory_space<vmem>>, %arg7: memref<32x96xf32, #tpu.memory_space<vmem>>, %arg8: memref<1x96xf32, #tpu.memory_space<vmem>>, %arg9: memref<1x96xf32, #tpu.memory_space<vmem>>, %arg10: memref<16x96xf32, #tpu.memory_space<vmem>>, %arg11: memref<32x96xf32, #tpu.memory_space<vmem>>, %arg12: memref<32x96xf32, #tpu.memory_space<vmem>>, %arg13: memref<1x96xf32, #tpu.memory_space<vmem>>, %arg14: memref<1x96xf32, #tpu.memory_space<vmem>>, %arg15: memref<32x32xf32, #tpu.memory_space<vmem>>, %arg16: memref<1x32xf32, #tpu.memory_space<vmem>>, %arg17: memref<32x32xf32, #tpu.memory_space<vmem>>, %arg18: memref<1x32xf32, #tpu.memory_space<vmem>>, %arg19: memref<1x32xf32, #tpu.memory_space<vmem>>, %arg20: memref<6x8x32xf32, #tpu.memory_space<vmem>>, %arg21: memref<6x6x8xf32, #tpu.memory_space<vmem>>, %arg22: memref<6x8x32xf32, #tpu.memory_space<vmem>>, %arg23: memref<6x8x1xf32, #tpu.memory_space<vmem>>, %arg24: memref<48x96xf32, #tpu.memory_space<vmem>>, %arg25: memref<48x96xf32, #tpu.memory_space<vmem>>) attributes {dimension_semantics = [#tpu.dimension_semantics<arbitrary>], iteration_bounds = array<i64: 1>, scalar_prefetch = 0 : i64, scratch_operands = 4 : i64, tpu.core_type = #tpu.core_type<tc>, window_params = [{pipeline_mode = #tpu.pipeline_mode<synchronous>, transform_indices = @transform_0, window_bounds = array<i64: 48, 16>}, {pipeline_mode = #tpu.pipeline_mode<synchronous>, transform_indices = @transform_1, window_bounds = array<i64: 48, 24>}, {pipeline_mode = #tpu.pipeline_mode<synchronous>, transform_indices = @transform_2, window_bounds = array<i64: 6, 8, 2>}, {pipeline_mode = #tpu.pipeline_mode<synchronous>, transform_indices = @transform_3, window_bounds = array<i64: 6, 8, 1>}, {pipeline_mode = #tpu.pipeline_mode<synchronous>, transform_indices = @transform_4, window_bounds = array<i64: 24, 96>}, {pipeline_mode = #tpu.pipeline_mode<synchronous>, transform_indices = @transform_5, window_bounds = array<i64: 32, 96>}, {pipeline_mode = #tpu.pipeline_mode<synchronous>, transform_indices = @transform_6, window_bounds = array<i64: 32, 96>}, {pipeline_mode = #tpu.pipeline_mode<synchronous>, transform_indices = @transform_7, window_bounds = array<i64: 1, 96>}, {pipeline_mode = #tpu.pipeline_mode<synchronous>, transform_indices = @transform_8, window_bounds = array<i64: 1, 96>}, {pipeline_mode = #tpu.pipeline_mode<synchronous>, transform_indices = @transform_9, window_bounds = array<i64: 16, 96>}, {pipeline_mode = #tpu.pipeline_mode<synchronous>, transform_indices = @transform_10, window_bounds = array<i64: 32, 96>}, {pipeline_mode = #tpu.pipeline_mode<synchronous>, transform_indices = @transform_11, window_bounds = array<i64: 32, 96>}, {pipeline_mode = #tpu.pipeline_mode<synchronous>, transform_indices = @transform_12, window_bounds = array<i64: 1, 96>}, {pipeline_mode = #tpu.pipeline_mode<synchronous>, transform_indices = @transform_13, window_bounds = array<i64: 1, 96>}, {pipeline_mode = #tpu.pipeline_mode<synchronous>, transform_indices = @transform_14, window_bounds = array<i64: 32, 32>}, {pipeline_mode = #tpu.pipeline_mode<synchronous>, transform_indices = @transform_15, window_bounds = array<i64: 1, 32>}, {pipeline_mode = #tpu.pipeline_mode<synchronous>, transform_indices = @transform_16, window_bounds = array<i64: 32, 32>}, {pipeline_mode = #tpu.pipeline_mode<synchronous>, transform_indices = @transform_17, window_bounds = array<i64: 1, 32>}, {pipeline_mode = #tpu.pipeline_mode<synchronous>, transform_indices = @transform_18, window_bounds = array<i64: 1, 32>}, {pipeline_mode = #tpu.pipeline_mode<synchronous>, transform_indices = @transform_19, window_bounds = array<i64: 6, 8, 32>}, {pipeline_mode = #tpu.pipeline_mode<synchronous>, transform_indices = @transform_20, window_bounds = array<i64: 6, 6, 8>}]} {
    %c0 = arith.constant 0 : index
    %c0_0 = arith.constant 0 : index
    %0 = vector.load %arg2[%c0, %c0_0] : memref<48x24xf32, #tpu.memory_space<vmem>>, vector<48x24xf32>
    %c0_1 = arith.constant 0 : index
    %c0_2 = arith.constant 0 : index
    %1 = vector.load %arg5[%c0_1, %c0_2] : memref<24x96xf32, #tpu.memory_space<vmem>>, vector<24x96xf32>
    %cst = arith.constant dense<0.000000e+00> : vector<48x96xf32>
    %2 = tpu.matmul %0, %1, %cst {dimension_numbers = #tpu.dot_dimension_numbers<[1], [0], [0], [1], [0, 0, 1, 1], [], []>} : vector<48x24xf32>, vector<24x96xf32>, vector<48x96xf32> -> vector<48x96xf32>
    %c0_3 = arith.constant 0 : index
    %c0_4 = arith.constant 0 : index
    %3 = vector.load %arg8[%c0_3, %c0_4] : memref<1x96xf32, #tpu.memory_space<vmem>>, vector<1x96xf32>
    %4 = vector.broadcast %3 : vector<1x96xf32> to vector<48x96xf32>
    %5 = arith.addf %2, %4 : vector<48x96xf32>
    %c0_5 = arith.constant 0 : index
    %c0_6 = arith.constant 0 : index
    %6 = vector.load %arg24[%c0_5, %c0_6] : memref<48x96xf32, #tpu.memory_space<vmem>>, vector<48x96xf32>
    tpu.vector_store %arg24[%c0_5, %c0_6], %5 {strides = array<i32>} : memref<48x96xf32, #tpu.memory_space<vmem>>, vector<48x96xf32>,
    %c0_7 = arith.constant 0 : index
    %c0_8 = arith.constant 0 : index
    %7 = vector.load %arg1[%c0_7, %c0_8] : memref<48x16xf32, #tpu.memory_space<vmem>>, vector<48x16xf32>
    %c0_9 = arith.constant 0 : index
    %c0_10 = arith.constant 0 : index
    %8 = vector.load %arg10[%c0_9, %c0_10] : memref<16x96xf32, #tpu.memory_space<vmem>>, vector<16x96xf32>
    %cst_11 = arith.constant dense<0.000000e+00> : vector<48x96xf32>
    %9 = tpu.matmul %7, %8, %cst_11 {dimension_numbers = #tpu.dot_dimension_numbers<[1], [0], [0], [1], [0, 0, 1, 1], [], []>} : vector<48x16xf32>, vector<16x96xf32>, vector<48x96xf32> -> vector<48x96xf32>
    %c0_12 = arith.constant 0 : index
    %c0_13 = arith.constant 0 : index
    %10 = vector.load %arg13[%c0_12, %c0_13] : memref<1x96xf32, #tpu.memory_space<vmem>>, vector<1x96xf32>
    %11 = vector.broadcast %10 : vector<1x96xf32> to vector<48x96xf32>
    %12 = arith.addf %9, %11 : vector<48x96xf32>
    %c0_14 = arith.constant 0 : index
    %c0_15 = arith.constant 0 : index
    %13 = vector.load %arg25[%c0_14, %c0_15] : memref<48x96xf32, #tpu.memory_space<vmem>>, vector<48x96xf32>
    tpu.vector_store %arg25[%c0_14, %c0_15], %12 {strides = array<i32>} : memref<48x96xf32, #tpu.memory_space<vmem>>, vector<48x96xf32>,
    %cst_16 = arith.constant 0.000000e+00 : f32
    %14 = vector.broadcast %cst_16 : f32 to vector<6x8x32xf32>
    %c0_17 = arith.constant 0 : index
    %c0_18 = arith.constant 0 : index
    %c0_19 = arith.constant 0 : index
    %15 = vector.load %arg22[%c0_17, %c0_18, %c0_19] : memref<6x8x32xf32, #tpu.memory_space<vmem>>, vector<6x8x32xf32>
    tpu.vector_store %arg22[%c0_17, %c0_18, %c0_19], %14 {strides = array<i32>} : memref<6x8x32xf32, #tpu.memory_space<vmem>>, vector<6x8x32xf32>,
    %cst_20 = arith.constant 0.000000e+00 : f32
    %16 = vector.broadcast %cst_20 : f32 to vector<6x8x1xf32>
    %c0_21 = arith.constant 0 : index
    %c0_22 = arith.constant 0 : index
    %c0_23 = arith.constant 0 : index
    %17 = vector.load %arg23[%c0_21, %c0_22, %c0_23] : memref<6x8x1xf32, #tpu.memory_space<vmem>>, vector<6x8x1xf32>
    tpu.vector_store %arg23[%c0_21, %c0_22, %c0_23], %16 {strides = array<i32>} : memref<6x8x1xf32, #tpu.memory_space<vmem>>, vector<6x8x1xf32>,
    %c0_24 = arith.constant 0 : index
    %c0_25 = arith.constant 0 : index
    %18 = vector.load %arg19[%c0_24, %c0_25] : memref<1x32xf32, #tpu.memory_space<vmem>>, vector<1x32xf32>
    %c0_26 = arith.constant 0 : index
    %c0_27 = arith.constant 0 : index
    %19 = vector.load %arg6[%c0_26, %c0_27] : memref<32x96xf32, #tpu.memory_space<vmem>>, vector<32x96xf32>
    %c0_28 = arith.constant 0 : index
    %c0_29 = arith.constant 0 : index
    %20 = vector.load %arg7[%c0_28, %c0_29] : memref<32x96xf32, #tpu.memory_space<vmem>>, vector<32x96xf32>
    %c0_30 = arith.constant 0 : index
    %c0_31 = arith.constant 0 : index
    %21 = vector.load %arg9[%c0_30, %c0_31] : memref<1x96xf32, #tpu.memory_space<vmem>>, vector<1x96xf32>
    %c0_32 = arith.constant 0 : index
    %c0_33 = arith.constant 0 : index
    %22 = vector.load %arg11[%c0_32, %c0_33] : memref<32x96xf32, #tpu.memory_space<vmem>>, vector<32x96xf32>
    %c0_34 = arith.constant 0 : index
    %c0_35 = arith.constant 0 : index
    %23 = vector.load %arg12[%c0_34, %c0_35] : memref<32x96xf32, #tpu.memory_space<vmem>>, vector<32x96xf32>
    %c0_36 = arith.constant 0 : index
    %c0_37 = arith.constant 0 : index
    %24 = vector.load %arg14[%c0_36, %c0_37] : memref<1x96xf32, #tpu.memory_space<vmem>>, vector<1x96xf32>
    %c0_38 = arith.constant 0 : index
    %c0_39 = arith.constant 0 : index
    %25 = vector.load %arg15[%c0_38, %c0_39] : memref<32x32xf32, #tpu.memory_space<vmem>>, vector<32x32xf32>
    %c0_40 = arith.constant 0 : index
    %c0_41 = arith.constant 0 : index
    %26 = vector.load %arg16[%c0_40, %c0_41] : memref<1x32xf32, #tpu.memory_space<vmem>>, vector<1x32xf32>
    %c0_42 = arith.constant 0 : index
    %c0_43 = arith.constant 0 : index
    %27 = vector.load %arg17[%c0_42, %c0_43] : memref<32x32xf32, #tpu.memory_space<vmem>>, vector<32x32xf32>
    %c0_44 = arith.constant 0 : index
    %c0_45 = arith.constant 0 : index
    %28 = vector.load %arg18[%c0_44, %c0_45] : memref<1x32xf32, #tpu.memory_space<vmem>>, vector<1x32xf32>
    %cst_46 = arith.constant 0.000000e+00 : f32
    %29 = vector.broadcast %cst_46 : f32 to vector<8x32xf32>
    %cst_47 = arith.constant 0.000000e+00 : f32
    %30 = vector.broadcast %cst_47 : f32 to vector<16x32xf32>
    %cst_48 = arith.constant 0.000000e+00 : f32
    %31 = vector.broadcast %cst_48 : f32 to vector<8x32xf32>
    %c0_i32 = arith.constant 0 : i32
    %c8_i32 = arith.constant 8 : i32
    %32 = arith.muli %c0_i32, %c8_i32 : i32
    %33 = tpu.assume_multiple %32, 8 : i32
    %34 = arith.index_cast %33 : i32 to index
    %c0_49 = arith.constant 0 : index
    %35 = vector.load %arg24[%34, %c0_49] : memref<48x96xf32, #tpu.memory_space<vmem>>, vector<8x96xf32>
    %36 = arith.index_cast %33 : i32 to index
    %c0_50 = arith.constant 0 : index
    %37 = vector.load %arg25[%36, %c0_50] : memref<48x96xf32, #tpu.memory_space<vmem>>, vector<8x96xf32>
    %38 = arith.index_cast %c0_i32 : i32 to index
    %c0_51 = arith.constant 0 : index
    %c0_52 = arith.constant 0 : index
    %39 = vector.load %arg3[%38, %c0_51, %c0_52] : memref<6x8x2xf32, #tpu.memory_space<vmem>>, vector<1x8x2xf32>
    %40 = vector.shape_cast %39 : vector<1x8x2xf32> to vector<8x2xf32>
    %41 = arith.index_cast %c0_i32 : i32 to index
    %c0_53 = arith.constant 0 : index
    %c0_54 = arith.constant 0 : index
    %42 = vector.load %arg4[%41, %c0_53, %c0_54] : memref<6x8x1xf32, #tpu.memory_space<vmem>>, vector<1x8x1xf32>
    %43 = vector.shape_cast %42 : vector<1x8x1xf32> to vector<8x1xf32>
    %44 = tpu.iota {dimensions = array<i32: 1>} : vector<8x2xi32>
    %cst_55 = arith.constant dense<0xFF800000> : vector<8xf32>
    %45 = vector.multi_reduction <maximumf>, %40, %cst_55 [1] : vector<8x2xf32> to vector<8xf32>
    %46 = vector.shape_cast %45 : vector<8xf32> to vector<8x1xf32>
    %47 = vector.broadcast %46 : vector<8x1xf32> to vector<8x2xf32>
    %48 = arith.cmpf oge, %40, %47 : vector<8x2xf32>
    %c2_i32 = arith.constant 2 : i32
    %49 = vector.broadcast %c2_i32 : i32 to vector<8x2xi32>
    %50 = arith.select %48, %44, %49 : vector<8x2xi1>, vector<8x2xi32>
    %cst_56 = arith.constant dense<2147483647> : vector<8xi32>
    %51 = vector.multi_reduction <minsi>, %50, %cst_56 [1] : vector<8x2xi32> to vector<8xi32>
    %52 = vector.shape_cast %51 : vector<8xi32> to vector<8x1xi32>
    %53 = vector.broadcast %52 : vector<8x1xi32> to vector<8x2xi32>
    %54 = arith.cmpi eq, %44, %53 : vector<8x2xi32>
    %55 = arith.extui %54 : vector<8x2xi1> to vector<8x2xi32>
    %56 = arith.sitofp %55 : vector<8x2xi32> to vector<8x2xf32>
    %cst_57 = arith.constant 0.000000e+00 : f32
    %57 = vector.broadcast %cst_57 : f32 to vector<8x32xf32>
    %58 = vector.extract_strided_slice %56 {offsets = [0, 0], sizes = [8, 1], strides = [1, 1]} : vector<8x2xf32> to vector<8x1xf32>
    %59 = vector.extract_strided_slice %30 {offsets = [0, 0], sizes = [8, 32], strides = [1, 1]} : vector<16x32xf32> to vector<8x32xf32>
    %60 = vector.broadcast %58 : vector<8x1xf32> to vector<8x32xf32>
    %61 = arith.mulf %60, %59 : vector<8x32xf32>
    %62 = arith.addf %57, %61 : vector<8x32xf32>
    %63 = vector.extract_strided_slice %56 {offsets = [0, 1], sizes = [8, 1], strides = [1, 1]} : vector<8x2xf32> to vector<8x1xf32>
    %64 = vector.extract_strided_slice %30 {offsets = [8, 0], sizes = [8, 32], strides = [1, 1]} : vector<16x32xf32> to vector<8x32xf32>
    %65 = vector.broadcast %63 : vector<8x1xf32> to vector<8x32xf32>
    %66 = arith.mulf %65, %64 : vector<8x32xf32>
    %67 = arith.addf %62, %66 : vector<8x32xf32>
    %cst_58 = arith.constant dense<0.000000e+00> : vector<8x96xf32>
    %68 = tpu.matmul %67, %19, %cst_58 {dimension_numbers = #tpu.dot_dimension_numbers<[1], [0], [0], [1], [0, 0, 1, 1], [], []>} : vector<8x32xf32>, vector<32x96xf32>, vector<8x96xf32> -> vector<8x96xf32>
    %69 = arith.addf %35, %68 : vector<8x96xf32>
    %cst_59 = arith.constant dense<0.000000e+00> : vector<8x96xf32>
    %70 = tpu.matmul %29, %20, %cst_59 {dimension_numbers = #tpu.dot_dimension_numbers<[1], [0], [0], [1], [0, 0, 1, 1], [], []>} : vector<8x32xf32>, vector<32x96xf32>, vector<8x96xf32> -> vector<8x96xf32>
    %71 = vector.broadcast %21 : vector<1x96xf32> to vector<8x96xf32>
    %72 = arith.addf %70, %71 : vector<8x96xf32>
    %73 = vector.extract_strided_slice %69 {offsets = [0, 0], sizes = [8, 32], strides = [1, 1]} : vector<8x96xf32> to vector<8x32xf32>
    %74 = vector.extract_strided_slice %72 {offsets = [0, 0], sizes = [8, 32], strides = [1, 1]} : vector<8x96xf32> to vector<8x32xf32>
    %75 = arith.addf %73, %74 : vector<8x32xf32>
    %76 = arith.negf %75 : vector<8x32xf32>
    %77 = math.exp %76 : vector<8x32xf32>
    %cst_60 = arith.constant 1.000000e+00 : f32
    %78 = vector.broadcast %cst_60 : f32 to vector<8x32xf32>
    %79 = arith.addf %78, %77 : vector<8x32xf32>
    %80 = arith.divf %78, %79 : vector<8x32xf32>
    %81 = vector.extract_strided_slice %69 {offsets = [0, 32], sizes = [8, 32], strides = [1, 1]} : vector<8x96xf32> to vector<8x32xf32>
    %82 = vector.extract_strided_slice %72 {offsets = [0, 32], sizes = [8, 32], strides = [1, 1]} : vector<8x96xf32> to vector<8x32xf32>
    %83 = arith.addf %81, %82 : vector<8x32xf32>
    %84 = arith.negf %83 : vector<8x32xf32>
    %85 = math.exp %84 : vector<8x32xf32>
    %cst_61 = arith.constant 1.000000e+00 : f32
    %86 = vector.broadcast %cst_61 : f32 to vector<8x32xf32>
    %87 = arith.addf %86, %85 : vector<8x32xf32>
    %88 = arith.divf %86, %87 : vector<8x32xf32>
    %89 = vector.extract_strided_slice %69 {offsets = [0, 64], sizes = [8, 32], strides = [1, 1]} : vector<8x96xf32> to vector<8x32xf32>
    %90 = vector.extract_strided_slice %72 {offsets = [0, 64], sizes = [8, 32], strides = [1, 1]} : vector<8x96xf32> to vector<8x32xf32>
    %91 = arith.mulf %80, %90 : vector<8x32xf32>
    %92 = arith.addf %89, %91 : vector<8x32xf32>
    %93 = math.tanh %92 : vector<8x32xf32>
    %cst_62 = arith.constant 1.000000e+00 : f32
    %94 = vector.broadcast %cst_62 : f32 to vector<8x32xf32>
    %95 = arith.subf %94, %88 : vector<8x32xf32>
    %96 = arith.mulf %95, %93 : vector<8x32xf32>
    %97 = arith.mulf %88, %29 : vector<8x32xf32>
    %98 = arith.addf %96, %97 : vector<8x32xf32>
    %99 = arith.index_cast %c0_i32 : i32 to index
    %c0_63 = arith.constant 0 : index
    %c0_64 = arith.constant 0 : index
    %100 = vector.load %arg22[%99, %c0_63, %c0_64] : memref<6x8x32xf32, #tpu.memory_space<vmem>>, vector<1x8x32xf32>
    %101 = vector.shape_cast %100 : vector<1x8x32xf32> to vector<8x32xf32>
    %102 = vector.shape_cast %98 : vector<8x32xf32> to vector<1x8x32xf32>
    tpu.vector_store %arg22[%99, %c0_63, %c0_64], %102 {strides = array<i32>} : memref<6x8x32xf32, #tpu.memory_space<vmem>>, vector<1x8x32xf32>,
    %103 = vector.broadcast %18 : vector<1x32xf32> to vector<8x32xf32>
    %104 = arith.mulf %98, %103 : vector<8x32xf32>
    %cst_65 = arith.constant dense<0.000000e+00> : vector<8xf32>
    %105 = vector.multi_reduction <add>, %104, %cst_65 [1] : vector<8x32xf32> to vector<8xf32>
    %106 = vector.shape_cast %105 : vector<8xf32> to vector<8x1xf32>
    %107 = arith.index_cast %c0_i32 : i32 to index
    %c0_66 = arith.constant 0 : index
    %c0_67 = arith.constant 0 : index
    %108 = vector.load %arg23[%107, %c0_66, %c0_67] : memref<6x8x1xf32, #tpu.memory_space<vmem>>, vector<1x8x1xf32>
    %109 = vector.shape_cast %108 : vector<1x8x1xf32> to vector<8x1xf32>
    %110 = vector.shape_cast %106 : vector<8x1xf32> to vector<1x8x1xf32>
    tpu.vector_store %arg23[%107, %c0_66, %c0_67], %110 {strides = array<i32>} : memref<6x8x1xf32, #tpu.memory_space<vmem>>, vector<1x8x1xf32>,
    %c0_68 = arith.constant 0 : index
    %c0_69 = arith.constant 0 : index
    %c0_70 = arith.constant 0 : index
    %111 = vector.load %arg23[%c0_68, %c0_69, %c0_70] : memref<6x8x1xf32, #tpu.memory_space<vmem>>, vector<6x8x1xf32>
    %c0_71 = arith.constant 0 : index
    %c0_72 = arith.constant 0 : index
    %c0_73 = arith.constant 0 : index
    %112 = vector.load %arg22[%c0_71, %c0_72, %c0_73] : memref<6x8x32xf32, #tpu.memory_space<vmem>>, vector<6x8x32xf32>
    %113 = tpu.iota {dimensions = array<i32: 0>} : vector<6x8x1xi32>
    %114 = vector.broadcast %c0_i32 : i32 to vector<6x8x1xi32>
    %115 = arith.cmpi slt, %113, %114 : vector<6x8x1xi32>
    %cst_74 = arith.constant -1.000000e+30 : f32
    %116 = vector.broadcast %cst_74 : f32 to vector<6x8x1xf32>
    %117 = arith.select %115, %111, %116 : vector<6x8x1xi1>, vector<6x8x1xf32>
    %cst_75 = arith.constant dense<0xFF800000> : vector<8x1xf32>
    %118 = vector.multi_reduction <maximumf>, %117, %cst_75 [0] : vector<6x8x1xf32> to vector<8x1xf32>
    %119 = vector.shape_cast %118 : vector<8x1xf32> to vector<1x8x1xf32>
    %120 = vector.broadcast %119 : vector<1x8x1xf32> to vector<6x8x1xf32>
    %121 = arith.subf %117, %120 : vector<6x8x1xf32>
    %122 = math.exp %121 : vector<6x8x1xf32>
    %cst_76 = arith.constant 0.000000e+00 : f32
    %123 = vector.broadcast %cst_76 : f32 to vector<6x8x1xf32>
    %124 = arith.select %115, %122, %123 : vector<6x8x1xi1>, vector<6x8x1xf32>
    %cst_77 = arith.constant dense<0.000000e+00> : vector<8x1xf32>
    %125 = vector.multi_reduction <add>, %124, %cst_77 [0] : vector<6x8x1xf32> to vector<8x1xf32>
    %126 = vector.shape_cast %125 : vector<8x1xf32> to vector<1x8x1xf32>
    %cst_78 = arith.constant 1.000000e-30 : f32
    %127 = vector.broadcast %cst_78 : f32 to vector<1x8x1xf32>
    %128 = arith.maximumf %126, %127 : vector<1x8x1xf32>
    %129 = tpu.reciprocal %128 {approx = true} : vector<1x8x1xf32> -> vector<1x8x1xf32>
    %130 = vector.broadcast %129 : vector<1x8x1xf32> to vector<6x8x1xf32>
    %131 = arith.mulf %124, %130 : vector<6x8x1xf32>
    %132 = vector.broadcast %131 : vector<6x8x1xf32> to vector<6x8x32xf32>
    %133 = arith.mulf %132, %112 : vector<6x8x32xf32>
    %cst_79 = arith.constant dense<0.000000e+00> : vector<8x32xf32>
    %134 = vector.multi_reduction <add>, %133, %cst_79 [0] : vector<6x8x32xf32> to vector<8x32xf32>
    %cst_80 = arith.constant dense<0.000000e+00> : vector<8x96xf32>
    %135 = tpu.matmul %134, %22, %cst_80 {dimension_numbers = #tpu.dot_dimension_numbers<[1], [0], [0], [1], [0, 0, 1, 1], [], []>} : vector<8x32xf32>, vector<32x96xf32>, vector<8x96xf32> -> vector<8x96xf32>
    %136 = arith.addf %37, %135 : vector<8x96xf32>
    %cst_81 = arith.constant dense<0.000000e+00> : vector<16x96xf32>
    %137 = tpu.matmul %30, %23, %cst_81 {dimension_numbers = #tpu.dot_dimension_numbers<[1], [0], [0], [1], [0, 0, 1, 1], [], []>} : vector<16x32xf32>, vector<32x96xf32>, vector<16x96xf32> -> vector<16x96xf32>
    %138 = vector.broadcast %24 : vector<1x96xf32> to vector<16x96xf32>
    %139 = arith.addf %137, %138 : vector<16x96xf32>
    %140 = tpu.concatenate %136, %136 in 0 : vector<8x96xf32>, vector<8x96xf32> -> vector<16x96xf32>
    %141 = vector.extract_strided_slice %140 {offsets = [0, 0], sizes = [16, 32], strides = [1, 1]} : vector<16x96xf32> to vector<16x32xf32>
    %142 = vector.extract_strided_slice %139 {offsets = [0, 0], sizes = [16, 32], strides = [1, 1]} : vector<16x96xf32> to vector<16x32xf32>
    %143 = arith.addf %141, %142 : vector<16x32xf32>
    %144 = arith.negf %143 : vector<16x32xf32>
    %145 = math.exp %144 : vector<16x32xf32>
    %cst_82 = arith.constant 1.000000e+00 : f32
    %146 = vector.broadcast %cst_82 : f32 to vector<16x32xf32>
    %147 = arith.addf %146, %145 : vector<16x32xf32>
    %148 = arith.divf %146, %147 : vector<16x32xf32>
    %149 = vector.extract_strided_slice %140 {offsets = [0, 32], sizes = [16, 32], strides = [1, 1]} : vector<16x96xf32> to vector<16x32xf32>
    %150 = vector.extract_strided_slice %139 {offsets = [0, 32], sizes = [16, 32], strides = [1, 1]} : vector<16x96xf32> to vector<16x32xf32>
    %151 = arith.addf %149, %150 : vector<16x32xf32>
    %152 = arith.negf %151 : vector<16x32xf32>
    %153 = math.exp %152 : vector<16x32xf32>
    %cst_83 = arith.constant 1.000000e+00 : f32
    %154 = vector.broadcast %cst_83 : f32 to vector<16x32xf32>
    %155 = arith.addf %154, %153 : vector<16x32xf32>
    %156 = arith.divf %154, %155 : vector<16x32xf32>
    %157 = vector.extract_strided_slice %140 {offsets = [0, 64], sizes = [16, 32], strides = [1, 1]} : vector<16x96xf32> to vector<16x32xf32>
    %158 = vector.extract_strided_slice %139 {offsets = [0, 64], sizes = [16, 32], strides = [1, 1]} : vector<16x96xf32> to vector<16x32xf32>
    %159 = arith.mulf %148, %158 : vector<16x32xf32>
    %160 = arith.addf %157, %159 : vector<16x32xf32>
    %161 = math.tanh %160 : vector<16x32xf32>
    %cst_84 = arith.constant 1.000000e+00 : f32
    %162 = vector.broadcast %cst_84 : f32 to vector<16x32xf32>
    %163 = arith.subf %162, %156 : vector<16x32xf32>
    %164 = arith.mulf %163, %161 : vector<16x32xf32>
    %165 = arith.mulf %156, %30 : vector<16x32xf32>
    %166 = arith.addf %164, %165 : vector<16x32xf32>
    %167 = vector.extract_strided_slice %40 {offsets = [0, 0], sizes = [8, 1], strides = [1, 1]} : vector<8x2xf32> to vector<8x1xf32>
    %168 = vector.extract_strided_slice %40 {offsets = [0, 1], sizes = [8, 1], strides = [1, 1]} : vector<8x2xf32> to vector<8x1xf32>
    %169 = tpu.concatenate %167, %168 in 0 : vector<8x1xf32>, vector<8x1xf32> -> vector<16x1xf32>
    %cst_85 = arith.constant 1.000000e+00 : f32
    %170 = vector.broadcast %cst_85 : f32 to vector<16x1xf32>
    %171 = arith.subf %170, %169 : vector<16x1xf32>
    %172 = vector.broadcast %171 : vector<16x1xf32> to vector<16x32xf32>
    %173 = arith.mulf %30, %172 : vector<16x32xf32>
    %174 = vector.broadcast %169 : vector<16x1xf32> to vector<16x32xf32>
    %175 = arith.mulf %166, %174 : vector<16x32xf32>
    %176 = arith.addf %173, %175 : vector<16x32xf32>
    %cst_86 = arith.constant 0.000000e+00 : f32
    %177 = vector.broadcast %cst_86 : f32 to vector<8x32xf32>
    %178 = vector.extract_strided_slice %56 {offsets = [0, 0], sizes = [8, 1], strides = [1, 1]} : vector<8x2xf32> to vector<8x1xf32>
    %179 = vector.extract_strided_slice %176 {offsets = [0, 0], sizes = [8, 32], strides = [1, 1]} : vector<16x32xf32> to vector<8x32xf32>
    %180 = vector.broadcast %178 : vector<8x1xf32> to vector<8x32xf32>
    %181 = arith.mulf %180, %179 : vector<8x32xf32>
    %182 = arith.addf %177, %181 : vector<8x32xf32>
    %183 = vector.extract_strided_slice %56 {offsets = [0, 1], sizes = [8, 1], strides = [1, 1]} : vector<8x2xf32> to vector<8x1xf32>
    %184 = vector.extract_strided_slice %176 {offsets = [8, 0], sizes = [8, 32], strides = [1, 1]} : vector<16x32xf32> to vector<8x32xf32>
    %185 = vector.broadcast %183 : vector<8x1xf32> to vector<8x32xf32>
    %186 = arith.mulf %185, %184 : vector<8x32xf32>
    %187 = arith.addf %182, %186 : vector<8x32xf32>
    %cst_87 = arith.constant 1.000000e+00 : f32
    %188 = vector.broadcast %cst_87 : f32 to vector<8x1xf32>
    %189 = arith.subf %188, %43 : vector<8x1xf32>
    %cst_88 = arith.constant dense<0.000000e+00> : vector<8x32xf32>
    %190 = tpu.matmul %187, %25, %cst_88 {dimension_numbers = #tpu.dot_dimension_numbers<[1], [0], [0], [1], [0, 0, 1, 1], [], []>} : vector<8x32xf32>, vector<32x32xf32>, vector<8x32xf32> -> vector<8x32xf32>
    %191 = vector.broadcast %26 : vector<1x32xf32> to vector<8x32xf32>
    %192 = arith.addf %190, %191 : vector<8x32xf32>
    %193 = vector.broadcast %189 : vector<8x1xf32> to vector<8x32xf32>
    %194 = arith.mulf %193, %31 : vector<8x32xf32>
    %cst_89 = arith.constant dense<0.000000e+00> : vector<8x32xf32>
    %195 = tpu.matmul %194, %27, %cst_89 {dimension_numbers = #tpu.dot_dimension_numbers<[1], [0], [0], [1], [0, 0, 1, 1], [], []>} : vector<8x32xf32>, vector<32x32xf32>, vector<8x32xf32> -> vector<8x32xf32>
    %196 = arith.addf %192, %195 : vector<8x32xf32>
    %197 = vector.broadcast %28 : vector<1x32xf32> to vector<8x32xf32>
    %198 = arith.addf %196, %197 : vector<8x32xf32>
    %199 = math.tanh %198 : vector<8x32xf32>
    %200 = vector.broadcast %189 : vector<8x1xf32> to vector<8x32xf32>
    %201 = arith.mulf %200, %31 : vector<8x32xf32>
    %cst_90 = arith.constant 1.000000e+00 : f32
    %202 = vector.broadcast %cst_90 : f32 to vector<8x1xf32>
    %203 = arith.subf %202, %189 : vector<8x1xf32>
    %204 = vector.broadcast %203 : vector<8x1xf32> to vector<8x32xf32>
    %205 = arith.mulf %204, %199 : vector<8x32xf32>
    %206 = arith.addf %201, %205 : vector<8x32xf32>
    %207 = arith.index_cast %c0_i32 : i32 to index
    %c0_91 = arith.constant 0 : index
    %c0_92 = arith.constant 0 : index
    %208 = vector.load %arg20[%207, %c0_91, %c0_92] : memref<6x8x32xf32, #tpu.memory_space<vmem>>, vector<1x8x32xf32>
    %209 = vector.shape_cast %208 : vector<1x8x32xf32> to vector<8x32xf32>
    %210 = vector.shape_cast %206 : vector<8x32xf32> to vector<1x8x32xf32>
    tpu.vector_store %arg20[%207, %c0_91, %c0_92], %210 {strides = array<i32>} : memref<6x8x32xf32, #tpu.memory_space<vmem>>, vector<1x8x32xf32>,
    %c1_i32 = arith.constant 1 : i32
    %c8_i32_93 = arith.constant 8 : i32
    %211 = arith.muli %c1_i32, %c8_i32_93 : i32
    %212 = tpu.assume_multiple %211, 8 : i32
    %213 = arith.index_cast %212 : i32 to index
    %c0_94 = arith.constant 0 : index
    %214 = vector.load %arg24[%213, %c0_94] : memref<48x96xf32, #tpu.memory_space<vmem>>, vector<8x96xf32>
    %215 = arith.index_cast %212 : i32 to index
    %c0_95 = arith.constant 0 : index
    %216 = vector.load %arg25[%215, %c0_95] : memref<48x96xf32, #tpu.memory_space<vmem>>, vector<8x96xf32>
    %217 = arith.index_cast %c1_i32 : i32 to index
    %c0_96 = arith.constant 0 : index
    %c0_97 = arith.constant 0 : index
    %218 = vector.load %arg3[%217, %c0_96, %c0_97] : memref<6x8x2xf32, #tpu.memory_space<vmem>>, vector<1x8x2xf32>
    %219 = vector.shape_cast %218 : vector<1x8x2xf32> to vector<8x2xf32>
    %220 = arith.index_cast %c1_i32 : i32 to index
    %c0_98 = arith.constant 0 : index
    %c0_99 = arith.constant 0 : index
    %221 = vector.load %arg4[%220, %c0_98, %c0_99] : memref<6x8x1xf32, #tpu.memory_space<vmem>>, vector<1x8x1xf32>
    %222 = vector.shape_cast %221 : vector<1x8x1xf32> to vector<8x1xf32>
    %223 = tpu.iota {dimensions = array<i32: 1>} : vector<8x2xi32>
    %cst_100 = arith.constant dense<0xFF800000> : vector<8xf32>
    %224 = vector.multi_reduction <maximumf>, %219, %cst_100 [1] : vector<8x2xf32> to vector<8xf32>
    %225 = vector.shape_cast %224 : vector<8xf32> to vector<8x1xf32>
    %226 = vector.broadcast %225 : vector<8x1xf32> to vector<8x2xf32>
    %227 = arith.cmpf oge, %219, %226 : vector<8x2xf32>
    %c2_i32_101 = arith.constant 2 : i32
    %228 = vector.broadcast %c2_i32_101 : i32 to vector<8x2xi32>
    %229 = arith.select %227, %223, %228 : vector<8x2xi1>, vector<8x2xi32>
    %cst_102 = arith.constant dense<2147483647> : vector<8xi32>
    %230 = vector.multi_reduction <minsi>, %229, %cst_102 [1] : vector<8x2xi32> to vector<8xi32>
    %231 = vector.shape_cast %230 : vector<8xi32> to vector<8x1xi32>
    %232 = vector.broadcast %231 : vector<8x1xi32> to vector<8x2xi32>
    %233 = arith.cmpi eq, %223, %232 : vector<8x2xi32>
    %234 = arith.extui %233 : vector<8x2xi1> to vector<8x2xi32>
    %235 = arith.sitofp %234 : vector<8x2xi32> to vector<8x2xf32>
    %cst_103 = arith.constant 0.000000e+00 : f32
    %236 = vector.broadcast %cst_103 : f32 to vector<8x32xf32>
    %237 = vector.extract_strided_slice %235 {offsets = [0, 0], sizes = [8, 1], strides = [1, 1]} : vector<8x2xf32> to vector<8x1xf32>
    %238 = vector.extract_strided_slice %176 {offsets = [0, 0], sizes = [8, 32], strides = [1, 1]} : vector<16x32xf32> to vector<8x32xf32>
    %239 = vector.broadcast %237 : vector<8x1xf32> to vector<8x32xf32>
    %240 = arith.mulf %239, %238 : vector<8x32xf32>
    %241 = arith.addf %236, %240 : vector<8x32xf32>
    %242 = vector.extract_strided_slice %235 {offsets = [0, 1], sizes = [8, 1], strides = [1, 1]} : vector<8x2xf32> to vector<8x1xf32>
    %243 = vector.extract_strided_slice %176 {offsets = [8, 0], sizes = [8, 32], strides = [1, 1]} : vector<16x32xf32> to vector<8x32xf32>
    %244 = vector.broadcast %242 : vector<8x1xf32> to vector<8x32xf32>
    %245 = arith.mulf %244, %243 : vector<8x32xf32>
    %246 = arith.addf %241, %245 : vector<8x32xf32>
    %cst_104 = arith.constant dense<0.000000e+00> : vector<8x96xf32>
    %247 = tpu.matmul %246, %19, %cst_104 {dimension_numbers = #tpu.dot_dimension_numbers<[1], [0], [0], [1], [0, 0, 1, 1], [], []>} : vector<8x32xf32>, vector<32x96xf32>, vector<8x96xf32> -> vector<8x96xf32>
    %248 = arith.addf %214, %247 : vector<8x96xf32>
    %cst_105 = arith.constant dense<0.000000e+00> : vector<8x96xf32>
    %249 = tpu.matmul %98, %20, %cst_105 {dimension_numbers = #tpu.dot_dimension_numbers<[1], [0], [0], [1], [0, 0, 1, 1], [], []>} : vector<8x32xf32>, vector<32x96xf32>, vector<8x96xf32> -> vector<8x96xf32>
    %250 = vector.broadcast %21 : vector<1x96xf32> to vector<8x96xf32>
    %251 = arith.addf %249, %250 : vector<8x96xf32>
    %252 = vector.extract_strided_slice %248 {offsets = [0, 0], sizes = [8, 32], strides = [1, 1]} : vector<8x96xf32> to vector<8x32xf32>
    %253 = vector.extract_strided_slice %251 {offsets = [0, 0], sizes = [8, 32], strides = [1, 1]} : vector<8x96xf32> to vector<8x32xf32>
    %254 = arith.addf %252, %253 : vector<8x32xf32>
    %255 = arith.negf %254 : vector<8x32xf32>
    %256 = math.exp %255 : vector<8x32xf32>
    %cst_106 = arith.constant 1.000000e+00 : f32
    %257 = vector.broadcast %cst_106 : f32 to vector<8x32xf32>
    %258 = arith.addf %257, %256 : vector<8x32xf32>
    %259 = arith.divf %257, %258 : vector<8x32xf32>
    %260 = vector.extract_strided_slice %248 {offsets = [0, 32], sizes = [8, 32], strides = [1, 1]} : vector<8x96xf32> to vector<8x32xf32>
    %261 = vector.extract_strided_slice %251 {offsets = [0, 32], sizes = [8, 32], strides = [1, 1]} : vector<8x96xf32> to vector<8x32xf32>
    %262 = arith.addf %260, %261 : vector<8x32xf32>
    %263 = arith.negf %262 : vector<8x32xf32>
    %264 = math.exp %263 : vector<8x32xf32>
    %cst_107 = arith.constant 1.000000e+00 : f32
    %265 = vector.broadcast %cst_107 : f32 to vector<8x32xf32>
    %266 = arith.addf %265, %264 : vector<8x32xf32>
    %267 = arith.divf %265, %266 : vector<8x32xf32>
    %268 = vector.extract_strided_slice %248 {offsets = [0, 64], sizes = [8, 32], strides = [1, 1]} : vector<8x96xf32> to vector<8x32xf32>
    %269 = vector.extract_strided_slice %251 {offsets = [0, 64], sizes = [8, 32], strides = [1, 1]} : vector<8x96xf32> to vector<8x32xf32>
    %270 = arith.mulf %259, %269 : vector<8x32xf32>
    %271 = arith.addf %268, %270 : vector<8x32xf32>
    %272 = math.tanh %271 : vector<8x32xf32>
    %cst_108 = arith.constant 1.000000e+00 : f32
    %273 = vector.broadcast %cst_108 : f32 to vector<8x32xf32>
    %274 = arith.subf %273, %267 : vector<8x32xf32>
    %275 = arith.mulf %274, %272 : vector<8x32xf32>
    %276 = arith.mulf %267, %98 : vector<8x32xf32>
    %277 = arith.addf %275, %276 : vector<8x32xf32>
    %278 = arith.index_cast %c1_i32 : i32 to index
    %c0_109 = arith.constant 0 : index
    %c0_110 = arith.constant 0 : index
    %279 = vector.load %arg22[%278, %c0_109, %c0_110] : memref<6x8x32xf32, #tpu.memory_space<vmem>>, vector<1x8x32xf32>
    %280 = vector.shape_cast %279 : vector<1x8x32xf32> to vector<8x32xf32>
    %281 = vector.shape_cast %277 : vector<8x32xf32> to vector<1x8x32xf32>
    tpu.vector_store %arg22[%278, %c0_109, %c0_110], %281 {strides = array<i32>} : memref<6x8x32xf32, #tpu.memory_space<vmem>>, vector<1x8x32xf32>,
    %282 = vector.broadcast %18 : vector<1x32xf32> to vector<8x32xf32>
    %283 = arith.mulf %277, %282 : vector<8x32xf32>
    %cst_111 = arith.constant dense<0.000000e+00> : vector<8xf32>
    %284 = vector.multi_reduction <add>, %283, %cst_111 [1] : vector<8x32xf32> to vector<8xf32>
    %285 = vector.shape_cast %284 : vector<8xf32> to vector<8x1xf32>
    %286 = arith.index_cast %c1_i32 : i32 to index
    %c0_112 = arith.constant 0 : index
    %c0_113 = arith.constant 0 : index
    %287 = vector.load %arg23[%286, %c0_112, %c0_113] : memref<6x8x1xf32, #tpu.memory_space<vmem>>, vector<1x8x1xf32>
    %288 = vector.shape_cast %287 : vector<1x8x1xf32> to vector<8x1xf32>
    %289 = vector.shape_cast %285 : vector<8x1xf32> to vector<1x8x1xf32>
    tpu.vector_store %arg23[%286, %c0_112, %c0_113], %289 {strides = array<i32>} : memref<6x8x1xf32, #tpu.memory_space<vmem>>, vector<1x8x1xf32>,
    %c0_114 = arith.constant 0 : index
    %c0_115 = arith.constant 0 : index
    %c0_116 = arith.constant 0 : index
    %290 = vector.load %arg23[%c0_114, %c0_115, %c0_116] : memref<6x8x1xf32, #tpu.memory_space<vmem>>, vector<6x8x1xf32>
    %c0_117 = arith.constant 0 : index
    %c0_118 = arith.constant 0 : index
    %c0_119 = arith.constant 0 : index
    %291 = vector.load %arg22[%c0_117, %c0_118, %c0_119] : memref<6x8x32xf32, #tpu.memory_space<vmem>>, vector<6x8x32xf32>
    %292 = tpu.iota {dimensions = array<i32: 0>} : vector<6x8x1xi32>
    %293 = vector.broadcast %c1_i32 : i32 to vector<6x8x1xi32>
    %294 = arith.cmpi slt, %292, %293 : vector<6x8x1xi32>
    %cst_120 = arith.constant -1.000000e+30 : f32
    %295 = vector.broadcast %cst_120 : f32 to vector<6x8x1xf32>
    %296 = arith.select %294, %290, %295 : vector<6x8x1xi1>, vector<6x8x1xf32>
    %cst_121 = arith.constant dense<0xFF800000> : vector<8x1xf32>
    %297 = vector.multi_reduction <maximumf>, %296, %cst_121 [0] : vector<6x8x1xf32> to vector<8x1xf32>
    %298 = vector.shape_cast %297 : vector<8x1xf32> to vector<1x8x1xf32>
    %299 = vector.broadcast %298 : vector<1x8x1xf32> to vector<6x8x1xf32>
    %300 = arith.subf %296, %299 : vector<6x8x1xf32>
    %301 = math.exp %300 : vector<6x8x1xf32>
    %cst_122 = arith.constant 0.000000e+00 : f32
    %302 = vector.broadcast %cst_122 : f32 to vector<6x8x1xf32>
    %303 = arith.select %294, %301, %302 : vector<6x8x1xi1>, vector<6x8x1xf32>
    %cst_123 = arith.constant dense<0.000000e+00> : vector<8x1xf32>
    %304 = vector.multi_reduction <add>, %303, %cst_123 [0] : vector<6x8x1xf32> to vector<8x1xf32>
    %305 = vector.shape_cast %304 : vector<8x1xf32> to vector<1x8x1xf32>
    %cst_124 = arith.constant 1.000000e-30 : f32
    %306 = vector.broadcast %cst_124 : f32 to vector<1x8x1xf32>
    %307 = arith.maximumf %305, %306 : vector<1x8x1xf32>
    %308 = tpu.reciprocal %307 {approx = true} : vector<1x8x1xf32> -> vector<1x8x1xf32>
    %309 = vector.broadcast %308 : vector<1x8x1xf32> to vector<6x8x1xf32>
    %310 = arith.mulf %303, %309 : vector<6x8x1xf32>
    %311 = vector.broadcast %310 : vector<6x8x1xf32> to vector<6x8x32xf32>
    %312 = arith.mulf %311, %291 : vector<6x8x32xf32>
    %cst_125 = arith.constant dense<0.000000e+00> : vector<8x32xf32>
    %313 = vector.multi_reduction <add>, %312, %cst_125 [0] : vector<6x8x32xf32> to vector<8x32xf32>
    %cst_126 = arith.constant dense<0.000000e+00> : vector<8x96xf32>
    %314 = tpu.matmul %313, %22, %cst_126 {dimension_numbers = #tpu.dot_dimension_numbers<[1], [0], [0], [1], [0, 0, 1, 1], [], []>} : vector<8x32xf32>, vector<32x96xf32>, vector<8x96xf32> -> vector<8x96xf32>
    %315 = arith.addf %216, %314 : vector<8x96xf32>
    %cst_127 = arith.constant dense<0.000000e+00> : vector<16x96xf32>
    %316 = tpu.matmul %176, %23, %cst_127 {dimension_numbers = #tpu.dot_dimension_numbers<[1], [0], [0], [1], [0, 0, 1, 1], [], []>} : vector<16x32xf32>, vector<32x96xf32>, vector<16x96xf32> -> vector<16x96xf32>
    %317 = vector.broadcast %24 : vector<1x96xf32> to vector<16x96xf32>
    %318 = arith.addf %316, %317 : vector<16x96xf32>
    %319 = tpu.concatenate %315, %315 in 0 : vector<8x96xf32>, vector<8x96xf32> -> vector<16x96xf32>
    %320 = vector.extract_strided_slice %319 {offsets = [0, 0], sizes = [16, 32], strides = [1, 1]} : vector<16x96xf32> to vector<16x32xf32>
    %321 = vector.extract_strided_slice %318 {offsets = [0, 0], sizes = [16, 32], strides = [1, 1]} : vector<16x96xf32> to vector<16x32xf32>
    %322 = arith.addf %320, %321 : vector<16x32xf32>
    %323 = arith.negf %322 : vector<16x32xf32>
    %324 = math.exp %323 : vector<16x32xf32>
    %cst_128 = arith.constant 1.000000e+00 : f32
    %325 = vector.broadcast %cst_128 : f32 to vector<16x32xf32>
    %326 = arith.addf %325, %324 : vector<16x32xf32>
    %327 = arith.divf %325, %326 : vector<16x32xf32>
    %328 = vector.extract_strided_slice %319 {offsets = [0, 32], sizes = [16, 32], strides = [1, 1]} : vector<16x96xf32> to vector<16x32xf32>
    %329 = vector.extract_strided_slice %318 {offsets = [0, 32], sizes = [16, 32], strides = [1, 1]} : vector<16x96xf32> to vector<16x32xf32>
    %330 = arith.addf %328, %329 : vector<16x32xf32>
    %331 = arith.negf %330 : vector<16x32xf32>
    %332 = math.exp %331 : vector<16x32xf32>
    %cst_129 = arith.constant 1.000000e+00 : f32
    %333 = vector.broadcast %cst_129 : f32 to vector<16x32xf32>
    %334 = arith.addf %333, %332 : vector<16x32xf32>
    %335 = arith.divf %333, %334 : vector<16x32xf32>
    %336 = vector.extract_strided_slice %319 {offsets = [0, 64], sizes = [16, 32], strides = [1, 1]} : vector<16x96xf32> to vector<16x32xf32>
    %337 = vector.extract_strided_slice %318 {offsets = [0, 64], sizes = [16, 32], strides = [1, 1]} : vector<16x96xf32> to vector<16x32xf32>
    %338 = arith.mulf %327, %337 : vector<16x32xf32>
    %339 = arith.addf %336, %338 : vector<16x32xf32>
    %340 = math.tanh %339 : vector<16x32xf32>
    %cst_130 = arith.constant 1.000000e+00 : f32
    %341 = vector.broadcast %cst_130 : f32 to vector<16x32xf32>
    %342 = arith.subf %341, %335 : vector<16x32xf32>
    %343 = arith.mulf %342, %340 : vector<16x32xf32>
    %344 = arith.mulf %335, %176 : vector<16x32xf32>
    %345 = arith.addf %343, %344 : vector<16x32xf32>
    %346 = vector.extract_strided_slice %219 {offsets = [0, 0], sizes = [8, 1], strides = [1, 1]} : vector<8x2xf32> to vector<8x1xf32>
    %347 = vector.extract_strided_slice %219 {offsets = [0, 1], sizes = [8, 1], strides = [1, 1]} : vector<8x2xf32> to vector<8x1xf32>
    %348 = tpu.concatenate %346, %347 in 0 : vector<8x1xf32>, vector<8x1xf32> -> vector<16x1xf32>
    %cst_131 = arith.constant 1.000000e+00 : f32
    %349 = vector.broadcast %cst_131 : f32 to vector<16x1xf32>
    %350 = arith.subf %349, %348 : vector<16x1xf32>
    %351 = vector.broadcast %350 : vector<16x1xf32> to vector<16x32xf32>
    %352 = arith.mulf %176, %351 : vector<16x32xf32>
    %353 = vector.broadcast %348 : vector<16x1xf32> to vector<16x32xf32>
    %354 = arith.mulf %345, %353 : vector<16x32xf32>
    %355 = arith.addf %352, %354 : vector<16x32xf32>
    %cst_132 = arith.constant 0.000000e+00 : f32
    %356 = vector.broadcast %cst_132 : f32 to vector<8x32xf32>
    %357 = vector.extract_strided_slice %235 {offsets = [0, 0], sizes = [8, 1], strides = [1, 1]} : vector<8x2xf32> to vector<8x1xf32>
    %358 = vector.extract_strided_slice %355 {offsets = [0, 0], sizes = [8, 32], strides = [1, 1]} : vector<16x32xf32> to vector<8x32xf32>
    %359 = vector.broadcast %357 : vector<8x1xf32> to vector<8x32xf32>
    %360 = arith.mulf %359, %358 : vector<8x32xf32>
    %361 = arith.addf %356, %360 : vector<8x32xf32>
    %362 = vector.extract_strided_slice %235 {offsets = [0, 1], sizes = [8, 1], strides = [1, 1]} : vector<8x2xf32> to vector<8x1xf32>
    %363 = vector.extract_strided_slice %355 {offsets = [8, 0], sizes = [8, 32], strides = [1, 1]} : vector<16x32xf32> to vector<8x32xf32>
    %364 = vector.broadcast %362 : vector<8x1xf32> to vector<8x32xf32>
    %365 = arith.mulf %364, %363 : vector<8x32xf32>
    %366 = arith.addf %361, %365 : vector<8x32xf32>
    %cst_133 = arith.constant 1.000000e+00 : f32
    %367 = vector.broadcast %cst_133 : f32 to vector<8x1xf32>
    %368 = arith.subf %367, %222 : vector<8x1xf32>
    %cst_134 = arith.constant dense<0.000000e+00> : vector<8x32xf32>
    %369 = tpu.matmul %366, %25, %cst_134 {dimension_numbers = #tpu.dot_dimension_numbers<[1], [0], [0], [1], [0, 0, 1, 1], [], []>} : vector<8x32xf32>, vector<32x32xf32>, vector<8x32xf32> -> vector<8x32xf32>
    %370 = vector.broadcast %26 : vector<1x32xf32> to vector<8x32xf32>
    %371 = arith.addf %369, %370 : vector<8x32xf32>
    %372 = vector.broadcast %368 : vector<8x1xf32> to vector<8x32xf32>
    %373 = arith.mulf %372, %206 : vector<8x32xf32>
    %cst_135 = arith.constant dense<0.000000e+00> : vector<8x32xf32>
    %374 = tpu.matmul %373, %27, %cst_135 {dimension_numbers = #tpu.dot_dimension_numbers<[1], [0], [0], [1], [0, 0, 1, 1], [], []>} : vector<8x32xf32>, vector<32x32xf32>, vector<8x32xf32> -> vector<8x32xf32>
    %375 = arith.addf %371, %374 : vector<8x32xf32>
    %376 = vector.broadcast %28 : vector<1x32xf32> to vector<8x32xf32>
    %377 = arith.addf %375, %376 : vector<8x32xf32>
    %378 = math.tanh %377 : vector<8x32xf32>
    %379 = vector.broadcast %368 : vector<8x1xf32> to vector<8x32xf32>
    %380 = arith.mulf %379, %206 : vector<8x32xf32>
    %cst_136 = arith.constant 1.000000e+00 : f32
    %381 = vector.broadcast %cst_136 : f32 to vector<8x1xf32>
    %382 = arith.subf %381, %368 : vector<8x1xf32>
    %383 = vector.broadcast %382 : vector<8x1xf32> to vector<8x32xf32>
    %384 = arith.mulf %383, %378 : vector<8x32xf32>
    %385 = arith.addf %380, %384 : vector<8x32xf32>
    %386 = arith.index_cast %c1_i32 : i32 to index
    %c0_137 = arith.constant 0 : index
    %c0_138 = arith.constant 0 : index
    %387 = vector.load %arg20[%386, %c0_137, %c0_138] : memref<6x8x32xf32, #tpu.memory_space<vmem>>, vector<1x8x32xf32>
    %388 = vector.shape_cast %387 : vector<1x8x32xf32> to vector<8x32xf32>
    %389 = vector.shape_cast %385 : vector<8x32xf32> to vector<1x8x32xf32>
    tpu.vector_store %arg20[%386, %c0_137, %c0_138], %389 {strides = array<i32>} : memref<6x8x32xf32, #tpu.memory_space<vmem>>, vector<1x8x32xf32>,
    %c2_i32_139 = arith.constant 2 : i32
    %c8_i32_140 = arith.constant 8 : i32
    %390 = arith.muli %c2_i32_139, %c8_i32_140 : i32
    %391 = tpu.assume_multiple %390, 8 : i32
    %392 = arith.index_cast %391 : i32 to index
    %c0_141 = arith.constant 0 : index
    %393 = vector.load %arg24[%392, %c0_141] : memref<48x96xf32, #tpu.memory_space<vmem>>, vector<8x96xf32>
    %394 = arith.index_cast %391 : i32 to index
    %c0_142 = arith.constant 0 : index
    %395 = vector.load %arg25[%394, %c0_142] : memref<48x96xf32, #tpu.memory_space<vmem>>, vector<8x96xf32>
    %396 = arith.index_cast %c2_i32_139 : i32 to index
    %c0_143 = arith.constant 0 : index
    %c0_144 = arith.constant 0 : index
    %397 = vector.load %arg3[%396, %c0_143, %c0_144] : memref<6x8x2xf32, #tpu.memory_space<vmem>>, vector<1x8x2xf32>
    %398 = vector.shape_cast %397 : vector<1x8x2xf32> to vector<8x2xf32>
    %399 = arith.index_cast %c2_i32_139 : i32 to index
    %c0_145 = arith.constant 0 : index
    %c0_146 = arith.constant 0 : index
    %400 = vector.load %arg4[%399, %c0_145, %c0_146] : memref<6x8x1xf32, #tpu.memory_space<vmem>>, vector<1x8x1xf32>
    %401 = vector.shape_cast %400 : vector<1x8x1xf32> to vector<8x1xf32>
    %402 = tpu.iota {dimensions = array<i32: 1>} : vector<8x2xi32>
    %cst_147 = arith.constant dense<0xFF800000> : vector<8xf32>
    %403 = vector.multi_reduction <maximumf>, %398, %cst_147 [1] : vector<8x2xf32> to vector<8xf32>
    %404 = vector.shape_cast %403 : vector<8xf32> to vector<8x1xf32>
    %405 = vector.broadcast %404 : vector<8x1xf32> to vector<8x2xf32>
    %406 = arith.cmpf oge, %398, %405 : vector<8x2xf32>
    %c2_i32_148 = arith.constant 2 : i32
    %407 = vector.broadcast %c2_i32_148 : i32 to vector<8x2xi32>
    %408 = arith.select %406, %402, %407 : vector<8x2xi1>, vector<8x2xi32>
    %cst_149 = arith.constant dense<2147483647> : vector<8xi32>
    %409 = vector.multi_reduction <minsi>, %408, %cst_149 [1] : vector<8x2xi32> to vector<8xi32>
    %410 = vector.shape_cast %409 : vector<8xi32> to vector<8x1xi32>
    %411 = vector.broadcast %410 : vector<8x1xi32> to vector<8x2xi32>
    %412 = arith.cmpi eq, %402, %411 : vector<8x2xi32>
    %413 = arith.extui %412 : vector<8x2xi1> to vector<8x2xi32>
    %414 = arith.sitofp %413 : vector<8x2xi32> to vector<8x2xf32>
    %cst_150 = arith.constant 0.000000e+00 : f32
    %415 = vector.broadcast %cst_150 : f32 to vector<8x32xf32>
    %416 = vector.extract_strided_slice %414 {offsets = [0, 0], sizes = [8, 1], strides = [1, 1]} : vector<8x2xf32> to vector<8x1xf32>
    %417 = vector.extract_strided_slice %355 {offsets = [0, 0], sizes = [8, 32], strides = [1, 1]} : vector<16x32xf32> to vector<8x32xf32>
    %418 = vector.broadcast %416 : vector<8x1xf32> to vector<8x32xf32>
    %419 = arith.mulf %418, %417 : vector<8x32xf32>
    %420 = arith.addf %415, %419 : vector<8x32xf32>
    %421 = vector.extract_strided_slice %414 {offsets = [0, 1], sizes = [8, 1], strides = [1, 1]} : vector<8x2xf32> to vector<8x1xf32>
    %422 = vector.extract_strided_slice %355 {offsets = [8, 0], sizes = [8, 32], strides = [1, 1]} : vector<16x32xf32> to vector<8x32xf32>
    %423 = vector.broadcast %421 : vector<8x1xf32> to vector<8x32xf32>
    %424 = arith.mulf %423, %422 : vector<8x32xf32>
    %425 = arith.addf %420, %424 : vector<8x32xf32>
    %cst_151 = arith.constant dense<0.000000e+00> : vector<8x96xf32>
    %426 = tpu.matmul %425, %19, %cst_151 {dimension_numbers = #tpu.dot_dimension_numbers<[1], [0], [0], [1], [0, 0, 1, 1], [], []>} : vector<8x32xf32>, vector<32x96xf32>, vector<8x96xf32> -> vector<8x96xf32>
    %427 = arith.addf %393, %426 : vector<8x96xf32>
    %cst_152 = arith.constant dense<0.000000e+00> : vector<8x96xf32>
    %428 = tpu.matmul %277, %20, %cst_152 {dimension_numbers = #tpu.dot_dimension_numbers<[1], [0], [0], [1], [0, 0, 1, 1], [], []>} : vector<8x32xf32>, vector<32x96xf32>, vector<8x96xf32> -> vector<8x96xf32>
    %429 = vector.broadcast %21 : vector<1x96xf32> to vector<8x96xf32>
    %430 = arith.addf %428, %429 : vector<8x96xf32>
    %431 = vector.extract_strided_slice %427 {offsets = [0, 0], sizes = [8, 32], strides = [1, 1]} : vector<8x96xf32> to vector<8x32xf32>
    %432 = vector.extract_strided_slice %430 {offsets = [0, 0], sizes = [8, 32], strides = [1, 1]} : vector<8x96xf32> to vector<8x32xf32>
    %433 = arith.addf %431, %432 : vector<8x32xf32>
    %434 = arith.negf %433 : vector<8x32xf32>
    %435 = math.exp %434 : vector<8x32xf32>
    %cst_153 = arith.constant 1.000000e+00 : f32
    %436 = vector.broadcast %cst_153 : f32 to vector<8x32xf32>
    %437 = arith.addf %436, %435 : vector<8x32xf32>
    %438 = arith.divf %436, %437 : vector<8x32xf32>
    %439 = vector.extract_strided_slice %427 {offsets = [0, 32], sizes = [8, 32], strides = [1, 1]} : vector<8x96xf32> to vector<8x32xf32>
    %440 = vector.extract_strided_slice %430 {offsets = [0, 32], sizes = [8, 32], strides = [1, 1]} : vector<8x96xf32> to vector<8x32xf32>
    %441 = arith.addf %439, %440 : vector<8x32xf32>
    %442 = arith.negf %441 : vector<8x32xf32>
    %443 = math.exp %442 : vector<8x32xf32>
    %cst_154 = arith.constant 1.000000e+00 : f32
    %444 = vector.broadcast %cst_154 : f32 to vector<8x32xf32>
    %445 = arith.addf %444, %443 : vector<8x32xf32>
    %446 = arith.divf %444, %445 : vector<8x32xf32>
    %447 = vector.extract_strided_slice %427 {offsets = [0, 64], sizes = [8, 32], strides = [1, 1]} : vector<8x96xf32> to vector<8x32xf32>
    %448 = vector.extract_strided_slice %430 {offsets = [0, 64], sizes = [8, 32], strides = [1, 1]} : vector<8x96xf32> to vector<8x32xf32>
    %449 = arith.mulf %438, %448 : vector<8x32xf32>
    %450 = arith.addf %447, %449 : vector<8x32xf32>
    %451 = math.tanh %450 : vector<8x32xf32>
    %cst_155 = arith.constant 1.000000e+00 : f32
    %452 = vector.broadcast %cst_155 : f32 to vector<8x32xf32>
    %453 = arith.subf %452, %446 : vector<8x32xf32>
    %454 = arith.mulf %453, %451 : vector<8x32xf32>
    %455 = arith.mulf %446, %277 : vector<8x32xf32>
    %456 = arith.addf %454, %455 : vector<8x32xf32>
    %457 = arith.index_cast %c2_i32_139 : i32 to index
    %c0_156 = arith.constant 0 : index
    %c0_157 = arith.constant 0 : index
    %458 = vector.load %arg22[%457, %c0_156, %c0_157] : memref<6x8x32xf32, #tpu.memory_space<vmem>>, vector<1x8x32xf32>
    %459 = vector.shape_cast %458 : vector<1x8x32xf32> to vector<8x32xf32>
    %460 = vector.shape_cast %456 : vector<8x32xf32> to vector<1x8x32xf32>
    tpu.vector_store %arg22[%457, %c0_156, %c0_157], %460 {strides = array<i32>} : memref<6x8x32xf32, #tpu.memory_space<vmem>>, vector<1x8x32xf32>,
    %461 = vector.broadcast %18 : vector<1x32xf32> to vector<8x32xf32>
    %462 = arith.mulf %456, %461 : vector<8x32xf32>
    %cst_158 = arith.constant dense<0.000000e+00> : vector<8xf32>
    %463 = vector.multi_reduction <add>, %462, %cst_158 [1] : vector<8x32xf32> to vector<8xf32>
    %464 = vector.shape_cast %463 : vector<8xf32> to vector<8x1xf32>
    %465 = arith.index_cast %c2_i32_139 : i32 to index
    %c0_159 = arith.constant 0 : index
    %c0_160 = arith.constant 0 : index
    %466 = vector.load %arg23[%465, %c0_159, %c0_160] : memref<6x8x1xf32, #tpu.memory_space<vmem>>, vector<1x8x1xf32>
    %467 = vector.shape_cast %466 : vector<1x8x1xf32> to vector<8x1xf32>
    %468 = vector.shape_cast %464 : vector<8x1xf32> to vector<1x8x1xf32>
    tpu.vector_store %arg23[%465, %c0_159, %c0_160], %468 {strides = array<i32>} : memref<6x8x1xf32, #tpu.memory_space<vmem>>, vector<1x8x1xf32>,
    %c0_161 = arith.constant 0 : index
    %c0_162 = arith.constant 0 : index
    %c0_163 = arith.constant 0 : index
    %469 = vector.load %arg23[%c0_161, %c0_162, %c0_163] : memref<6x8x1xf32, #tpu.memory_space<vmem>>, vector<6x8x1xf32>
    %c0_164 = arith.constant 0 : index
    %c0_165 = arith.constant 0 : index
    %c0_166 = arith.constant 0 : index
    %470 = vector.load %arg22[%c0_164, %c0_165, %c0_166] : memref<6x8x32xf32, #tpu.memory_space<vmem>>, vector<6x8x32xf32>
    %471 = tpu.iota {dimensions = array<i32: 0>} : vector<6x8x1xi32>
    %472 = vector.broadcast %c2_i32_139 : i32 to vector<6x8x1xi32>
    %473 = arith.cmpi slt, %471, %472 : vector<6x8x1xi32>
    %cst_167 = arith.constant -1.000000e+30 : f32
    %474 = vector.broadcast %cst_167 : f32 to vector<6x8x1xf32>
    %475 = arith.select %473, %469, %474 : vector<6x8x1xi1>, vector<6x8x1xf32>
    %cst_168 = arith.constant dense<0xFF800000> : vector<8x1xf32>
    %476 = vector.multi_reduction <maximumf>, %475, %cst_168 [0] : vector<6x8x1xf32> to vector<8x1xf32>
    %477 = vector.shape_cast %476 : vector<8x1xf32> to vector<1x8x1xf32>
    %478 = vector.broadcast %477 : vector<1x8x1xf32> to vector<6x8x1xf32>
    %479 = arith.subf %475, %478 : vector<6x8x1xf32>
    %480 = math.exp %479 : vector<6x8x1xf32>
    %cst_169 = arith.constant 0.000000e+00 : f32
    %481 = vector.broadcast %cst_169 : f32 to vector<6x8x1xf32>
    %482 = arith.select %473, %480, %481 : vector<6x8x1xi1>, vector<6x8x1xf32>
    %cst_170 = arith.constant dense<0.000000e+00> : vector<8x1xf32>
    %483 = vector.multi_reduction <add>, %482, %cst_170 [0] : vector<6x8x1xf32> to vector<8x1xf32>
    %484 = vector.shape_cast %483 : vector<8x1xf32> to vector<1x8x1xf32>
    %cst_171 = arith.constant 1.000000e-30 : f32
    %485 = vector.broadcast %cst_171 : f32 to vector<1x8x1xf32>
    %486 = arith.maximumf %484, %485 : vector<1x8x1xf32>
    %487 = tpu.reciprocal %486 {approx = true} : vector<1x8x1xf32> -> vector<1x8x1xf32>
    %488 = vector.broadcast %487 : vector<1x8x1xf32> to vector<6x8x1xf32>
    %489 = arith.mulf %482, %488 : vector<6x8x1xf32>
    %490 = vector.broadcast %489 : vector<6x8x1xf32> to vector<6x8x32xf32>
    %491 = arith.mulf %490, %470 : vector<6x8x32xf32>
    %cst_172 = arith.constant dense<0.000000e+00> : vector<8x32xf32>
    %492 = vector.multi_reduction <add>, %491, %cst_172 [0] : vector<6x8x32xf32> to vector<8x32xf32>
    %cst_173 = arith.constant dense<0.000000e+00> : vector<8x96xf32>
    %493 = tpu.matmul %492, %22, %cst_173 {dimension_numbers = #tpu.dot_dimension_numbers<[1], [0], [0], [1], [0, 0, 1, 1], [], []>} : vector<8x32xf32>, vector<32x96xf32>, vector<8x96xf32> -> vector<8x96xf32>
    %494 = arith.addf %395, %493 : vector<8x96xf32>
    %cst_174 = arith.constant dense<0.000000e+00> : vector<16x96xf32>
    %495 = tpu.matmul %355, %23, %cst_174 {dimension_numbers = #tpu.dot_dimension_numbers<[1], [0], [0], [1], [0, 0, 1, 1], [], []>} : vector<16x32xf32>, vector<32x96xf32>, vector<16x96xf32> -> vector<16x96xf32>
    %496 = vector.broadcast %24 : vector<1x96xf32> to vector<16x96xf32>
    %497 = arith.addf %495, %496 : vector<16x96xf32>
    %498 = tpu.concatenate %494, %494 in 0 : vector<8x96xf32>, vector<8x96xf32> -> vector<16x96xf32>
    %499 = vector.extract_strided_slice %498 {offsets = [0, 0], sizes = [16, 32], strides = [1, 1]} : vector<16x96xf32> to vector<16x32xf32>
    %500 = vector.extract_strided_slice %497 {offsets = [0, 0], sizes = [16, 32], strides = [1, 1]} : vector<16x96xf32> to vector<16x32xf32>
    %501 = arith.addf %499, %500 : vector<16x32xf32>
    %502 = arith.negf %501 : vector<16x32xf32>
    %503 = math.exp %502 : vector<16x32xf32>
    %cst_175 = arith.constant 1.000000e+00 : f32
    %504 = vector.broadcast %cst_175 : f32 to vector<16x32xf32>
    %505 = arith.addf %504, %503 : vector<16x32xf32>
    %506 = arith.divf %504, %505 : vector<16x32xf32>
    %507 = vector.extract_strided_slice %498 {offsets = [0, 32], sizes = [16, 32], strides = [1, 1]} : vector<16x96xf32> to vector<16x32xf32>
    %508 = vector.extract_strided_slice %497 {offsets = [0, 32], sizes = [16, 32], strides = [1, 1]} : vector<16x96xf32> to vector<16x32xf32>
    %509 = arith.addf %507, %508 : vector<16x32xf32>
    %510 = arith.negf %509 : vector<16x32xf32>
    %511 = math.exp %510 : vector<16x32xf32>
    %cst_176 = arith.constant 1.000000e+00 : f32
    %512 = vector.broadcast %cst_176 : f32 to vector<16x32xf32>
    %513 = arith.addf %512, %511 : vector<16x32xf32>
    %514 = arith.divf %512, %513 : vector<16x32xf32>
    %515 = vector.extract_strided_slice %498 {offsets = [0, 64], sizes = [16, 32], strides = [1, 1]} : vector<16x96xf32> to vector<16x32xf32>
    %516 = vector.extract_strided_slice %497 {offsets = [0, 64], sizes = [16, 32], strides = [1, 1]} : vector<16x96xf32> to vector<16x32xf32>
    %517 = arith.mulf %506, %516 : vector<16x32xf32>
    %518 = arith.addf %515, %517 : vector<16x32xf32>
    %519 = math.tanh %518 : vector<16x32xf32>
    %cst_177 = arith.constant 1.000000e+00 : f32
    %520 = vector.broadcast %cst_177 : f32 to vector<16x32xf32>
    %521 = arith.subf %520, %514 : vector<16x32xf32>
    %522 = arith.mulf %521, %519 : vector<16x32xf32>
    %523 = arith.mulf %514, %355 : vector<16x32xf32>
    %524 = arith.addf %522, %523 : vector<16x32xf32>
    %525 = vector.extract_strided_slice %398 {offsets = [0, 0], sizes = [8, 1], strides = [1, 1]} : vector<8x2xf32> to vector<8x1xf32>
    %526 = vector.extract_strided_slice %398 {offsets = [0, 1], sizes = [8, 1], strides = [1, 1]} : vector<8x2xf32> to vector<8x1xf32>
    %527 = tpu.concatenate %525, %526 in 0 : vector<8x1xf32>, vector<8x1xf32> -> vector<16x1xf32>
    %cst_178 = arith.constant 1.000000e+00 : f32
    %528 = vector.broadcast %cst_178 : f32 to vector<16x1xf32>
    %529 = arith.subf %528, %527 : vector<16x1xf32>
    %530 = vector.broadcast %529 : vector<16x1xf32> to vector<16x32xf32>
    %531 = arith.mulf %355, %530 : vector<16x32xf32>
    %532 = vector.broadcast %527 : vector<16x1xf32> to vector<16x32xf32>
    %533 = arith.mulf %524, %532 : vector<16x32xf32>
    %534 = arith.addf %531, %533 : vector<16x32xf32>
    %cst_179 = arith.constant 0.000000e+00 : f32
    %535 = vector.broadcast %cst_179 : f32 to vector<8x32xf32>
    %536 = vector.extract_strided_slice %414 {offsets = [0, 0], sizes = [8, 1], strides = [1, 1]} : vector<8x2xf32> to vector<8x1xf32>
    %537 = vector.extract_strided_slice %534 {offsets = [0, 0], sizes = [8, 32], strides = [1, 1]} : vector<16x32xf32> to vector<8x32xf32>
    %538 = vector.broadcast %536 : vector<8x1xf32> to vector<8x32xf32>
    %539 = arith.mulf %538, %537 : vector<8x32xf32>
    %540 = arith.addf %535, %539 : vector<8x32xf32>
    %541 = vector.extract_strided_slice %414 {offsets = [0, 1], sizes = [8, 1], strides = [1, 1]} : vector<8x2xf32> to vector<8x1xf32>
    %542 = vector.extract_strided_slice %534 {offsets = [8, 0], sizes = [8, 32], strides = [1, 1]} : vector<16x32xf32> to vector<8x32xf32>
    %543 = vector.broadcast %541 : vector<8x1xf32> to vector<8x32xf32>
    %544 = arith.mulf %543, %542 : vector<8x32xf32>
    %545 = arith.addf %540, %544 : vector<8x32xf32>
    %cst_180 = arith.constant 1.000000e+00 : f32
    %546 = vector.broadcast %cst_180 : f32 to vector<8x1xf32>
    %547 = arith.subf %546, %401 : vector<8x1xf32>
    %cst_181 = arith.constant dense<0.000000e+00> : vector<8x32xf32>
    %548 = tpu.matmul %545, %25, %cst_181 {dimension_numbers = #tpu.dot_dimension_numbers<[1], [0], [0], [1], [0, 0, 1, 1], [], []>} : vector<8x32xf32>, vector<32x32xf32>, vector<8x32xf32> -> vector<8x32xf32>
    %549 = vector.broadcast %26 : vector<1x32xf32> to vector<8x32xf32>
    %550 = arith.addf %548, %549 : vector<8x32xf32>
    %551 = vector.broadcast %547 : vector<8x1xf32> to vector<8x32xf32>
    %552 = arith.mulf %551, %385 : vector<8x32xf32>
    %cst_182 = arith.constant dense<0.000000e+00> : vector<8x32xf32>
    %553 = tpu.matmul %552, %27, %cst_182 {dimension_numbers = #tpu.dot_dimension_numbers<[1], [0], [0], [1], [0, 0, 1, 1], [], []>} : vector<8x32xf32>, vector<32x32xf32>, vector<8x32xf32> -> vector<8x32xf32>
    %554 = arith.addf %550, %553 : vector<8x32xf32>
    %555 = vector.broadcast %28 : vector<1x32xf32> to vector<8x32xf32>
    %556 = arith.addf %554, %555 : vector<8x32xf32>
    %557 = math.tanh %556 : vector<8x32xf32>
    %558 = vector.broadcast %547 : vector<8x1xf32> to vector<8x32xf32>
    %559 = arith.mulf %558, %385 : vector<8x32xf32>
    %cst_183 = arith.constant 1.000000e+00 : f32
    %560 = vector.broadcast %cst_183 : f32 to vector<8x1xf32>
    %561 = arith.subf %560, %547 : vector<8x1xf32>
    %562 = vector.broadcast %561 : vector<8x1xf32> to vector<8x32xf32>
    %563 = arith.mulf %562, %557 : vector<8x32xf32>
    %564 = arith.addf %559, %563 : vector<8x32xf32>
    %565 = arith.index_cast %c2_i32_139 : i32 to index
    %c0_184 = arith.constant 0 : index
    %c0_185 = arith.constant 0 : index
    %566 = vector.load %arg20[%565, %c0_184, %c0_185] : memref<6x8x32xf32, #tpu.memory_space<vmem>>, vector<1x8x32xf32>
    %567 = vector.shape_cast %566 : vector<1x8x32xf32> to vector<8x32xf32>
    %568 = vector.shape_cast %564 : vector<8x32xf32> to vector<1x8x32xf32>
    tpu.vector_store %arg20[%565, %c0_184, %c0_185], %568 {strides = array<i32>} : memref<6x8x32xf32, #tpu.memory_space<vmem>>, vector<1x8x32xf32>,
    %c3_i32 = arith.constant 3 : i32
    %c8_i32_186 = arith.constant 8 : i32
    %569 = arith.muli %c3_i32, %c8_i32_186 : i32
    %570 = tpu.assume_multiple %569, 8 : i32
    %571 = arith.index_cast %570 : i32 to index
    %c0_187 = arith.constant 0 : index
    %572 = vector.load %arg24[%571, %c0_187] : memref<48x96xf32, #tpu.memory_space<vmem>>, vector<8x96xf32>
    %573 = arith.index_cast %570 : i32 to index
    %c0_188 = arith.constant 0 : index
    %574 = vector.load %arg25[%573, %c0_188] : memref<48x96xf32, #tpu.memory_space<vmem>>, vector<8x96xf32>
    %575 = arith.index_cast %c3_i32 : i32 to index
    %c0_189 = arith.constant 0 : index
    %c0_190 = arith.constant 0 : index
    %576 = vector.load %arg3[%575, %c0_189, %c0_190] : memref<6x8x2xf32, #tpu.memory_space<vmem>>, vector<1x8x2xf32>
    %577 = vector.shape_cast %576 : vector<1x8x2xf32> to vector<8x2xf32>
    %578 = arith.index_cast %c3_i32 : i32 to index
    %c0_191 = arith.constant 0 : index
    %c0_192 = arith.constant 0 : index
    %579 = vector.load %arg4[%578, %c0_191, %c0_192] : memref<6x8x1xf32, #tpu.memory_space<vmem>>, vector<1x8x1xf32>
    %580 = vector.shape_cast %579 : vector<1x8x1xf32> to vector<8x1xf32>
    %581 = tpu.iota {dimensions = array<i32: 1>} : vector<8x2xi32>
    %cst_193 = arith.constant dense<0xFF800000> : vector<8xf32>
    %582 = vector.multi_reduction <maximumf>, %577, %cst_193 [1] : vector<8x2xf32> to vector<8xf32>
    %583 = vector.shape_cast %582 : vector<8xf32> to vector<8x1xf32>
    %584 = vector.broadcast %583 : vector<8x1xf32> to vector<8x2xf32>
    %585 = arith.cmpf oge, %577, %584 : vector<8x2xf32>
    %c2_i32_194 = arith.constant 2 : i32
    %586 = vector.broadcast %c2_i32_194 : i32 to vector<8x2xi32>
    %587 = arith.select %585, %581, %586 : vector<8x2xi1>, vector<8x2xi32>
    %cst_195 = arith.constant dense<2147483647> : vector<8xi32>
    %588 = vector.multi_reduction <minsi>, %587, %cst_195 [1] : vector<8x2xi32> to vector<8xi32>
    %589 = vector.shape_cast %588 : vector<8xi32> to vector<8x1xi32>
    %590 = vector.broadcast %589 : vector<8x1xi32> to vector<8x2xi32>
    %591 = arith.cmpi eq, %581, %590 : vector<8x2xi32>
    %592 = arith.extui %591 : vector<8x2xi1> to vector<8x2xi32>
    %593 = arith.sitofp %592 : vector<8x2xi32> to vector<8x2xf32>
    %cst_196 = arith.constant 0.000000e+00 : f32
    %594 = vector.broadcast %cst_196 : f32 to vector<8x32xf32>
    %595 = vector.extract_strided_slice %593 {offsets = [0, 0], sizes = [8, 1], strides = [1, 1]} : vector<8x2xf32> to vector<8x1xf32>
    %596 = vector.extract_strided_slice %534 {offsets = [0, 0], sizes = [8, 32], strides = [1, 1]} : vector<16x32xf32> to vector<8x32xf32>
    %597 = vector.broadcast %595 : vector<8x1xf32> to vector<8x32xf32>
    %598 = arith.mulf %597, %596 : vector<8x32xf32>
    %599 = arith.addf %594, %598 : vector<8x32xf32>
    %600 = vector.extract_strided_slice %593 {offsets = [0, 1], sizes = [8, 1], strides = [1, 1]} : vector<8x2xf32> to vector<8x1xf32>
    %601 = vector.extract_strided_slice %534 {offsets = [8, 0], sizes = [8, 32], strides = [1, 1]} : vector<16x32xf32> to vector<8x32xf32>
    %602 = vector.broadcast %600 : vector<8x1xf32> to vector<8x32xf32>
    %603 = arith.mulf %602, %601 : vector<8x32xf32>
    %604 = arith.addf %599, %603 : vector<8x32xf32>
    %cst_197 = arith.constant dense<0.000000e+00> : vector<8x96xf32>
    %605 = tpu.matmul %604, %19, %cst_197 {dimension_numbers = #tpu.dot_dimension_numbers<[1], [0], [0], [1], [0, 0, 1, 1], [], []>} : vector<8x32xf32>, vector<32x96xf32>, vector<8x96xf32> -> vector<8x96xf32>
    %606 = arith.addf %572, %605 : vector<8x96xf32>
    %cst_198 = arith.constant dense<0.000000e+00> : vector<8x96xf32>
    %607 = tpu.matmul %456, %20, %cst_198 {dimension_numbers = #tpu.dot_dimension_numbers<[1], [0], [0], [1], [0, 0, 1, 1], [], []>} : vector<8x32xf32>, vector<32x96xf32>, vector<8x96xf32> -> vector<8x96xf32>
    %608 = vector.broadcast %21 : vector<1x96xf32> to vector<8x96xf32>
    %609 = arith.addf %607, %608 : vector<8x96xf32>
    %610 = vector.extract_strided_slice %606 {offsets = [0, 0], sizes = [8, 32], strides = [1, 1]} : vector<8x96xf32> to vector<8x32xf32>
    %611 = vector.extract_strided_slice %609 {offsets = [0, 0], sizes = [8, 32], strides = [1, 1]} : vector<8x96xf32> to vector<8x32xf32>
    %612 = arith.addf %610, %611 : vector<8x32xf32>
    %613 = arith.negf %612 : vector<8x32xf32>
    %614 = math.exp %613 : vector<8x32xf32>
    %cst_199 = arith.constant 1.000000e+00 : f32
    %615 = vector.broadcast %cst_199 : f32 to vector<8x32xf32>
    %616 = arith.addf %615, %614 : vector<8x32xf32>
    %617 = arith.divf %615, %616 : vector<8x32xf32>
    %618 = vector.extract_strided_slice %606 {offsets = [0, 32], sizes = [8, 32], strides = [1, 1]} : vector<8x96xf32> to vector<8x32xf32>
    %619 = vector.extract_strided_slice %609 {offsets = [0, 32], sizes = [8, 32], strides = [1, 1]} : vector<8x96xf32> to vector<8x32xf32>
    %620 = arith.addf %618, %619 : vector<8x32xf32>
    %621 = arith.negf %620 : vector<8x32xf32>
    %622 = math.exp %621 : vector<8x32xf32>
    %cst_200 = arith.constant 1.000000e+00 : f32
    %623 = vector.broadcast %cst_200 : f32 to vector<8x32xf32>
    %624 = arith.addf %623, %622 : vector<8x32xf32>
    %625 = arith.divf %623, %624 : vector<8x32xf32>
    %626 = vector.extract_strided_slice %606 {offsets = [0, 64], sizes = [8, 32], strides = [1, 1]} : vector<8x96xf32> to vector<8x32xf32>
    %627 = vector.extract_strided_slice %609 {offsets = [0, 64], sizes = [8, 32], strides = [1, 1]} : vector<8x96xf32> to vector<8x32xf32>
    %628 = arith.mulf %617, %627 : vector<8x32xf32>
    %629 = arith.addf %626, %628 : vector<8x32xf32>
    %630 = math.tanh %629 : vector<8x32xf32>
    %cst_201 = arith.constant 1.000000e+00 : f32
    %631 = vector.broadcast %cst_201 : f32 to vector<8x32xf32>
    %632 = arith.subf %631, %625 : vector<8x32xf32>
    %633 = arith.mulf %632, %630 : vector<8x32xf32>
    %634 = arith.mulf %625, %456 : vector<8x32xf32>
    %635 = arith.addf %633, %634 : vector<8x32xf32>
    %636 = arith.index_cast %c3_i32 : i32 to index
    %c0_202 = arith.constant 0 : index
    %c0_203 = arith.constant 0 : index
    %637 = vector.load %arg22[%636, %c0_202, %c0_203] : memref<6x8x32xf32, #tpu.memory_space<vmem>>, vector<1x8x32xf32>
    %638 = vector.shape_cast %637 : vector<1x8x32xf32> to vector<8x32xf32>
    %639 = vector.shape_cast %635 : vector<8x32xf32> to vector<1x8x32xf32>
    tpu.vector_store %arg22[%636, %c0_202, %c0_203], %639 {strides = array<i32>} : memref<6x8x32xf32, #tpu.memory_space<vmem>>, vector<1x8x32xf32>,
    %640 = vector.broadcast %18 : vector<1x32xf32> to vector<8x32xf32>
    %641 = arith.mulf %635, %640 : vector<8x32xf32>
    %cst_204 = arith.constant dense<0.000000e+00> : vector<8xf32>
    %642 = vector.multi_reduction <add>, %641, %cst_204 [1] : vector<8x32xf32> to vector<8xf32>
    %643 = vector.shape_cast %642 : vector<8xf32> to vector<8x1xf32>
    %644 = arith.index_cast %c3_i32 : i32 to index
    %c0_205 = arith.constant 0 : index
    %c0_206 = arith.constant 0 : index
    %645 = vector.load %arg23[%644, %c0_205, %c0_206] : memref<6x8x1xf32, #tpu.memory_space<vmem>>, vector<1x8x1xf32>
    %646 = vector.shape_cast %645 : vector<1x8x1xf32> to vector<8x1xf32>
    %647 = vector.shape_cast %643 : vector<8x1xf32> to vector<1x8x1xf32>
    tpu.vector_store %arg23[%644, %c0_205, %c0_206], %647 {strides = array<i32>} : memref<6x8x1xf32, #tpu.memory_space<vmem>>, vector<1x8x1xf32>,
    %c0_207 = arith.constant 0 : index
    %c0_208 = arith.constant 0 : index
    %c0_209 = arith.constant 0 : index
    %648 = vector.load %arg23[%c0_207, %c0_208, %c0_209] : memref<6x8x1xf32, #tpu.memory_space<vmem>>, vector<6x8x1xf32>
    %c0_210 = arith.constant 0 : index
    %c0_211 = arith.constant 0 : index
    %c0_212 = arith.constant 0 : index
    %649 = vector.load %arg22[%c0_210, %c0_211, %c0_212] : memref<6x8x32xf32, #tpu.memory_space<vmem>>, vector<6x8x32xf32>
    %650 = tpu.iota {dimensions = array<i32: 0>} : vector<6x8x1xi32>
    %651 = vector.broadcast %c3_i32 : i32 to vector<6x8x1xi32>
    %652 = arith.cmpi slt, %650, %651 : vector<6x8x1xi32>
    %cst_213 = arith.constant -1.000000e+30 : f32
    %653 = vector.broadcast %cst_213 : f32 to vector<6x8x1xf32>
    %654 = arith.select %652, %648, %653 : vector<6x8x1xi1>, vector<6x8x1xf32>
    %cst_214 = arith.constant dense<0xFF800000> : vector<8x1xf32>
    %655 = vector.multi_reduction <maximumf>, %654, %cst_214 [0] : vector<6x8x1xf32> to vector<8x1xf32>
    %656 = vector.shape_cast %655 : vector<8x1xf32> to vector<1x8x1xf32>
    %657 = vector.broadcast %656 : vector<1x8x1xf32> to vector<6x8x1xf32>
    %658 = arith.subf %654, %657 : vector<6x8x1xf32>
    %659 = math.exp %658 : vector<6x8x1xf32>
    %cst_215 = arith.constant 0.000000e+00 : f32
    %660 = vector.broadcast %cst_215 : f32 to vector<6x8x1xf32>
    %661 = arith.select %652, %659, %660 : vector<6x8x1xi1>, vector<6x8x1xf32>
    %cst_216 = arith.constant dense<0.000000e+00> : vector<8x1xf32>
    %662 = vector.multi_reduction <add>, %661, %cst_216 [0] : vector<6x8x1xf32> to vector<8x1xf32>
    %663 = vector.shape_cast %662 : vector<8x1xf32> to vector<1x8x1xf32>
    %cst_217 = arith.constant 1.000000e-30 : f32
    %664 = vector.broadcast %cst_217 : f32 to vector<1x8x1xf32>
    %665 = arith.maximumf %663, %664 : vector<1x8x1xf32>
    %666 = tpu.reciprocal %665 {approx = true} : vector<1x8x1xf32> -> vector<1x8x1xf32>
    %667 = vector.broadcast %666 : vector<1x8x1xf32> to vector<6x8x1xf32>
    %668 = arith.mulf %661, %667 : vector<6x8x1xf32>
    %669 = vector.broadcast %668 : vector<6x8x1xf32> to vector<6x8x32xf32>
    %670 = arith.mulf %669, %649 : vector<6x8x32xf32>
    %cst_218 = arith.constant dense<0.000000e+00> : vector<8x32xf32>
    %671 = vector.multi_reduction <add>, %670, %cst_218 [0] : vector<6x8x32xf32> to vector<8x32xf32>
    %cst_219 = arith.constant dense<0.000000e+00> : vector<8x96xf32>
    %672 = tpu.matmul %671, %22, %cst_219 {dimension_numbers = #tpu.dot_dimension_numbers<[1], [0], [0], [1], [0, 0, 1, 1], [], []>} : vector<8x32xf32>, vector<32x96xf32>, vector<8x96xf32> -> vector<8x96xf32>
    %673 = arith.addf %574, %672 : vector<8x96xf32>
    %cst_220 = arith.constant dense<0.000000e+00> : vector<16x96xf32>
    %674 = tpu.matmul %534, %23, %cst_220 {dimension_numbers = #tpu.dot_dimension_numbers<[1], [0], [0], [1], [0, 0, 1, 1], [], []>} : vector<16x32xf32>, vector<32x96xf32>, vector<16x96xf32> -> vector<16x96xf32>
    %675 = vector.broadcast %24 : vector<1x96xf32> to vector<16x96xf32>
    %676 = arith.addf %674, %675 : vector<16x96xf32>
    %677 = tpu.concatenate %673, %673 in 0 : vector<8x96xf32>, vector<8x96xf32> -> vector<16x96xf32>
    %678 = vector.extract_strided_slice %677 {offsets = [0, 0], sizes = [16, 32], strides = [1, 1]} : vector<16x96xf32> to vector<16x32xf32>
    %679 = vector.extract_strided_slice %676 {offsets = [0, 0], sizes = [16, 32], strides = [1, 1]} : vector<16x96xf32> to vector<16x32xf32>
    %680 = arith.addf %678, %679 : vector<16x32xf32>
    %681 = arith.negf %680 : vector<16x32xf32>
    %682 = math.exp %681 : vector<16x32xf32>
    %cst_221 = arith.constant 1.000000e+00 : f32
    %683 = vector.broadcast %cst_221 : f32 to vector<16x32xf32>
    %684 = arith.addf %683, %682 : vector<16x32xf32>
    %685 = arith.divf %683, %684 : vector<16x32xf32>
    %686 = vector.extract_strided_slice %677 {offsets = [0, 32], sizes = [16, 32], strides = [1, 1]} : vector<16x96xf32> to vector<16x32xf32>
    %687 = vector.extract_strided_slice %676 {offsets = [0, 32], sizes = [16, 32], strides = [1, 1]} : vector<16x96xf32> to vector<16x32xf32>
    %688 = arith.addf %686, %687 : vector<16x32xf32>
    %689 = arith.negf %688 : vector<16x32xf32>
    %690 = math.exp %689 : vector<16x32xf32>
    %cst_222 = arith.constant 1.000000e+00 : f32
    %691 = vector.broadcast %cst_222 : f32 to vector<16x32xf32>
    %692 = arith.addf %691, %690 : vector<16x32xf32>
    %693 = arith.divf %691, %692 : vector<16x32xf32>
    %694 = vector.extract_strided_slice %677 {offsets = [0, 64], sizes = [16, 32], strides = [1, 1]} : vector<16x96xf32> to vector<16x32xf32>
    %695 = vector.extract_strided_slice %676 {offsets = [0, 64], sizes = [16, 32], strides = [1, 1]} : vector<16x96xf32> to vector<16x32xf32>
    %696 = arith.mulf %685, %695 : vector<16x32xf32>
    %697 = arith.addf %694, %696 : vector<16x32xf32>
    %698 = math.tanh %697 : vector<16x32xf32>
    %cst_223 = arith.constant 1.000000e+00 : f32
    %699 = vector.broadcast %cst_223 : f32 to vector<16x32xf32>
    %700 = arith.subf %699, %693 : vector<16x32xf32>
    %701 = arith.mulf %700, %698 : vector<16x32xf32>
    %702 = arith.mulf %693, %534 : vector<16x32xf32>
    %703 = arith.addf %701, %702 : vector<16x32xf32>
    %704 = vector.extract_strided_slice %577 {offsets = [0, 0], sizes = [8, 1], strides = [1, 1]} : vector<8x2xf32> to vector<8x1xf32>
    %705 = vector.extract_strided_slice %577 {offsets = [0, 1], sizes = [8, 1], strides = [1, 1]} : vector<8x2xf32> to vector<8x1xf32>
    %706 = tpu.concatenate %704, %705 in 0 : vector<8x1xf32>, vector<8x1xf32> -> vector<16x1xf32>
    %cst_224 = arith.constant 1.000000e+00 : f32
    %707 = vector.broadcast %cst_224 : f32 to vector<16x1xf32>
    %708 = arith.subf %707, %706 : vector<16x1xf32>
    %709 = vector.broadcast %708 : vector<16x1xf32> to vector<16x32xf32>
    %710 = arith.mulf %534, %709 : vector<16x32xf32>
    %711 = vector.broadcast %706 : vector<16x1xf32> to vector<16x32xf32>
    %712 = arith.mulf %703, %711 : vector<16x32xf32>
    %713 = arith.addf %710, %712 : vector<16x32xf32>
    %cst_225 = arith.constant 0.000000e+00 : f32
    %714 = vector.broadcast %cst_225 : f32 to vector<8x32xf32>
    %715 = vector.extract_strided_slice %593 {offsets = [0, 0], sizes = [8, 1], strides = [1, 1]} : vector<8x2xf32> to vector<8x1xf32>
    %716 = vector.extract_strided_slice %713 {offsets = [0, 0], sizes = [8, 32], strides = [1, 1]} : vector<16x32xf32> to vector<8x32xf32>
    %717 = vector.broadcast %715 : vector<8x1xf32> to vector<8x32xf32>
    %718 = arith.mulf %717, %716 : vector<8x32xf32>
    %719 = arith.addf %714, %718 : vector<8x32xf32>
    %720 = vector.extract_strided_slice %593 {offsets = [0, 1], sizes = [8, 1], strides = [1, 1]} : vector<8x2xf32> to vector<8x1xf32>
    %721 = vector.extract_strided_slice %713 {offsets = [8, 0], sizes = [8, 32], strides = [1, 1]} : vector<16x32xf32> to vector<8x32xf32>
    %722 = vector.broadcast %720 : vector<8x1xf32> to vector<8x32xf32>
    %723 = arith.mulf %722, %721 : vector<8x32xf32>
    %724 = arith.addf %719, %723 : vector<8x32xf32>
    %cst_226 = arith.constant 1.000000e+00 : f32
    %725 = vector.broadcast %cst_226 : f32 to vector<8x1xf32>
    %726 = arith.subf %725, %580 : vector<8x1xf32>
    %cst_227 = arith.constant dense<0.000000e+00> : vector<8x32xf32>
    %727 = tpu.matmul %724, %25, %cst_227 {dimension_numbers = #tpu.dot_dimension_numbers<[1], [0], [0], [1], [0, 0, 1, 1], [], []>} : vector<8x32xf32>, vector<32x32xf32>, vector<8x32xf32> -> vector<8x32xf32>
    %728 = vector.broadcast %26 : vector<1x32xf32> to vector<8x32xf32>
    %729 = arith.addf %727, %728 : vector<8x32xf32>
    %730 = vector.broadcast %726 : vector<8x1xf32> to vector<8x32xf32>
    %731 = arith.mulf %730, %564 : vector<8x32xf32>
    %cst_228 = arith.constant dense<0.000000e+00> : vector<8x32xf32>
    %732 = tpu.matmul %731, %27, %cst_228 {dimension_numbers = #tpu.dot_dimension_numbers<[1], [0], [0], [1], [0, 0, 1, 1], [], []>} : vector<8x32xf32>, vector<32x32xf32>, vector<8x32xf32> -> vector<8x32xf32>
    %733 = arith.addf %729, %732 : vector<8x32xf32>
    %734 = vector.broadcast %28 : vector<1x32xf32> to vector<8x32xf32>
    %735 = arith.addf %733, %734 : vector<8x32xf32>
    %736 = math.tanh %735 : vector<8x32xf32>
    %737 = vector.broadcast %726 : vector<8x1xf32> to vector<8x32xf32>
    %738 = arith.mulf %737, %564 : vector<8x32xf32>
    %cst_229 = arith.constant 1.000000e+00 : f32
    %739 = vector.broadcast %cst_229 : f32 to vector<8x1xf32>
    %740 = arith.subf %739, %726 : vector<8x1xf32>
    %741 = vector.broadcast %740 : vector<8x1xf32> to vector<8x32xf32>
    %742 = arith.mulf %741, %736 : vector<8x32xf32>
    %743 = arith.addf %738, %742 : vector<8x32xf32>
    %744 = arith.index_cast %c3_i32 : i32 to index
    %c0_230 = arith.constant 0 : index
    %c0_231 = arith.constant 0 : index
    %745 = vector.load %arg20[%744, %c0_230, %c0_231] : memref<6x8x32xf32, #tpu.memory_space<vmem>>, vector<1x8x32xf32>
    %746 = vector.shape_cast %745 : vector<1x8x32xf32> to vector<8x32xf32>
    %747 = vector.shape_cast %743 : vector<8x32xf32> to vector<1x8x32xf32>
    tpu.vector_store %arg20[%744, %c0_230, %c0_231], %747 {strides = array<i32>} : memref<6x8x32xf32, #tpu.memory_space<vmem>>, vector<1x8x32xf32>,
    %c4_i32 = arith.constant 4 : i32
    %c8_i32_232 = arith.constant 8 : i32
    %748 = arith.muli %c4_i32, %c8_i32_232 : i32
    %749 = tpu.assume_multiple %748, 8 : i32
    %750 = arith.index_cast %749 : i32 to index
    %c0_233 = arith.constant 0 : index
    %751 = vector.load %arg24[%750, %c0_233] : memref<48x96xf32, #tpu.memory_space<vmem>>, vector<8x96xf32>
    %752 = arith.index_cast %749 : i32 to index
    %c0_234 = arith.constant 0 : index
    %753 = vector.load %arg25[%752, %c0_234] : memref<48x96xf32, #tpu.memory_space<vmem>>, vector<8x96xf32>
    %754 = arith.index_cast %c4_i32 : i32 to index
    %c0_235 = arith.constant 0 : index
    %c0_236 = arith.constant 0 : index
    %755 = vector.load %arg3[%754, %c0_235, %c0_236] : memref<6x8x2xf32, #tpu.memory_space<vmem>>, vector<1x8x2xf32>
    %756 = vector.shape_cast %755 : vector<1x8x2xf32> to vector<8x2xf32>
    %757 = arith.index_cast %c4_i32 : i32 to index
    %c0_237 = arith.constant 0 : index
    %c0_238 = arith.constant 0 : index
    %758 = vector.load %arg4[%757, %c0_237, %c0_238] : memref<6x8x1xf32, #tpu.memory_space<vmem>>, vector<1x8x1xf32>
    %759 = vector.shape_cast %758 : vector<1x8x1xf32> to vector<8x1xf32>
    %760 = tpu.iota {dimensions = array<i32: 1>} : vector<8x2xi32>
    %cst_239 = arith.constant dense<0xFF800000> : vector<8xf32>
    %761 = vector.multi_reduction <maximumf>, %756, %cst_239 [1] : vector<8x2xf32> to vector<8xf32>
    %762 = vector.shape_cast %761 : vector<8xf32> to vector<8x1xf32>
    %763 = vector.broadcast %762 : vector<8x1xf32> to vector<8x2xf32>
    %764 = arith.cmpf oge, %756, %763 : vector<8x2xf32>
    %c2_i32_240 = arith.constant 2 : i32
    %765 = vector.broadcast %c2_i32_240 : i32 to vector<8x2xi32>
    %766 = arith.select %764, %760, %765 : vector<8x2xi1>, vector<8x2xi32>
    %cst_241 = arith.constant dense<2147483647> : vector<8xi32>
    %767 = vector.multi_reduction <minsi>, %766, %cst_241 [1] : vector<8x2xi32> to vector<8xi32>
    %768 = vector.shape_cast %767 : vector<8xi32> to vector<8x1xi32>
    %769 = vector.broadcast %768 : vector<8x1xi32> to vector<8x2xi32>
    %770 = arith.cmpi eq, %760, %769 : vector<8x2xi32>
    %771 = arith.extui %770 : vector<8x2xi1> to vector<8x2xi32>
    %772 = arith.sitofp %771 : vector<8x2xi32> to vector<8x2xf32>
    %cst_242 = arith.constant 0.000000e+00 : f32
    %773 = vector.broadcast %cst_242 : f32 to vector<8x32xf32>
    %774 = vector.extract_strided_slice %772 {offsets = [0, 0], sizes = [8, 1], strides = [1, 1]} : vector<8x2xf32> to vector<8x1xf32>
    %775 = vector.extract_strided_slice %713 {offsets = [0, 0], sizes = [8, 32], strides = [1, 1]} : vector<16x32xf32> to vector<8x32xf32>
    %776 = vector.broadcast %774 : vector<8x1xf32> to vector<8x32xf32>
    %777 = arith.mulf %776, %775 : vector<8x32xf32>
    %778 = arith.addf %773, %777 : vector<8x32xf32>
    %779 = vector.extract_strided_slice %772 {offsets = [0, 1], sizes = [8, 1], strides = [1, 1]} : vector<8x2xf32> to vector<8x1xf32>
    %780 = vector.extract_strided_slice %713 {offsets = [8, 0], sizes = [8, 32], strides = [1, 1]} : vector<16x32xf32> to vector<8x32xf32>
    %781 = vector.broadcast %779 : vector<8x1xf32> to vector<8x32xf32>
    %782 = arith.mulf %781, %780 : vector<8x32xf32>
    %783 = arith.addf %778, %782 : vector<8x32xf32>
    %cst_243 = arith.constant dense<0.000000e+00> : vector<8x96xf32>
    %784 = tpu.matmul %783, %19, %cst_243 {dimension_numbers = #tpu.dot_dimension_numbers<[1], [0], [0], [1], [0, 0, 1, 1], [], []>} : vector<8x32xf32>, vector<32x96xf32>, vector<8x96xf32> -> vector<8x96xf32>
    %785 = arith.addf %751, %784 : vector<8x96xf32>
    %cst_244 = arith.constant dense<0.000000e+00> : vector<8x96xf32>
    %786 = tpu.matmul %635, %20, %cst_244 {dimension_numbers = #tpu.dot_dimension_numbers<[1], [0], [0], [1], [0, 0, 1, 1], [], []>} : vector<8x32xf32>, vector<32x96xf32>, vector<8x96xf32> -> vector<8x96xf32>
    %787 = vector.broadcast %21 : vector<1x96xf32> to vector<8x96xf32>
    %788 = arith.addf %786, %787 : vector<8x96xf32>
    %789 = vector.extract_strided_slice %785 {offsets = [0, 0], sizes = [8, 32], strides = [1, 1]} : vector<8x96xf32> to vector<8x32xf32>
    %790 = vector.extract_strided_slice %788 {offsets = [0, 0], sizes = [8, 32], strides = [1, 1]} : vector<8x96xf32> to vector<8x32xf32>
    %791 = arith.addf %789, %790 : vector<8x32xf32>
    %792 = arith.negf %791 : vector<8x32xf32>
    %793 = math.exp %792 : vector<8x32xf32>
    %cst_245 = arith.constant 1.000000e+00 : f32
    %794 = vector.broadcast %cst_245 : f32 to vector<8x32xf32>
    %795 = arith.addf %794, %793 : vector<8x32xf32>
    %796 = arith.divf %794, %795 : vector<8x32xf32>
    %797 = vector.extract_strided_slice %785 {offsets = [0, 32], sizes = [8, 32], strides = [1, 1]} : vector<8x96xf32> to vector<8x32xf32>
    %798 = vector.extract_strided_slice %788 {offsets = [0, 32], sizes = [8, 32], strides = [1, 1]} : vector<8x96xf32> to vector<8x32xf32>
    %799 = arith.addf %797, %798 : vector<8x32xf32>
    %800 = arith.negf %799 : vector<8x32xf32>
    %801 = math.exp %800 : vector<8x32xf32>
    %cst_246 = arith.constant 1.000000e+00 : f32
    %802 = vector.broadcast %cst_246 : f32 to vector<8x32xf32>
    %803 = arith.addf %802, %801 : vector<8x32xf32>
    %804 = arith.divf %802, %803 : vector<8x32xf32>
    %805 = vector.extract_strided_slice %785 {offsets = [0, 64], sizes = [8, 32], strides = [1, 1]} : vector<8x96xf32> to vector<8x32xf32>
    %806 = vector.extract_strided_slice %788 {offsets = [0, 64], sizes = [8, 32], strides = [1, 1]} : vector<8x96xf32> to vector<8x32xf32>
    %807 = arith.mulf %796, %806 : vector<8x32xf32>
    %808 = arith.addf %805, %807 : vector<8x32xf32>
    %809 = math.tanh %808 : vector<8x32xf32>
    %cst_247 = arith.constant 1.000000e+00 : f32
    %810 = vector.broadcast %cst_247 : f32 to vector<8x32xf32>
    %811 = arith.subf %810, %804 : vector<8x32xf32>
    %812 = arith.mulf %811, %809 : vector<8x32xf32>
    %813 = arith.mulf %804, %635 : vector<8x32xf32>
    %814 = arith.addf %812, %813 : vector<8x32xf32>
    %815 = arith.index_cast %c4_i32 : i32 to index
    %c0_248 = arith.constant 0 : index
    %c0_249 = arith.constant 0 : index
    %816 = vector.load %arg22[%815, %c0_248, %c0_249] : memref<6x8x32xf32, #tpu.memory_space<vmem>>, vector<1x8x32xf32>
    %817 = vector.shape_cast %816 : vector<1x8x32xf32> to vector<8x32xf32>
    %818 = vector.shape_cast %814 : vector<8x32xf32> to vector<1x8x32xf32>
    tpu.vector_store %arg22[%815, %c0_248, %c0_249], %818 {strides = array<i32>} : memref<6x8x32xf32, #tpu.memory_space<vmem>>, vector<1x8x32xf32>,
    %819 = vector.broadcast %18 : vector<1x32xf32> to vector<8x32xf32>
    %820 = arith.mulf %814, %819 : vector<8x32xf32>
    %cst_250 = arith.constant dense<0.000000e+00> : vector<8xf32>
    %821 = vector.multi_reduction <add>, %820, %cst_250 [1] : vector<8x32xf32> to vector<8xf32>
    %822 = vector.shape_cast %821 : vector<8xf32> to vector<8x1xf32>
    %823 = arith.index_cast %c4_i32 : i32 to index
    %c0_251 = arith.constant 0 : index
    %c0_252 = arith.constant 0 : index
    %824 = vector.load %arg23[%823, %c0_251, %c0_252] : memref<6x8x1xf32, #tpu.memory_space<vmem>>, vector<1x8x1xf32>
    %825 = vector.shape_cast %824 : vector<1x8x1xf32> to vector<8x1xf32>
    %826 = vector.shape_cast %822 : vector<8x1xf32> to vector<1x8x1xf32>
    tpu.vector_store %arg23[%823, %c0_251, %c0_252], %826 {strides = array<i32>} : memref<6x8x1xf32, #tpu.memory_space<vmem>>, vector<1x8x1xf32>,
    %c0_253 = arith.constant 0 : index
    %c0_254 = arith.constant 0 : index
    %c0_255 = arith.constant 0 : index
    %827 = vector.load %arg23[%c0_253, %c0_254, %c0_255] : memref<6x8x1xf32, #tpu.memory_space<vmem>>, vector<6x8x1xf32>
    %c0_256 = arith.constant 0 : index
    %c0_257 = arith.constant 0 : index
    %c0_258 = arith.constant 0 : index
    %828 = vector.load %arg22[%c0_256, %c0_257, %c0_258] : memref<6x8x32xf32, #tpu.memory_space<vmem>>, vector<6x8x32xf32>
    %829 = tpu.iota {dimensions = array<i32: 0>} : vector<6x8x1xi32>
    %830 = vector.broadcast %c4_i32 : i32 to vector<6x8x1xi32>
    %831 = arith.cmpi slt, %829, %830 : vector<6x8x1xi32>
    %cst_259 = arith.constant -1.000000e+30 : f32
    %832 = vector.broadcast %cst_259 : f32 to vector<6x8x1xf32>
    %833 = arith.select %831, %827, %832 : vector<6x8x1xi1>, vector<6x8x1xf32>
    %cst_260 = arith.constant dense<0xFF800000> : vector<8x1xf32>
    %834 = vector.multi_reduction <maximumf>, %833, %cst_260 [0] : vector<6x8x1xf32> to vector<8x1xf32>
    %835 = vector.shape_cast %834 : vector<8x1xf32> to vector<1x8x1xf32>
    %836 = vector.broadcast %835 : vector<1x8x1xf32> to vector<6x8x1xf32>
    %837 = arith.subf %833, %836 : vector<6x8x1xf32>
    %838 = math.exp %837 : vector<6x8x1xf32>
    %cst_261 = arith.constant 0.000000e+00 : f32
    %839 = vector.broadcast %cst_261 : f32 to vector<6x8x1xf32>
    %840 = arith.select %831, %838, %839 : vector<6x8x1xi1>, vector<6x8x1xf32>
    %cst_262 = arith.constant dense<0.000000e+00> : vector<8x1xf32>
    %841 = vector.multi_reduction <add>, %840, %cst_262 [0] : vector<6x8x1xf32> to vector<8x1xf32>
    %842 = vector.shape_cast %841 : vector<8x1xf32> to vector<1x8x1xf32>
    %cst_263 = arith.constant 1.000000e-30 : f32
    %843 = vector.broadcast %cst_263 : f32 to vector<1x8x1xf32>
    %844 = arith.maximumf %842, %843 : vector<1x8x1xf32>
    %845 = tpu.reciprocal %844 {approx = true} : vector<1x8x1xf32> -> vector<1x8x1xf32>
    %846 = vector.broadcast %845 : vector<1x8x1xf32> to vector<6x8x1xf32>
    %847 = arith.mulf %840, %846 : vector<6x8x1xf32>
    %848 = vector.broadcast %847 : vector<6x8x1xf32> to vector<6x8x32xf32>
    %849 = arith.mulf %848, %828 : vector<6x8x32xf32>
    %cst_264 = arith.constant dense<0.000000e+00> : vector<8x32xf32>
    %850 = vector.multi_reduction <add>, %849, %cst_264 [0] : vector<6x8x32xf32> to vector<8x32xf32>
    %cst_265 = arith.constant dense<0.000000e+00> : vector<8x96xf32>
    %851 = tpu.matmul %850, %22, %cst_265 {dimension_numbers = #tpu.dot_dimension_numbers<[1], [0], [0], [1], [0, 0, 1, 1], [], []>} : vector<8x32xf32>, vector<32x96xf32>, vector<8x96xf32> -> vector<8x96xf32>
    %852 = arith.addf %753, %851 : vector<8x96xf32>
    %cst_266 = arith.constant dense<0.000000e+00> : vector<16x96xf32>
    %853 = tpu.matmul %713, %23, %cst_266 {dimension_numbers = #tpu.dot_dimension_numbers<[1], [0], [0], [1], [0, 0, 1, 1], [], []>} : vector<16x32xf32>, vector<32x96xf32>, vector<16x96xf32> -> vector<16x96xf32>
    %854 = vector.broadcast %24 : vector<1x96xf32> to vector<16x96xf32>
    %855 = arith.addf %853, %854 : vector<16x96xf32>
    %856 = tpu.concatenate %852, %852 in 0 : vector<8x96xf32>, vector<8x96xf32> -> vector<16x96xf32>
    %857 = vector.extract_strided_slice %856 {offsets = [0, 0], sizes = [16, 32], strides = [1, 1]} : vector<16x96xf32> to vector<16x32xf32>
    %858 = vector.extract_strided_slice %855 {offsets = [0, 0], sizes = [16, 32], strides = [1, 1]} : vector<16x96xf32> to vector<16x32xf32>
    %859 = arith.addf %857, %858 : vector<16x32xf32>
    %860 = arith.negf %859 : vector<16x32xf32>
    %861 = math.exp %860 : vector<16x32xf32>
    %cst_267 = arith.constant 1.000000e+00 : f32
    %862 = vector.broadcast %cst_267 : f32 to vector<16x32xf32>
    %863 = arith.addf %862, %861 : vector<16x32xf32>
    %864 = arith.divf %862, %863 : vector<16x32xf32>
    %865 = vector.extract_strided_slice %856 {offsets = [0, 32], sizes = [16, 32], strides = [1, 1]} : vector<16x96xf32> to vector<16x32xf32>
    %866 = vector.extract_strided_slice %855 {offsets = [0, 32], sizes = [16, 32], strides = [1, 1]} : vector<16x96xf32> to vector<16x32xf32>
    %867 = arith.addf %865, %866 : vector<16x32xf32>
    %868 = arith.negf %867 : vector<16x32xf32>
    %869 = math.exp %868 : vector<16x32xf32>
    %cst_268 = arith.constant 1.000000e+00 : f32
    %870 = vector.broadcast %cst_268 : f32 to vector<16x32xf32>
    %871 = arith.addf %870, %869 : vector<16x32xf32>
    %872 = arith.divf %870, %871 : vector<16x32xf32>
    %873 = vector.extract_strided_slice %856 {offsets = [0, 64], sizes = [16, 32], strides = [1, 1]} : vector<16x96xf32> to vector<16x32xf32>
    %874 = vector.extract_strided_slice %855 {offsets = [0, 64], sizes = [16, 32], strides = [1, 1]} : vector<16x96xf32> to vector<16x32xf32>
    %875 = arith.mulf %864, %874 : vector<16x32xf32>
    %876 = arith.addf %873, %875 : vector<16x32xf32>
    %877 = math.tanh %876 : vector<16x32xf32>
    %cst_269 = arith.constant 1.000000e+00 : f32
    %878 = vector.broadcast %cst_269 : f32 to vector<16x32xf32>
    %879 = arith.subf %878, %872 : vector<16x32xf32>
    %880 = arith.mulf %879, %877 : vector<16x32xf32>
    %881 = arith.mulf %872, %713 : vector<16x32xf32>
    %882 = arith.addf %880, %881 : vector<16x32xf32>
    %883 = vector.extract_strided_slice %756 {offsets = [0, 0], sizes = [8, 1], strides = [1, 1]} : vector<8x2xf32> to vector<8x1xf32>
    %884 = vector.extract_strided_slice %756 {offsets = [0, 1], sizes = [8, 1], strides = [1, 1]} : vector<8x2xf32> to vector<8x1xf32>
    %885 = tpu.concatenate %883, %884 in 0 : vector<8x1xf32>, vector<8x1xf32> -> vector<16x1xf32>
    %cst_270 = arith.constant 1.000000e+00 : f32
    %886 = vector.broadcast %cst_270 : f32 to vector<16x1xf32>
    %887 = arith.subf %886, %885 : vector<16x1xf32>
    %888 = vector.broadcast %887 : vector<16x1xf32> to vector<16x32xf32>
    %889 = arith.mulf %713, %888 : vector<16x32xf32>
    %890 = vector.broadcast %885 : vector<16x1xf32> to vector<16x32xf32>
    %891 = arith.mulf %882, %890 : vector<16x32xf32>
    %892 = arith.addf %889, %891 : vector<16x32xf32>
    %cst_271 = arith.constant 0.000000e+00 : f32
    %893 = vector.broadcast %cst_271 : f32 to vector<8x32xf32>
    %894 = vector.extract_strided_slice %772 {offsets = [0, 0], sizes = [8, 1], strides = [1, 1]} : vector<8x2xf32> to vector<8x1xf32>
    %895 = vector.extract_strided_slice %892 {offsets = [0, 0], sizes = [8, 32], strides = [1, 1]} : vector<16x32xf32> to vector<8x32xf32>
    %896 = vector.broadcast %894 : vector<8x1xf32> to vector<8x32xf32>
    %897 = arith.mulf %896, %895 : vector<8x32xf32>
    %898 = arith.addf %893, %897 : vector<8x32xf32>
    %899 = vector.extract_strided_slice %772 {offsets = [0, 1], sizes = [8, 1], strides = [1, 1]} : vector<8x2xf32> to vector<8x1xf32>
    %900 = vector.extract_strided_slice %892 {offsets = [8, 0], sizes = [8, 32], strides = [1, 1]} : vector<16x32xf32> to vector<8x32xf32>
    %901 = vector.broadcast %899 : vector<8x1xf32> to vector<8x32xf32>
    %902 = arith.mulf %901, %900 : vector<8x32xf32>
    %903 = arith.addf %898, %902 : vector<8x32xf32>
    %cst_272 = arith.constant 1.000000e+00 : f32
    %904 = vector.broadcast %cst_272 : f32 to vector<8x1xf32>
    %905 = arith.subf %904, %759 : vector<8x1xf32>
    %cst_273 = arith.constant dense<0.000000e+00> : vector<8x32xf32>
    %906 = tpu.matmul %903, %25, %cst_273 {dimension_numbers = #tpu.dot_dimension_numbers<[1], [0], [0], [1], [0, 0, 1, 1], [], []>} : vector<8x32xf32>, vector<32x32xf32>, vector<8x32xf32> -> vector<8x32xf32>
    %907 = vector.broadcast %26 : vector<1x32xf32> to vector<8x32xf32>
    %908 = arith.addf %906, %907 : vector<8x32xf32>
    %909 = vector.broadcast %905 : vector<8x1xf32> to vector<8x32xf32>
    %910 = arith.mulf %909, %743 : vector<8x32xf32>
    %cst_274 = arith.constant dense<0.000000e+00> : vector<8x32xf32>
    %911 = tpu.matmul %910, %27, %cst_274 {dimension_numbers = #tpu.dot_dimension_numbers<[1], [0], [0], [1], [0, 0, 1, 1], [], []>} : vector<8x32xf32>, vector<32x32xf32>, vector<8x32xf32> -> vector<8x32xf32>
    %912 = arith.addf %908, %911 : vector<8x32xf32>
    %913 = vector.broadcast %28 : vector<1x32xf32> to vector<8x32xf32>
    %914 = arith.addf %912, %913 : vector<8x32xf32>
    %915 = math.tanh %914 : vector<8x32xf32>
    %916 = vector.broadcast %905 : vector<8x1xf32> to vector<8x32xf32>
    %917 = arith.mulf %916, %743 : vector<8x32xf32>
    %cst_275 = arith.constant 1.000000e+00 : f32
    %918 = vector.broadcast %cst_275 : f32 to vector<8x1xf32>
    %919 = arith.subf %918, %905 : vector<8x1xf32>
    %920 = vector.broadcast %919 : vector<8x1xf32> to vector<8x32xf32>
    %921 = arith.mulf %920, %915 : vector<8x32xf32>
    %922 = arith.addf %917, %921 : vector<8x32xf32>
    %923 = arith.index_cast %c4_i32 : i32 to index
    %c0_276 = arith.constant 0 : index
    %c0_277 = arith.constant 0 : index
    %924 = vector.load %arg20[%923, %c0_276, %c0_277] : memref<6x8x32xf32, #tpu.memory_space<vmem>>, vector<1x8x32xf32>
    %925 = vector.shape_cast %924 : vector<1x8x32xf32> to vector<8x32xf32>
    %926 = vector.shape_cast %922 : vector<8x32xf32> to vector<1x8x32xf32>
    tpu.vector_store %arg20[%923, %c0_276, %c0_277], %926 {strides = array<i32>} : memref<6x8x32xf32, #tpu.memory_space<vmem>>, vector<1x8x32xf32>,
    %c5_i32 = arith.constant 5 : i32
    %c8_i32_278 = arith.constant 8 : i32
    %927 = arith.muli %c5_i32, %c8_i32_278 : i32
    %928 = tpu.assume_multiple %927, 8 : i32
    %929 = arith.index_cast %928 : i32 to index
    %c0_279 = arith.constant 0 : index
    %930 = vector.load %arg24[%929, %c0_279] : memref<48x96xf32, #tpu.memory_space<vmem>>, vector<8x96xf32>
    %931 = arith.index_cast %928 : i32 to index
    %c0_280 = arith.constant 0 : index
    %932 = vector.load %arg25[%931, %c0_280] : memref<48x96xf32, #tpu.memory_space<vmem>>, vector<8x96xf32>
    %933 = arith.index_cast %c5_i32 : i32 to index
    %c0_281 = arith.constant 0 : index
    %c0_282 = arith.constant 0 : index
    %934 = vector.load %arg3[%933, %c0_281, %c0_282] : memref<6x8x2xf32, #tpu.memory_space<vmem>>, vector<1x8x2xf32>
    %935 = vector.shape_cast %934 : vector<1x8x2xf32> to vector<8x2xf32>
    %936 = arith.index_cast %c5_i32 : i32 to index
    %c0_283 = arith.constant 0 : index
    %c0_284 = arith.constant 0 : index
    %937 = vector.load %arg4[%936, %c0_283, %c0_284] : memref<6x8x1xf32, #tpu.memory_space<vmem>>, vector<1x8x1xf32>
    %938 = vector.shape_cast %937 : vector<1x8x1xf32> to vector<8x1xf32>
    %939 = tpu.iota {dimensions = array<i32: 1>} : vector<8x2xi32>
    %cst_285 = arith.constant dense<0xFF800000> : vector<8xf32>
    %940 = vector.multi_reduction <maximumf>, %935, %cst_285 [1] : vector<8x2xf32> to vector<8xf32>
    %941 = vector.shape_cast %940 : vector<8xf32> to vector<8x1xf32>
    %942 = vector.broadcast %941 : vector<8x1xf32> to vector<8x2xf32>
    %943 = arith.cmpf oge, %935, %942 : vector<8x2xf32>
    %c2_i32_286 = arith.constant 2 : i32
    %944 = vector.broadcast %c2_i32_286 : i32 to vector<8x2xi32>
    %945 = arith.select %943, %939, %944 : vector<8x2xi1>, vector<8x2xi32>
    %cst_287 = arith.constant dense<2147483647> : vector<8xi32>
    %946 = vector.multi_reduction <minsi>, %945, %cst_287 [1] : vector<8x2xi32> to vector<8xi32>
    %947 = vector.shape_cast %946 : vector<8xi32> to vector<8x1xi32>
    %948 = vector.broadcast %947 : vector<8x1xi32> to vector<8x2xi32>
    %949 = arith.cmpi eq, %939, %948 : vector<8x2xi32>
    %950 = arith.extui %949 : vector<8x2xi1> to vector<8x2xi32>
    %951 = arith.sitofp %950 : vector<8x2xi32> to vector<8x2xf32>
    %cst_288 = arith.constant 0.000000e+00 : f32
    %952 = vector.broadcast %cst_288 : f32 to vector<8x32xf32>
    %953 = vector.extract_strided_slice %951 {offsets = [0, 0], sizes = [8, 1], strides = [1, 1]} : vector<8x2xf32> to vector<8x1xf32>
    %954 = vector.extract_strided_slice %892 {offsets = [0, 0], sizes = [8, 32], strides = [1, 1]} : vector<16x32xf32> to vector<8x32xf32>
    %955 = vector.broadcast %953 : vector<8x1xf32> to vector<8x32xf32>
    %956 = arith.mulf %955, %954 : vector<8x32xf32>
    %957 = arith.addf %952, %956 : vector<8x32xf32>
    %958 = vector.extract_strided_slice %951 {offsets = [0, 1], sizes = [8, 1], strides = [1, 1]} : vector<8x2xf32> to vector<8x1xf32>
    %959 = vector.extract_strided_slice %892 {offsets = [8, 0], sizes = [8, 32], strides = [1, 1]} : vector<16x32xf32> to vector<8x32xf32>
    %960 = vector.broadcast %958 : vector<8x1xf32> to vector<8x32xf32>
    %961 = arith.mulf %960, %959 : vector<8x32xf32>
    %962 = arith.addf %957, %961 : vector<8x32xf32>
    %cst_289 = arith.constant dense<0.000000e+00> : vector<8x96xf32>
    %963 = tpu.matmul %962, %19, %cst_289 {dimension_numbers = #tpu.dot_dimension_numbers<[1], [0], [0], [1], [0, 0, 1, 1], [], []>} : vector<8x32xf32>, vector<32x96xf32>, vector<8x96xf32> -> vector<8x96xf32>
    %964 = arith.addf %930, %963 : vector<8x96xf32>
    %cst_290 = arith.constant dense<0.000000e+00> : vector<8x96xf32>
    %965 = tpu.matmul %814, %20, %cst_290 {dimension_numbers = #tpu.dot_dimension_numbers<[1], [0], [0], [1], [0, 0, 1, 1], [], []>} : vector<8x32xf32>, vector<32x96xf32>, vector<8x96xf32> -> vector<8x96xf32>
    %966 = vector.broadcast %21 : vector<1x96xf32> to vector<8x96xf32>
    %967 = arith.addf %965, %966 : vector<8x96xf32>
    %968 = vector.extract_strided_slice %964 {offsets = [0, 0], sizes = [8, 32], strides = [1, 1]} : vector<8x96xf32> to vector<8x32xf32>
    %969 = vector.extract_strided_slice %967 {offsets = [0, 0], sizes = [8, 32], strides = [1, 1]} : vector<8x96xf32> to vector<8x32xf32>
    %970 = arith.addf %968, %969 : vector<8x32xf32>
    %971 = arith.negf %970 : vector<8x32xf32>
    %972 = math.exp %971 : vector<8x32xf32>
    %cst_291 = arith.constant 1.000000e+00 : f32
    %973 = vector.broadcast %cst_291 : f32 to vector<8x32xf32>
    %974 = arith.addf %973, %972 : vector<8x32xf32>
    %975 = arith.divf %973, %974 : vector<8x32xf32>
    %976 = vector.extract_strided_slice %964 {offsets = [0, 32], sizes = [8, 32], strides = [1, 1]} : vector<8x96xf32> to vector<8x32xf32>
    %977 = vector.extract_strided_slice %967 {offsets = [0, 32], sizes = [8, 32], strides = [1, 1]} : vector<8x96xf32> to vector<8x32xf32>
    %978 = arith.addf %976, %977 : vector<8x32xf32>
    %979 = arith.negf %978 : vector<8x32xf32>
    %980 = math.exp %979 : vector<8x32xf32>
    %cst_292 = arith.constant 1.000000e+00 : f32
    %981 = vector.broadcast %cst_292 : f32 to vector<8x32xf32>
    %982 = arith.addf %981, %980 : vector<8x32xf32>
    %983 = arith.divf %981, %982 : vector<8x32xf32>
    %984 = vector.extract_strided_slice %964 {offsets = [0, 64], sizes = [8, 32], strides = [1, 1]} : vector<8x96xf32> to vector<8x32xf32>
    %985 = vector.extract_strided_slice %967 {offsets = [0, 64], sizes = [8, 32], strides = [1, 1]} : vector<8x96xf32> to vector<8x32xf32>
    %986 = arith.mulf %975, %985 : vector<8x32xf32>
    %987 = arith.addf %984, %986 : vector<8x32xf32>
    %988 = math.tanh %987 : vector<8x32xf32>
    %cst_293 = arith.constant 1.000000e+00 : f32
    %989 = vector.broadcast %cst_293 : f32 to vector<8x32xf32>
    %990 = arith.subf %989, %983 : vector<8x32xf32>
    %991 = arith.mulf %990, %988 : vector<8x32xf32>
    %992 = arith.mulf %983, %814 : vector<8x32xf32>
    %993 = arith.addf %991, %992 : vector<8x32xf32>
    %994 = arith.index_cast %c5_i32 : i32 to index
    %c0_294 = arith.constant 0 : index
    %c0_295 = arith.constant 0 : index
    %995 = vector.load %arg22[%994, %c0_294, %c0_295] : memref<6x8x32xf32, #tpu.memory_space<vmem>>, vector<1x8x32xf32>
    %996 = vector.shape_cast %995 : vector<1x8x32xf32> to vector<8x32xf32>
    %997 = vector.shape_cast %993 : vector<8x32xf32> to vector<1x8x32xf32>
    tpu.vector_store %arg22[%994, %c0_294, %c0_295], %997 {strides = array<i32>} : memref<6x8x32xf32, #tpu.memory_space<vmem>>, vector<1x8x32xf32>,
    %998 = vector.broadcast %18 : vector<1x32xf32> to vector<8x32xf32>
    %999 = arith.mulf %993, %998 : vector<8x32xf32>
    %cst_296 = arith.constant dense<0.000000e+00> : vector<8xf32>
    %1000 = vector.multi_reduction <add>, %999, %cst_296 [1] : vector<8x32xf32> to vector<8xf32>
    %1001 = vector.shape_cast %1000 : vector<8xf32> to vector<8x1xf32>
    %1002 = arith.index_cast %c5_i32 : i32 to index
    %c0_297 = arith.constant 0 : index
    %c0_298 = arith.constant 0 : index
    %1003 = vector.load %arg23[%1002, %c0_297, %c0_298] : memref<6x8x1xf32, #tpu.memory_space<vmem>>, vector<1x8x1xf32>
    %1004 = vector.shape_cast %1003 : vector<1x8x1xf32> to vector<8x1xf32>
    %1005 = vector.shape_cast %1001 : vector<8x1xf32> to vector<1x8x1xf32>
    tpu.vector_store %arg23[%1002, %c0_297, %c0_298], %1005 {strides = array<i32>} : memref<6x8x1xf32, #tpu.memory_space<vmem>>, vector<1x8x1xf32>,
    %c0_299 = arith.constant 0 : index
    %c0_300 = arith.constant 0 : index
    %c0_301 = arith.constant 0 : index
    %1006 = vector.load %arg23[%c0_299, %c0_300, %c0_301] : memref<6x8x1xf32, #tpu.memory_space<vmem>>, vector<6x8x1xf32>
    %c0_302 = arith.constant 0 : index
    %c0_303 = arith.constant 0 : index
    %c0_304 = arith.constant 0 : index
    %1007 = vector.load %arg22[%c0_302, %c0_303, %c0_304] : memref<6x8x32xf32, #tpu.memory_space<vmem>>, vector<6x8x32xf32>
    %1008 = tpu.iota {dimensions = array<i32: 0>} : vector<6x8x1xi32>
    %1009 = vector.broadcast %c5_i32 : i32 to vector<6x8x1xi32>
    %1010 = arith.cmpi slt, %1008, %1009 : vector<6x8x1xi32>
    %cst_305 = arith.constant -1.000000e+30 : f32
    %1011 = vector.broadcast %cst_305 : f32 to vector<6x8x1xf32>
    %1012 = arith.select %1010, %1006, %1011 : vector<6x8x1xi1>, vector<6x8x1xf32>
    %cst_306 = arith.constant dense<0xFF800000> : vector<8x1xf32>
    %1013 = vector.multi_reduction <maximumf>, %1012, %cst_306 [0] : vector<6x8x1xf32> to vector<8x1xf32>
    %1014 = vector.shape_cast %1013 : vector<8x1xf32> to vector<1x8x1xf32>
    %1015 = vector.broadcast %1014 : vector<1x8x1xf32> to vector<6x8x1xf32>
    %1016 = arith.subf %1012, %1015 : vector<6x8x1xf32>
    %1017 = math.exp %1016 : vector<6x8x1xf32>
    %cst_307 = arith.constant 0.000000e+00 : f32
    %1018 = vector.broadcast %cst_307 : f32 to vector<6x8x1xf32>
    %1019 = arith.select %1010, %1017, %1018 : vector<6x8x1xi1>, vector<6x8x1xf32>
    %cst_308 = arith.constant dense<0.000000e+00> : vector<8x1xf32>
    %1020 = vector.multi_reduction <add>, %1019, %cst_308 [0] : vector<6x8x1xf32> to vector<8x1xf32>
    %1021 = vector.shape_cast %1020 : vector<8x1xf32> to vector<1x8x1xf32>
    %cst_309 = arith.constant 1.000000e-30 : f32
    %1022 = vector.broadcast %cst_309 : f32 to vector<1x8x1xf32>
    %1023 = arith.maximumf %1021, %1022 : vector<1x8x1xf32>
    %1024 = tpu.reciprocal %1023 {approx = true} : vector<1x8x1xf32> -> vector<1x8x1xf32>
    %1025 = vector.broadcast %1024 : vector<1x8x1xf32> to vector<6x8x1xf32>
    %1026 = arith.mulf %1019, %1025 : vector<6x8x1xf32>
    %1027 = vector.broadcast %1026 : vector<6x8x1xf32> to vector<6x8x32xf32>
    %1028 = arith.mulf %1027, %1007 : vector<6x8x32xf32>
    %cst_310 = arith.constant dense<0.000000e+00> : vector<8x32xf32>
    %1029 = vector.multi_reduction <add>, %1028, %cst_310 [0] : vector<6x8x32xf32> to vector<8x32xf32>
    %cst_311 = arith.constant dense<0.000000e+00> : vector<8x96xf32>
    %1030 = tpu.matmul %1029, %22, %cst_311 {dimension_numbers = #tpu.dot_dimension_numbers<[1], [0], [0], [1], [0, 0, 1, 1], [], []>} : vector<8x32xf32>, vector<32x96xf32>, vector<8x96xf32> -> vector<8x96xf32>
    %1031 = arith.addf %932, %1030 : vector<8x96xf32>
    %cst_312 = arith.constant dense<0.000000e+00> : vector<16x96xf32>
    %1032 = tpu.matmul %892, %23, %cst_312 {dimension_numbers = #tpu.dot_dimension_numbers<[1], [0], [0], [1], [0, 0, 1, 1], [], []>} : vector<16x32xf32>, vector<32x96xf32>, vector<16x96xf32> -> vector<16x96xf32>
    %1033 = vector.broadcast %24 : vector<1x96xf32> to vector<16x96xf32>
    %1034 = arith.addf %1032, %1033 : vector<16x96xf32>
    %1035 = tpu.concatenate %1031, %1031 in 0 : vector<8x96xf32>, vector<8x96xf32> -> vector<16x96xf32>
    %1036 = vector.extract_strided_slice %1035 {offsets = [0, 0], sizes = [16, 32], strides = [1, 1]} : vector<16x96xf32> to vector<16x32xf32>
    %1037 = vector.extract_strided_slice %1034 {offsets = [0, 0], sizes = [16, 32], strides = [1, 1]} : vector<16x96xf32> to vector<16x32xf32>
    %1038 = arith.addf %1036, %1037 : vector<16x32xf32>
    %1039 = arith.negf %1038 : vector<16x32xf32>
    %1040 = math.exp %1039 : vector<16x32xf32>
    %cst_313 = arith.constant 1.000000e+00 : f32
    %1041 = vector.broadcast %cst_313 : f32 to vector<16x32xf32>
    %1042 = arith.addf %1041, %1040 : vector<16x32xf32>
    %1043 = arith.divf %1041, %1042 : vector<16x32xf32>
    %1044 = vector.extract_strided_slice %1035 {offsets = [0, 32], sizes = [16, 32], strides = [1, 1]} : vector<16x96xf32> to vector<16x32xf32>
    %1045 = vector.extract_strided_slice %1034 {offsets = [0, 32], sizes = [16, 32], strides = [1, 1]} : vector<16x96xf32> to vector<16x32xf32>
    %1046 = arith.addf %1044, %1045 : vector<16x32xf32>
    %1047 = arith.negf %1046 : vector<16x32xf32>
    %1048 = math.exp %1047 : vector<16x32xf32>
    %cst_314 = arith.constant 1.000000e+00 : f32
    %1049 = vector.broadcast %cst_314 : f32 to vector<16x32xf32>
    %1050 = arith.addf %1049, %1048 : vector<16x32xf32>
    %1051 = arith.divf %1049, %1050 : vector<16x32xf32>
    %1052 = vector.extract_strided_slice %1035 {offsets = [0, 64], sizes = [16, 32], strides = [1, 1]} : vector<16x96xf32> to vector<16x32xf32>
    %1053 = vector.extract_strided_slice %1034 {offsets = [0, 64], sizes = [16, 32], strides = [1, 1]} : vector<16x96xf32> to vector<16x32xf32>
    %1054 = arith.mulf %1043, %1053 : vector<16x32xf32>
    %1055 = arith.addf %1052, %1054 : vector<16x32xf32>
    %1056 = math.tanh %1055 : vector<16x32xf32>
    %cst_315 = arith.constant 1.000000e+00 : f32
    %1057 = vector.broadcast %cst_315 : f32 to vector<16x32xf32>
    %1058 = arith.subf %1057, %1051 : vector<16x32xf32>
    %1059 = arith.mulf %1058, %1056 : vector<16x32xf32>
    %1060 = arith.mulf %1051, %892 : vector<16x32xf32>
    %1061 = arith.addf %1059, %1060 : vector<16x32xf32>
    %1062 = vector.extract_strided_slice %935 {offsets = [0, 0], sizes = [8, 1], strides = [1, 1]} : vector<8x2xf32> to vector<8x1xf32>
    %1063 = vector.extract_strided_slice %935 {offsets = [0, 1], sizes = [8, 1], strides = [1, 1]} : vector<8x2xf32> to vector<8x1xf32>
    %1064 = tpu.concatenate %1062, %1063 in 0 : vector<8x1xf32>, vector<8x1xf32> -> vector<16x1xf32>
    %cst_316 = arith.constant 1.000000e+00 : f32
    %1065 = vector.broadcast %cst_316 : f32 to vector<16x1xf32>
    %1066 = arith.subf %1065, %1064 : vector<16x1xf32>
    %1067 = vector.broadcast %1066 : vector<16x1xf32> to vector<16x32xf32>
    %1068 = arith.mulf %892, %1067 : vector<16x32xf32>
    %1069 = vector.broadcast %1064 : vector<16x1xf32> to vector<16x32xf32>
    %1070 = arith.mulf %1061, %1069 : vector<16x32xf32>
    %1071 = arith.addf %1068, %1070 : vector<16x32xf32>
    %cst_317 = arith.constant 0.000000e+00 : f32
    %1072 = vector.broadcast %cst_317 : f32 to vector<8x32xf32>
    %1073 = vector.extract_strided_slice %951 {offsets = [0, 0], sizes = [8, 1], strides = [1, 1]} : vector<8x2xf32> to vector<8x1xf32>
    %1074 = vector.extract_strided_slice %1071 {offsets = [0, 0], sizes = [8, 32], strides = [1, 1]} : vector<16x32xf32> to vector<8x32xf32>
    %1075 = vector.broadcast %1073 : vector<8x1xf32> to vector<8x32xf32>
    %1076 = arith.mulf %1075, %1074 : vector<8x32xf32>
    %1077 = arith.addf %1072, %1076 : vector<8x32xf32>
    %1078 = vector.extract_strided_slice %951 {offsets = [0, 1], sizes = [8, 1], strides = [1, 1]} : vector<8x2xf32> to vector<8x1xf32>
    %1079 = vector.extract_strided_slice %1071 {offsets = [8, 0], sizes = [8, 32], strides = [1, 1]} : vector<16x32xf32> to vector<8x32xf32>
    %1080 = vector.broadcast %1078 : vector<8x1xf32> to vector<8x32xf32>
    %1081 = arith.mulf %1080, %1079 : vector<8x32xf32>
    %1082 = arith.addf %1077, %1081 : vector<8x32xf32>
    %cst_318 = arith.constant 1.000000e+00 : f32
    %1083 = vector.broadcast %cst_318 : f32 to vector<8x1xf32>
    %1084 = arith.subf %1083, %938 : vector<8x1xf32>
    %cst_319 = arith.constant dense<0.000000e+00> : vector<8x32xf32>
    %1085 = tpu.matmul %1082, %25, %cst_319 {dimension_numbers = #tpu.dot_dimension_numbers<[1], [0], [0], [1], [0, 0, 1, 1], [], []>} : vector<8x32xf32>, vector<32x32xf32>, vector<8x32xf32> -> vector<8x32xf32>
    %1086 = vector.broadcast %26 : vector<1x32xf32> to vector<8x32xf32>
    %1087 = arith.addf %1085, %1086 : vector<8x32xf32>
    %1088 = vector.broadcast %1084 : vector<8x1xf32> to vector<8x32xf32>
    %1089 = arith.mulf %1088, %922 : vector<8x32xf32>
    %cst_320 = arith.constant dense<0.000000e+00> : vector<8x32xf32>
    %1090 = tpu.matmul %1089, %27, %cst_320 {dimension_numbers = #tpu.dot_dimension_numbers<[1], [0], [0], [1], [0, 0, 1, 1], [], []>} : vector<8x32xf32>, vector<32x32xf32>, vector<8x32xf32> -> vector<8x32xf32>
    %1091 = arith.addf %1087, %1090 : vector<8x32xf32>
    %1092 = vector.broadcast %28 : vector<1x32xf32> to vector<8x32xf32>
    %1093 = arith.addf %1091, %1092 : vector<8x32xf32>
    %1094 = math.tanh %1093 : vector<8x32xf32>
    %1095 = vector.broadcast %1084 : vector<8x1xf32> to vector<8x32xf32>
    %1096 = arith.mulf %1095, %922 : vector<8x32xf32>
    %cst_321 = arith.constant 1.000000e+00 : f32
    %1097 = vector.broadcast %cst_321 : f32 to vector<8x1xf32>
    %1098 = arith.subf %1097, %1084 : vector<8x1xf32>
    %1099 = vector.broadcast %1098 : vector<8x1xf32> to vector<8x32xf32>
    %1100 = arith.mulf %1099, %1094 : vector<8x32xf32>
    %1101 = arith.addf %1096, %1100 : vector<8x32xf32>
    %1102 = arith.index_cast %c5_i32 : i32 to index
    %c0_322 = arith.constant 0 : index
    %c0_323 = arith.constant 0 : index
    %1103 = vector.load %arg20[%1102, %c0_322, %c0_323] : memref<6x8x32xf32, #tpu.memory_space<vmem>>, vector<1x8x32xf32>
    %1104 = vector.shape_cast %1103 : vector<1x8x32xf32> to vector<8x32xf32>
    %1105 = vector.shape_cast %1101 : vector<8x32xf32> to vector<1x8x32xf32>
    tpu.vector_store %arg20[%1102, %c0_322, %c0_323], %1105 {strides = array<i32>} : memref<6x8x32xf32, #tpu.memory_space<vmem>>, vector<1x8x32xf32>,
    %c6_i32 = arith.constant 6 : i32
    %c0_324 = arith.constant 0 : index
    %c0_325 = arith.constant 0 : index
    %c0_326 = arith.constant 0 : index
    %1106 = vector.load %arg22[%c0_324, %c0_325, %c0_326] : memref<6x8x32xf32, #tpu.memory_space<vmem>>, vector<6x8x32xf32>
    %1107 = vector.shape_cast %18 : vector<1x32xf32> to vector<1x1x32xf32>
    %1108 = vector.broadcast %1107 : vector<1x1x32xf32> to vector<6x8x32xf32>
    %1109 = arith.mulf %1106, %1108 : vector<6x8x32xf32>
    %cst_327 = arith.constant dense<0.000000e+00> : vector<6x8xf32>
    %1110 = vector.multi_reduction <add>, %1109, %cst_327 [2] : vector<6x8x32xf32> to vector<6x8xf32>
    %1111 = vector.shape_cast %1110 : vector<6x8xf32> to vector<1x6x8xf32>
    %1112 = vector.shape_cast %1111 : vector<1x6x8xf32> to vector<1x6x8xf32>
    %1113 = vector.broadcast %1112 : vector<1x6x8xf32> to vector<6x6x8xf32>
    %1114 = tpu.iota {dimensions = array<i32: 0>} : vector<6x6x8xi32>
    %1115 = tpu.iota {dimensions = array<i32: 1>} : vector<6x6x8xi32>
    %1116 = arith.cmpi slt, %1115, %1114 : vector<6x6x8xi32>
    %cst_328 = arith.constant -1.000000e+30 : f32
    %1117 = vector.broadcast %cst_328 : f32 to vector<6x6x8xf32>
    %1118 = arith.select %1116, %1113, %1117 : vector<6x6x8xi1>, vector<6x6x8xf32>
    %cst_329 = arith.constant dense<0xFF800000> : vector<6x8xf32>
    %1119 = vector.multi_reduction <maximumf>, %1118, %cst_329 [1] : vector<6x6x8xf32> to vector<6x8xf32>
    %1120 = vector.shape_cast %1119 : vector<6x8xf32> to vector<6x1x8xf32>
    %1121 = vector.broadcast %1120 : vector<6x1x8xf32> to vector<6x6x8xf32>
    %1122 = arith.subf %1118, %1121 : vector<6x6x8xf32>
    %1123 = math.exp %1122 : vector<6x6x8xf32>
    %cst_330 = arith.constant 0.000000e+00 : f32
    %1124 = vector.broadcast %cst_330 : f32 to vector<6x6x8xf32>
    %1125 = arith.select %1116, %1123, %1124 : vector<6x6x8xi1>, vector<6x6x8xf32>
    %cst_331 = arith.constant dense<0.000000e+00> : vector<6x8xf32>
    %1126 = vector.multi_reduction <add>, %1125, %cst_331 [1] : vector<6x6x8xf32> to vector<6x8xf32>
    %1127 = vector.shape_cast %1126 : vector<6x8xf32> to vector<6x1x8xf32>
    %cst_332 = arith.constant 1.000000e-30 : f32
    %1128 = vector.broadcast %cst_332 : f32 to vector<6x1x8xf32>
    %1129 = arith.maximumf %1127, %1128 : vector<6x1x8xf32>
    %1130 = tpu.reciprocal %1129 {approx = true} : vector<6x1x8xf32> -> vector<6x1x8xf32>
    %1131 = vector.broadcast %1130 : vector<6x1x8xf32> to vector<6x6x8xf32>
    %1132 = arith.mulf %1125, %1131 : vector<6x6x8xf32>
    %c0_333 = arith.constant 0 : index
    %c0_334 = arith.constant 0 : index
    %c0_335 = arith.constant 0 : index
    %1133 = vector.load %arg21[%c0_333, %c0_334, %c0_335] : memref<6x6x8xf32, #tpu.memory_space<vmem>>, vector<6x6x8xf32>
    tpu.vector_store %arg21[%c0_333, %c0_334, %c0_335], %1132 {strides = array<i32>} : memref<6x6x8xf32, #tpu.memory_space<vmem>>, vector<6x6x8xf32>,
    return
  }
  func.func @transform_0(%arg0: i32) -> (i32, i32) {
    %c0_i32 = arith.constant 0 : i32
    %c0_i32_0 = arith.constant 0 : i32
    %c0_i32_1 = arith.constant 0 : i32
    return %c0_i32, %c0_i32_0 : i32, i32
  }
  func.func @transform_1(%arg0: i32) -> (i32, i32) {
    %c0_i32 = arith.constant 0 : i32
    %c0_i32_0 = arith.constant 0 : i32
    %c0_i32_1 = arith.constant 0 : i32
    return %c0_i32, %c0_i32_0 : i32, i32
  }
  func.func @transform_2(%arg0: i32) -> (i32, i32, i32) {
    %c0_i32 = arith.constant 0 : i32
    %c0_i32_0 = arith.constant 0 : i32
    %c0_i32_1 = arith.constant 0 : i32
    %c0_i32_2 = arith.constant 0 : i32
    return %c0_i32, %c0_i32_0, %c0_i32_1 : i32, i32, i32
  }
  func.func @transform_3(%arg0: i32) -> (i32, i32, i32) {
    %c0_i32 = arith.constant 0 : i32
    %c0_i32_0 = arith.constant 0 : i32
    %c0_i32_1 = arith.constant 0 : i32
    %c0_i32_2 = arith.constant 0 : i32
    return %c0_i32, %c0_i32_0, %c0_i32_1 : i32, i32, i32
  }
  func.func @transform_4(%arg0: i32) -> (i32, i32) {
    %c0_i32 = arith.constant 0 : i32
    %c0_i32_0 = arith.constant 0 : i32
    %c0_i32_1 = arith.constant 0 : i32
    return %c0_i32, %c0_i32_0 : i32, i32
  }
  func.func @transform_5(%arg0: i32) -> (i32, i32) {
    %c0_i32 = arith.constant 0 : i32
    %c0_i32_0 = arith.constant 0 : i32
    %c0_i32_1 = arith.constant 0 : i32
    return %c0_i32, %c0_i32_0 : i32, i32
  }
  func.func @transform_6(%arg0: i32) -> (i32, i32) {
    %c0_i32 = arith.constant 0 : i32
    %c0_i32_0 = arith.constant 0 : i32
    %c0_i32_1 = arith.constant 0 : i32
    return %c0_i32, %c0_i32_0 : i32, i32
  }
  func.func @transform_7(%arg0: i32) -> (i32, i32) {
    %c0_i32 = arith.constant 0 : i32
    %c0_i32_0 = arith.constant 0 : i32
    %c0_i32_1 = arith.constant 0 : i32
    return %c0_i32, %c0_i32_0 : i32, i32
  }
  func.func @transform_8(%arg0: i32) -> (i32, i32) {
    %c0_i32 = arith.constant 0 : i32
    %c0_i32_0 = arith.constant 0 : i32
    %c0_i32_1 = arith.constant 0 : i32
    return %c0_i32, %c0_i32_0 : i32, i32
  }
  func.func @transform_9(%arg0: i32) -> (i32, i32) {
    %c0_i32 = arith.constant 0 : i32
    %c0_i32_0 = arith.constant 0 : i32
    %c0_i32_1 = arith.constant 0 : i32
    return %c0_i32, %c0_i32_0 : i32, i32
  }
  func.func @transform_10(%arg0: i32) -> (i32, i32) {
    %c0_i32 = arith.constant 0 : i32
    %c0_i32_0 = arith.constant 0 : i32
    %c0_i32_1 = arith.constant 0 : i32
    return %c0_i32, %c0_i32_0 : i32, i32
  }
  func.func @transform_11(%arg0: i32) -> (i32, i32) {
    %c0_i32 = arith.constant 0 : i32
    %c0_i32_0 = arith.constant 0 : i32
    %c0_i32_1 = arith.constant 0 : i32
    return %c0_i32, %c0_i32_0 : i32, i32
  }
  func.func @transform_12(%arg0: i32) -> (i32, i32) {
    %c0_i32 = arith.constant 0 : i32
    %c0_i32_0 = arith.constant 0 : i32
    %c0_i32_1 = arith.constant 0 : i32
    return %c0_i32, %c0_i32_0 : i32, i32
  }
  func.func @transform_13(%arg0: i32) -> (i32, i32) {
    %c0_i32 = arith.constant 0 : i32
    %c0_i32_0 = arith.constant 0 : i32
    %c0_i32_1 = arith.constant 0 : i32
    return %c0_i32, %c0_i32_0 : i32, i32
  }
  func.func @transform_14(%arg0: i32) -> (i32, i32) {
    %c0_i32 = arith.constant 0 : i32
    %c0_i32_0 = arith.constant 0 : i32
    %c0_i32_1 = arith.constant 0 : i32
    return %c0_i32, %c0_i32_0 : i32, i32
  }
  func.func @transform_15(%arg0: i32) -> (i32, i32) {
    %c0_i32 = arith.constant 0 : i32
    %c0_i32_0 = arith.constant 0 : i32
    %c0_i32_1 = arith.constant 0 : i32
    return %c0_i32, %c0_i32_0 : i32, i32
  }
  func.func @transform_16(%arg0: i32) -> (i32, i32) {
    %c0_i32 = arith.constant 0 : i32
    %c0_i32_0 = arith.constant 0 : i32
    %c0_i32_1 = arith.constant 0 : i32
    return %c0_i32, %c0_i32_0 : i32, i32
  }
  func.func @transform_17(%arg0: i32) -> (i32, i32) {
    %c0_i32 = arith.constant 0 : i32
    %c0_i32_0 = arith.constant 0 : i32
    %c0_i32_1 = arith.constant 0 : i32
    return %c0_i32, %c0_i32_0 : i32, i32
  }
  func.func @transform_18(%arg0: i32) -> (i32, i32) {
    %c0_i32 = arith.constant 0 : i32
    %c0_i32_0 = arith.constant 0 : i32
    %c0_i32_1 = arith.constant 0 : i32
    return %c0_i32, %c0_i32_0 : i32, i32
  }
  func.func @transform_19(%arg0: i32) -> (i32, i32, i32) {
    %c0_i32 = arith.constant 0 : i32
    %c0_i32_0 = arith.constant 0 : i32
    %c0_i32_1 = arith.constant 0 : i32
    %c0_i32_2 = arith.constant 0 : i32
    return %c0_i32, %c0_i32_0, %c0_i32_1 : i32, i32, i32
  }
  func.func @transform_20(%arg0: i32) -> (i32, i32, i32) {
    %c0_i32 = arith.constant 0 : i32
    %c0_i32_0 = arith.constant 0 : i32
    %c0_i32_1 = arith.constant 0 : i32
    %c0_i32_2 = arith.constant 0 : i32
    return %c0_i32, %c0_i32_0, %c0_i32_1 : i32, i32, i32
  }
}

</mosaic_0001>

<bundles_post_ra>
// kernel: tpu_custom_call.1
= control target key start
LH: loop header
LB: loop body
LE: loop exit
PB: predicated region body
PF: predicated region fallthrough
CT: control target
= control target key end

     0   :  { %s7926_s0 = inlined_call_operand.vmem [shape: f32[48,16], index: 0, kind: input, shape index: {}]   ;;  %s7927_s1 = inlined_call_operand.vmem [shape: f32[48,24], index: 1, kind: input, shape index: {}]   ;;  %s7928_s2 = inlined_call_operand.vmem [shape: f32[6,8,2], index: 2, kind: input, shape index: {}]   ;;  %s7929_s3 = inlined_call_operand.vmem [shape: f32[6,8,1], index: 3, kind: input, shape index: {}]   ;;  %s7930_s4 = inlined_call_operand.vmem [shape: f32[24,96], index: 4, kind: input, shape index: {}]   ;;  %s7931_s5 = inlined_call_operand.vmem [shape: f32[32,96], index: 5, kind: input, shape index: {}]   ;;  %s7932_s6 = inlined_call_operand.vmem [shape: f32[32,96], index: 6, kind: input, shape index: {}]   ;;  %s7933_s7 = inlined_call_operand.vmem [shape: f32[1,96], index: 7, kind: input, shape index: {}]   ;;  %s7934_s8 = inlined_call_operand.vmem [shape: f32[1,96], index: 8, kind: input, shape index: {}]   ;;  %s7935_s9 = inlined_call_operand.vmem [shape: f32[16,96], index: 9, kind: input, shape index: {}]   ;;  %s7936_s10 = inlined_call_operand.vmem [shape: f32[32,96], index: 10, kind: input, shape index: {}]   ;;  %s7937_s11 = inlined_call_operand.vmem [shape: f32[32,96], index: 11, kind: input, shape index: {}]   ;;  %s7938_s12 = inlined_call_operand.vmem [shape: f32[1,96], index: 12, kind: input, shape index: {}]   ;;  %s7939_s13 = inlined_call_operand.vmem [shape: f32[1,96], index: 13, kind: input, shape index: {}]   ;;  %s7940_s14 = inlined_call_operand.vmem [shape: f32[32,32], index: 14, kind: input, shape index: {}]   ;;  %s7941_s15 = inlined_call_operand.vmem [shape: f32[1,32], index: 15, kind: input, shape index: {}]   ;;  %s7942_s16 = inlined_call_operand.vmem [shape: f32[32,32], index: 16, kind: input, shape index: {}]   ;;  %s7943_s17 = inlined_call_operand.vmem [shape: f32[1,32], index: 17, kind: input, shape index: {}]   ;;  %s7944_s18 = inlined_call_operand.vmem [shape: f32[1,32], index: 18, kind: input, shape index: {}]   ;;  %s7945_s19 = inlined_call_operand.hbm [shape: f32[6,8,32], index: 19, kind: output, shape index: {0}]   ;;  %s7946_s20 = inlined_call_operand.hbm [shape: f32[6,6,8], index: 20, kind: output, shape index: {1}]  }
   0x1   :  { %7952 = sst [smem:[#allocation12_spill]] %s7926_s0 }
   0x2   :  { %7953 = sst [smem:[#allocation13_spill]] %s7927_s1 }
   0x3   :  { %7954 = sst [smem:[#allocation14_spill]] %s7928_s2 }
   0x4   :  { %7955 = sst [smem:[#allocation15_spill]] %s7929_s3 }
   0x5   :  { %7956 = sst [smem:[#allocation16_spill]] %s7930_s4 }
   0x6   :  { %26 = vsyncpa [#allocation7], 0  ;;  %s7957_s23 = sld [smem:[#allocation14_spill]]  ;;  %vm387_vm0 = vcmask 15360  }
   0xc   :  { %v6598_v0 = vld [vmem:[%s7957_s23] sm:$0xff] }
   0xd   :  { %27 = vsyncpa [#allocation9], 0  ;;  %v388_v1 = vsel %vm387_vm0, %v6598_v0, -inf  ;;  %v385_v2 = vlaneseq  ;;  %v6476_v13 = vmov 1   ;;  %v6477_v14 = vmov 0   ;;  %s7958_s25 = sld [smem:[#allocation16_spill]] }
   0xe   :  { %389 = vmax.xlane.f32.xlu0 %v388_v1  ;;  %6214 = vset.pattern.permute.xlu1 %v6477_v14  ;;  %vm82_vm3 = vcmask 195584   ;;  %s7959_s4 = sld [smem:[#allocation13_spill]]  ;;  %v357_v20 = vld [vmem:[%s7932_s6] sm:$0xff]  ;;  %v358_v21 = vld [vmem:[%s7932_s6 + $0x8] sm:$0xff]  ;;  %vm218_vm4 = vcmask 130048   ;;  %s7960_s28 = sld [smem:[#allocation12_spill]] }
   0xf   :  { %v6603_v3 = vand.u32 127, %v385_v2  ;;  %6215 = vset.pattern.permute.xlu0 %v6476_v13  ;;  %v209_v22 = vld [vmem:[%s7935_s9] sm:$0xff]  ;;  %v210_v23 = vld [vmem:[%s7935_s9 + $0x8] sm:$0xff]  ;;  %v6644_v27 = vpack.c.bf16 %v358_v21, %v357_v20  ;;  %v359_v31 = vld [vmem:[%s7932_s6 + $0x10] sm:$0xff]  ;;  %v6478_v34 = vmov 0.0|0.0   ;;  %vm6479_vm5 = vmmov 0  }
  0x10   :  { %v5968_v24 = vpack.c.bf16 %v210_v23, %v209_v22  ;;  %v353_v28 = vld [vmem:[%s7931_s5] sm:$0xff]  ;;  %v354_v29 = vld [vmem:[%s7931_s5 + $0x8] sm:$0xff]  ;;  %v360_v32 = vld [vmem:[%s7932_s6 + $0x18] sm:$0xff]  ;;  %v6480_v46 = vmov 0.0   ;;  %vm338_vm7 = vcmask 261120   ;;  %vm196_vm8 = vcmask 785408  }
  0x11   :  { %v6667_v35 = vpack.c.bf16 %v354_v29, %v353_v28  ;;  %v6677_v38 = vpack.c.bf16 %v360_v32, %v359_v31  ;;  %v355_v39 = vld [vmem:[%s7931_s5 + $0x10] sm:$0xff]  ;;  %v356_v40 = vld [vmem:[%s7931_s5 + $0x18] sm:$0xff]  ;;  %339 = vst.msk [vmem:[#allocation2] sm:$0xff] %vm338_vm7, %v6480_v46  ;;  %340 = vst.msk [vmem:[#allocation2 + $0x8] sm:$0xff] %vm338_vm7, %v6480_v46  ;;  %s6481_s9 = smov 64   ;;  %s6482_s22 = smov 96  }
  0x12   :  { %5969 = vmatprep.subr.bf16.mxu1 %v5968_v24  ;;  %v6700_v44 = vpack.c.bf16 %v356_v40, %v355_v39  ;;  %341 = vst.msk [vmem:[#allocation2 + $0x10] sm:$0xff] %vm338_vm7, %v6480_v46  ;;  %342 = vst.msk [vmem:[#allocation2 + $0x18] sm:$0xff] %vm338_vm7, %v6480_v46  ;;  %v5245_v54 = vld [vmem:[%s7933_s7] ss:$0 sm:$0xff]  ;;  %s6483_s2 = smov 127   ;;  %s6484_s26 = smov 32  }
  0x13   :  { %v72_v15 = vld [vmem:[%s7958_s25] sm:$0xff]  ;;  %v73_v16 = vld [vmem:[%s7958_s25 + $0x8] sm:$0xff]  ;;  %v74_v19 = vld [vmem:[%s7958_s25 + $0x10] sm:$0xff]  ;;  %5971 = vmatpush3.bf16.msra.mxu1 %v5968_v24  ;;  %343 = vst.msk [vmem:[#allocation2 + $0x20] sm:$0xff] %vm338_vm7, %v6480_v46  ;;  %vm345_vm12 = vcmask 7168  }
  0x14   :  { %v5964_v17 = vpack.c.bf16 %v73_v16, %v72_v15  ;;  %v66_v18 = vld [vmem:[%s7959_s4] sm:$0xff]  ;;  %v67_v26 = vld [vmem:[%s7959_s4 + $0x8] sm:$0xff]  ;;  %v68_v30 = vld [vmem:[%s7959_s4 + $0x10] sm:$0xff]  ;;  %5972 = vmatprep.subr.bf16.mxu1 %v6478_v34  ;;  %344 = vst.msk [vmem:[#allocation2 + $0x28] sm:$0xff] %vm338_vm7, %v6480_v46 }
  0x15   :  { %5546 = vmatprep.mubr.msk.f32.mxu0 %vm82_vm3, %v66_v18  ;;  %v203_v25 = vld [vmem:[%s7960_s28] sm:$0xff]  ;;  %v204_v33 = vld [vmem:[%s7960_s28 + $0x8] sm:$0xff]  ;;  %v205_v36 = vld [vmem:[%s7960_s28 + $0x10] sm:$0xff]  ;;  %346 = vst.msk [vmem:[#allocation3] sm:$0xff] %vm345_vm12, %v6480_v46 }
  0x16   :  { %5965 = vmatprep.subr.bf16.mxu0 %v5964_v17  ;;  %5559 = vmatprep.mubr.msk.f32.mxu1 %vm218_vm4, %v203_v25  ;;  %v69_v37 = vld [vmem:[%s7959_s4 + $0x18] sm:$0xff]  ;;  %v70_v41 = vld [vmem:[%s7959_s4 + $0x20] sm:$0xff]  ;;  %v71_v45 = vld [vmem:[%s7959_s4 + $0x28] sm:$0xff]  ;;  %347 = vst.msk [vmem:[#allocation3 + $0x8] sm:$0xff] %vm345_vm12, %v6480_v46 }
  0x17   :  { %5967 = vmatpush3.bf16.msra.mxu0 %v5964_v17  ;;  %5560 = vmatmul.mubr.msk.f32.vlgmr.msra.gmra.mrb[0].mxu1 %vm218_vm4, %v204_v33  ;;  %v206_v42 = vld [vmem:[%s7960_s28 + $0x18] sm:$0xff]  ;;  %v207_v43 = vld [vmem:[%s7960_s28 + $0x20] sm:$0xff]  ;;  %v208_v52 = vld [vmem:[%s7960_s28 + $0x28] sm:$0xff]  ;;  %348 = vst.msk [vmem:[#allocation3 + $0x10] sm:$0xff] %vm345_vm12, %v6480_v46 }
  0x18   :  { %5544 = vmatprep.subr.mxu0 %v74_v19  ;;  %5562 = vmatprep.mubr.msk.f32.mxu1 %vm218_vm4, %v205_v36  ;;  %v5252_v56 = vld [vmem:[%s7938_s12] ss:$0 sm:$0xff]  ;;  %349 = vst.msk [vmem:[#allocation3 + $0x18] sm:$0xff] %vm345_vm12, %v6480_v46  ;;  %350 = vst.msk [vmem:[#allocation3 + $0x20] sm:$0xff] %vm345_vm12, %v6480_v46 }
  0x19   :  { %5974 = vmatpush3.bf16.msra.mxu1 %v6667_v35  ;;  %v6757_v17 = vld [vmem:[%s7934_s8] ss:$0 sm:$0xff] }
  0x1a   :  { %5975 = vmatprep.subr.bf16.mxu1 %v6478_v34 }
  0x1b   :  { %5545 = vmatpush3.msra.mxu0 %v74_v19  ;;  %5563 = vmatmul.mubr.msk.f32.gmra.mrb[2].mxu1 %vm218_vm4, %v206_v42 }
  0x1c   :  { %5547 = vmatmul.mubr.msk.f32.vlgmr.msra.gmra.mrb[0].mxu0 %vm82_vm3, %v67_v26  ;;  %5978 = vmatprep.subr.bf16.mxu0 %v6478_v34 }
  0x1d   :  { %5980 = vmatpush3.bf16.msra.mxu0 %v6644_v27  ;;  %5549 = vmatprep.mubr.msk.f32.mxu0 %vm82_vm3, %v68_v30 }
  0x1e   :  { %5981 = vmatprep.subr.bf16.mxu0 %v6478_v34  ;;  %5565 = vmatprep.mubr.msk.f32.mxu1 %vm218_vm4, %v207_v43 }
  0x1f   :  { %5977 = vmatpush3.bf16.msra.mxu1 %v6700_v44 }
  0x20   :  { %5550 = vmatmul.mubr.msk.f32.gmra.mrb[2].mxu0 %vm82_vm3, %v69_v37  ;;  %5984 = vmatprep.subr.bf16.mxu1 %v6478_v34 }
  0x21   :  { %5552 = vmatprep.mubr.msk.f32.mxu0 %vm82_vm3, %v70_v41  ;;  %5983 = vmatpush3.bf16.msra.mxu0 %v6677_v38 }
  0x22   :  { %5566 = vmatmul.mubr.msk.f32.gmra.mrb[4].mxu1 %vm218_vm4, %v208_v52 }
  0x23   :  { %5576 = vmatprep.mubr.msk.f32.mxu1 %vm6479_vm5, %v6480_v46 }
  0x24   :  { %5553 = vmatmul.mubr.msk.f32.gmra.mrb[4].mxu0 %vm82_vm3, %v71_v45 }
  0x25   :  { %5587 = vmatprep.mubr.msk.f32.mxu0 %vm6479_vm5, %v6480_v46 }
  0x28   :  { %5588 = vmatmul.mubr.f32.vlgmr.msra.gmra.mrb[6].mxu0 %v6480_v46 }
  0x29   :  { %5609 = vmatprep.mubr.f32.mxu0 %v6480_v46 }
  0x9b   :  { %v390_v4 = vpop.xlane.xlu0 %389 }
  0x9c   :  { %vm391_vm1 = vcmp.ge.f32.partialorder %v6598_v0, %v390_v4 }
  0x9d   :  { %v392_v5 = vsel %vm391_vm1, %v6603_v3, 2 }
  0x9e   :  { %v393_v6 = vsel %vm387_vm0, %v392_v5, 2147483647 }
  0x9f   :  { %v395_v7 = vshra.s32 %v393_v6, 16  ;;  %v394_v9 = vand.u32 65535, %v393_v6 }
  0xa1   :  { %v397_v8 = vcvt.s32.f32 %v395_v7  ;;  %v396_v11 = vcvt.s32.f32 %v394_v9 }
  0xa3   :  { %398 = vmin.xlane.f32.xlu0 %v397_v8 }
  0xea   :  { %v5561_v60 = vpop.f32.mrb[0].mxu1 }
  0xeb   :  { %v309_v61 = vadd.f32 %v5561_v60, %v5252_v56  ;;  %v303_v62 = vpop.f32.mrb[1].mxu1 }
  0xec   :  { %v304_v1 = vadd.f32 %v5252_v56, %v303_v62  ;;  %v363_v62 = vld [vmem:[%s7936_s10 + $0x8] sm:$0xff] }
  0xed   :  { %333 = vst.msk [vmem:[#allocation5 + $0x8] sm:$0xff] %vm196_vm8, %v309_v61  ;;  %v362_v61 = vld [vmem:[%s7936_s10] sm:$0xff] }
  0xee   :  { %332 = vst.msk [vmem:[#allocation5] sm:$0xff] %vm196_vm8, %v304_v1  ;;  %v5564_v7 = vpop.f32.mrb[2].mxu1  ;;  %v364_v1 = vld [vmem:[%s7936_s10 + $0x10] sm:$0xff] }
  0xef   :  { %v5548_v55 = vpop.f32.mrb[0].mxu0  ;;  %v313_v9 = vpop.f32.mrb[3].mxu1 }
  0xf0   :  { %v173_v57 = vadd.f32 %v5548_v55, %v5245_v54  ;;  %v167_v58 = vpop.f32.mrb[1].mxu0 }
  0xf1   :  { %v168_v59 = vadd.f32 %v5245_v54, %v167_v58 }
  0xf2   :  { %198 = vst.msk [vmem:[#allocation4 + $0x8] sm:$0xff] %vm196_vm8, %v173_v57 }
  0xf3   :  { %197 = vst.msk [vmem:[#allocation4] sm:$0xff] %vm196_vm8, %v168_v59  ;;  %v5551_v63 = vpop.f32.mrb[2].mxu0 }
  0xf4   :  { %v183_v4 = vadd.f32 %v5551_v63, %v5245_v54  ;;  %v177_v5 = vpop.f32.mrb[3].mxu0  ;;  %v6814_v63 = vpack.c.bf16 %v363_v62, %v362_v61 }
  0xf5   :  { %v178_v6 = vadd.f32 %v5245_v54, %v177_v5  ;;  %v5567_v26 = vpop.f32.mrb[4].mxu1 }
  0xf6   :  { %200 = vst.msk [vmem:[#allocation4 + $0x18] sm:$0xff] %vm196_vm8, %v183_v4  ;;  %v329_v28 = vadd.f32 %v5567_v26, %v5252_v56  ;;  %v323_v29 = vpop.f32.mrb[5].mxu1  ;;  %v365_v4 = vld [vmem:[%s7936_s10 + $0x18] sm:$0xff] }
  0xf7   :  { %199 = vst.msk [vmem:[#allocation4 + $0x10] sm:$0xff] %vm196_vm8, %v178_v6  ;;  %v324_v30 = vadd.f32 %v5252_v56, %v323_v29  ;;  %v6825_v5 = vpack.c.bf16 %v365_v4, %v364_v1  ;;  %v6832_v6 = vld [vmem:[%s7957_s23 + $0x8] sm:$0xff] }
  0xf8   :  { %337 = vst.msk [vmem:[#allocation5 + $0x28] sm:$0xff] %vm196_vm8, %v329_v28 }
  0xf9   :  { %336 = vst.msk [vmem:[#allocation5 + $0x20] sm:$0xff] %vm196_vm8, %v324_v30 }
  0xfa   :  { %v381_v31 = vld [vmem:[#allocation4] sm:$0xff] }
 0x130   :  { %v6608_v10 = vpop.xlane.xlu0 %398 }
 0x131   :  { %vm400_vm2 = vcmp.eq.f32.partialorder %v397_v8, %v6608_v10  ;;  %v405_v47 = vcvt.f32.s32 %v6608_v10  ;;  %v319_v8 = vadd.f32 %v5564_v7, %v5252_v56  ;;  %v5554_v10 = vpop.f32.mrb[4].mxu0  ;;  %v1172_v7 = vsel %vm387_vm0, %v6832_v6, -inf }
 0x132   :  { %v401_v12 = vsel %vm400_vm2, %v396_v11, inf  ;;  %v314_v11 = vadd.f32 %v5252_v56, %v313_v9  ;;  %v187_v15 = vpop.f32.mrb[5].mxu0 }
 0x133   :  { %402 = vmin.xlane.f32.xlu1 %v401_v12  ;;  %v406_v49 = vshll.u32 %v405_v47, 16  ;;  %v193_v12 = vadd.f32 %v5554_v10, %v5245_v54  ;;  %335 = vst.msk [vmem:[#allocation5 + $0x18] sm:$0xff] %vm196_vm8, %v319_v8  ;;  %v188_v16 = vadd.f32 %v5245_v54, %v187_v15  ;;  %v573_v18 = vpop.f32.mrb[6].mxu0  ;;  %v369_v54 = vld [vmem:[%s7937_s11 + $0x18] sm:$0xff] }
 0x134   :  { %334 = vst.msk [vmem:[#allocation5 + $0x10] sm:$0xff] %vm196_vm8, %v314_v11  ;;  %v574_v19 = vadd.f32 %v6757_v17, %v573_v18  ;;  %v5589_v20 = vpop.f32.mrb[7].mxu0 }
 0x135   :  { %202 = vst.msk [vmem:[#allocation4 + $0x28] sm:$0xff] %vm196_vm8, %v193_v12  ;;  %201 = vst.msk [vmem:[#allocation4 + $0x20] sm:$0xff] %vm196_vm8, %v188_v16  ;;  %v632_v16 = vld [vmem:[#allocation2 + $0x8] sm:$0xff]  ;;  %v6843_v20 = vld [vmem:[#allocation2 + $0x10] sm:$0xff] }
 0x1c0   :  { %v403_v48 = vpop.xlane.xlu1 %402 }
 0x1c1   :  { %v404_v50 = vcvt.f32.s32 %v403_v48 }
 0x1c3   :  { %v407_v51 = vadd.s32 %v406_v49, %v404_v50  ;;  %v366_v50 = vld [vmem:[%s7937_s11] sm:$0xff] }
 0x1c5   :  { %vm408_vm6 = vcmp.eq.s32.totalorder %v6603_v3, %v407_v51  ;;  %v367_v51 = vld [vmem:[%s7937_s11 + $0x8] sm:$0xff] }
 0x1c6   :  { %v5259_v53 = vsel %vm408_vm6, 1.0, %v6480_v46  ;;  %v6785_v52 = vpack.c.bf16 %v367_v51, %v366_v50 }
 0x1c7   :  { %419 = vperm.xlu0 %6215, %v5259_v53   ;;  %413 = vperm.xlu1 %6214, %v5259_v53   ;;  %v368_v53 = vld [vmem:[%s7937_s11 + $0x10] sm:$0xff]  ;;  %s7961_s11 = sld [smem:[#allocation15_spill]] }
 0x1c8   :  { %v6793_v55 = vpack.c.bf16 %v369_v54, %v368_v53  ;;  %5991 = vmatprep.subr.bf16.mxu0 %v6785_v52 }
 0x1c9   :  { %5993 = vmatpush3.bf16.msra.mxu0 %v6785_v52 }
 0x1ca   :  { %5995 = vmatprep.subr.bf16.mxu0 %v6793_v55 }
 0x1cb   :  { %6221 = vset.pattern.permute.xlu0 %v6477_v14  ;;  %585 = vrot.lane.b32.xlu1 %v574_v19, %s6481_s9 }
 0x1cc   :  { %724 = vperm.xlu0 %6221, %v6480_v46  }
 0x1cd   :  { %5997 = vmatpush3.bf16.msra.mxu0 %v6793_v55 }
 0x1ce   :  { %6004 = vmatprep.subr.bf16.mxu0 %v6478_v34 }
 0x1d0   :  { %6222 = vset.pattern.permute.xlu0 %v6476_v13  ;;  %5610 = vmatmul.mubr.f32.vlgmr.msra.gmra.mrb[8].mxu0 %v6480_v46 }
 0x1d1   :  { %5631 = vmatprep.mubr.msk.f32.mxu0 %vm6479_vm5, %v6480_v46 }
 0x246   :  { %v6764_v21 = vpop.permute.xlu0 %419  ;;  %v6766_v22 = vpop.permute.xlu1 %413 }
 0x247   :  { %v422_v23 = vmul.f32 0.0, %v6764_v21  ;;  %v416_v24 = vmul.f32 0.0, %v6766_v22 }
 0x249   :  { %v423_v25 = vadd.f32 %v422_v23, %v416_v24  ;;  %v6846_v24 = vld [vmem:[#allocation2 + $0x18] sm:$0xff] }
 0x24a   :  { %v586_v42 = vpop.permute.xlu1 %585 }
 0x24b   :  { %5577 = vmatmul.mubr.msk.f32.vlgmr.msra.gmra.mrb[6].mxu1 %vm338_vm7, %v423_v25  ;;  %v725_v30 = vpop.permute.xlu0 %724 }
 0x24c   :  { %5598 = vmatprep.mubr.msk.f32.mxu1 %vm6479_vm5, %v6480_v46  ;;  %5986 = vmatpush3.bf16.msra.mxu1 %v6814_v63 }
 0x24d   :  { %5987 = vmatprep.subr.bf16.mxu1 %v6478_v34 }
 0x250   :  { %5989 = vmatpush3.bf16.msra.mxu1 %v6825_v5 }
 0x251   :  { %5998 = vmatprep.subr.bf16.mxu1 %v6478_v34 }
 0x31e   :  { %v493_v32 = vpop.f32.mrb[6].mxu1 }
 0x31f   :  { %v497_v33 = vadd.f32 %v493_v32, %v381_v31  ;;  %v5578_v36 = vpop.f32.mrb[7].mxu1  ;;  %v6850_v31 = vld [vmem:[#allocation2 + $0x28] sm:$0xff] }
 0x321   :  { %v577_v37 = vadd.f32 %v574_v19, %v497_v33 }
 0x323   :  { %v5262_v39 = vmul.f32 -1.442695, %v577_v37 }
 0x325   :  { %6232 = vpow2.f32 %v5262_v39  ;;  %v732_v39 = vmul.f32 %v725_v30, %v6850_v31 }
 0x32f   :  { %v6233_v40 = vpop.eup %6232 }
 0x330   :  { %v581_v41 = vadd.f32 1.0, %v6233_v40 }
 0x332   :  { %6234 = vrcp.f32 %v581_v41 }
 0x33c   :  { %v6235_v43 = vpop.eup %6234 }
 0x33d   :  { %v588_v45 = vmul.f32 %v6235_v43, %v586_v42  ;;  %v595_v56 = vsub.f32 1.0, %v6235_v43  ;;  %v601_v58 = vmul.f32 0.0, %v6235_v43  ;;  %v6862_v43 = vld [vmem:[%s7939_s13] ss:$0 sm:$0xff] }
 0x33f   :  { %590 = vrot.lane.b32.xlu1 %v588_v45, %s6481_s9 }
 0x3b1   :  { %v591_v47 = vpop.permute.xlu1 %590 }
 0x3b2   :  { %v593_v48 = vadd.f32 %v591_v47, %v497_v33  ;;  %v6853_v33 = vld [vmem:[#allocation2 + $0x20] sm:$0xff]  ;;  %v5611_v47 = vpop.f32.mrb[8].mxu0 }
 0x3b3   :  { %v890_v50 = vpop.f32.mrb[9].mxu0  ;;  %v896_v62 = vadd.f32 %v5611_v47, %v6862_v43 }
 0x3b4   :  { %6236 = vtanh.f32 %v593_v48  ;;  %v891_v53 = vadd.f32 %v6862_v43, %v890_v50 }
 0x3be   :  { %v6237_v49 = vpop.eup %6236 }
 0x3bf   :  { %597 = vrot.lane.b32.xlu1 %v6237_v49, %s6482_s22  ;;  %v742_v49 = vsel %vm338_vm7, %v732_v39, 0.0 }
 0x3c3   :  { %6217 = vperm.xlu1 %6214, %v6480_v46  }
 0x3c7   :  { %709 = vperm.xlu1 %6214, %v6480_v46  }
 0x431   :  { %v598_v57 = vpop.permute.xlu1 %597 }
 0x432   :  { %v600_v59 = vmul.f32 %v598_v57, %v595_v56 }
 0x434   :  { %v6803_v60 = vadd.f32 %v601_v58, %v600_v59 }
 0x436   :  { %604 = vrot.lane.b32.xlu1 %v6803_v60, %s6482_s22 }
 0x43a   :  { %714 = vperm.xlu1 %6214, %v6480_v46  }
 0x43e   :  { %719 = vperm.xlu1 %6214, %v6480_v46  }
 0x442   :  { %v6218_v8 = vpop.permute.xlu1 %6217 }
 0x443   :  { %v6220_v11 = vunpack.i.h.bf16 %v6218_v8  ;;  %v6219_v12 = vunpack.i.l.bf16 %v6218_v8 }
 0x445   :  { %v728_v19 = vmul.f32 %v6220_v11, %v632_v16 }
 0x446   :  { %v710_v9 = vpop.permute.xlu1 %709 }
 0x447   :  { %v734_v25 = vsel %vm338_vm7, %v728_v19, 0.0  ;;  %v729_v26 = vmul.f32 %v710_v9, %v6843_v20  ;;  %v382_v9 = vld [vmem:[#allocation5] sm:$0xff] }
 0x449   :  { %v736_v36 = vsel %vm338_vm7, %v729_v26, 0.0 }
 0x462   :  { %1173 = vmax.xlane.f32.xlu1 %v1172_v7 }
 0x473   :  { %915 = vrot.lane.b32.xlu1 %v891_v53, %s6481_s9 }
 0x4a8   :  { %v6836_v10 = vpop.permute.xlu1 %604 }
 0x4a9   :  { %607 = vst.msk [vmem:[#allocation2] sm:$0xff] %vm338_vm7, %v6836_v10 }
 0x4b0   :  { %v6840_v15 = vld [vmem:[#allocation2] sm:$0xff] }
 0x4b1   :  { %v727_v18 = vmul.f32 %v6219_v12, %v6840_v15 }
 0x4b3   :  { %v733_v23 = vsel %vm338_vm7, %v727_v18, 0.0 }
 0x4b4   :  { %v735_v29 = vadd.f32 %v734_v25, %v733_v23 }
 0x4b6   :  { %v737_v40 = vadd.f32 %v736_v36, %v735_v29 }
 0x4b9   :  { %v715_v28 = vpop.permute.xlu1 %714 }
 0x4ba   :  { %v730_v32 = vmul.f32 %v715_v28, %v6846_v24 }
 0x4bc   :  { %v738_v37 = vsel %vm338_vm7, %v730_v32, 0.0 }
 0x4bd   :  { %v720_v41 = vpop.permute.xlu1 %719  ;;  %v739_v45 = vadd.f32 %v738_v37, %v737_v40 }
 0x4be   :  { %v731_v42 = vmul.f32 %v720_v41, %v6853_v33 }
 0x4c0   :  { %v740_v48 = vsel %vm338_vm7, %v731_v42, 0.0  ;;  %v955_v42 = vsub.f32 1.0, %v6598_v0 }
 0x4c1   :  { %v741_v51 = vadd.f32 %v740_v48, %v739_v45 }
 0x4c3   :  { %v743_v54 = vadd.f32 %v742_v49, %v741_v51 }
 0x4c5   :  { %5599 = vmatmul.mubr.msk.f32.vlgmr.msra.gmra.mrb[8].mxu1 %vm338_vm7, %v743_v54 }
 0x4c6   :  { %5620 = vmatprep.mubr.msk.f32.mxu1 %vm6479_vm5, %v6480_v46 }
 0x4ef   :  { %v1174_v56 = vpop.xlane.xlu1 %1173 }
 0x4f0   :  { %vm1175_vm9 = vcmp.ge.f32.partialorder %v6832_v6, %v1174_v56 }
 0x4f1   :  { %v1176_v57 = vsel %vm1175_vm9, %v6603_v3, 2 }
 0x4f2   :  { %v1177_v58 = vsel %vm387_vm0, %v1176_v57, 2147483647 }
 0x4f3   :  { %v1179_v59 = vshra.s32 %v1177_v58, 16  ;;  %v1178_v1 = vand.u32 65535, %v1177_v58  ;;  %v916_v32 = vpop.permute.xlu1 %915 }
 0x4f5   :  { %v1181_v61 = vcvt.s32.f32 %v1179_v59  ;;  %v1180_v7 = vcvt.s32.f32 %v1178_v1  ;;  %v376_v1 = vld [vmem:[%s7942_s16] sm:$0xff] }
 0x4f7   :  { %1182 = vmin.xlane.f32.xlu0 %v1181_v61 }
 0x50d   :  { %917 = vrot.lane.b32.xlu0 %v896_v62, %s6481_s9 }
 0x584   :  { %v1183_v4 = vpop.xlane.xlu0 %1182 }
 0x585   :  { %vm1184_vm10 = vcmp.eq.f32.partialorder %v1181_v61, %v1183_v4  ;;  %v1189_v45 = vcvt.f32.s32 %v1183_v4  ;;  %v377_v4 = vld [vmem:[%s7942_s16 + $0x8] sm:$0xff] }
 0x586   :  { %v1185_v8 = vsel %vm1184_vm10, %v1180_v7, inf  ;;  %v6904_v7 = vpack.c.bf16 %v377_v4, %v376_v1 }
 0x587   :  { %1186 = vmin.xlane.f32.xlu0 %v1185_v8  ;;  %v1190_v48 = vshll.u32 %v1189_v45, 16 }
 0x588   :  { %v918_v40 = vpop.permute.xlu0 %917  ;;  %6006 = vmatpush3.bf16.msra.mxu0 %v6904_v7 }
 0x589   :  { %6007 = vmatprep.subr.bf16.mxu0 %v6478_v34 }
 0x598   :  { %v813_v11 = vpop.f32.mrb[8].mxu1 }
 0x599   :  { %v817_v12 = vadd.f32 %v813_v11, %v382_v9  ;;  %v5600_v16 = vpop.f32.mrb[9].mxu1  ;;  %v378_v9 = vld [vmem:[%s7942_s16 + $0x10] sm:$0xff]  ;;  %v379_v11 = vld [vmem:[%s7942_s16 + $0x18] sm:$0xff] }
 0x59a   :  { %v371_v16 = vld [vmem:[%s7940_s14] sm:$0xff] }
 0x59b   :  { %v899_v18 = vadd.f32 %v891_v53, %v817_v12  ;;  %v900_v19 = vadd.f32 %v896_v62, %v817_v12 }
 0x59d   :  { %v5266_v23 = vmul.f32 -1.442695, %v899_v18  ;;  %v5267_v25 = vmul.f32 -1.442695, %v900_v19  ;;  %v372_v18 = vld [vmem:[%s7940_s14 + $0x8] sm:$0xff]  ;;  %v373_v19 = vld [vmem:[%s7940_s14 + $0x10] sm:$0xff] }
 0x59f   :  { %6238 = vpow2.f32 %v5266_v23  ;;  %v6930_v23 = vpack.c.bf16 %v372_v18, %v371_v16  ;;  %v5263_v16 = vld [vmem:[%s7944_s18] ss:$0 sm:$0xff] }
 0x5a0   :  { %6240 = vpow2.f32 %v5267_v25  ;;  %v374_v25 = vld [vmem:[%s7940_s14 + $0x18] sm:$0xff] }
 0x5a1   :  { %6000 = vmatpush3.bf16.msra.mxu1 %v6930_v23 }
 0x5a2   :  { %6001 = vmatprep.subr.bf16.mxu1 %v6478_v34 }
 0x5a9   :  { %v6239_v26 = vpop.eup %6238 }
 0x5aa   :  { %v6241_v28 = vpop.eup %6240  ;;  %v907_v29 = vadd.f32 1.0, %v6239_v26  ;;  %v6936_v26 = vpack.c.bf16 %v374_v25, %v373_v19 }
 0x5ab   :  { %v908_v30 = vadd.f32 1.0, %v6241_v28 }
 0x5ac   :  { %6242 = vrcp.f32 %v907_v29  ;;  %6003 = vmatpush3.bf16.msra.mxu1 %v6936_v26 }
 0x5ad   :  { %6244 = vrcp.f32 %v908_v30  ;;  %6010 = vmatprep.subr.bf16.mxu1 %v6478_v34 }
 0x5b6   :  { %v6876_v36 = vpop.eup %6242 }
 0x5b7   :  { %v921_v37 = vmul.f32 %v6876_v36, %v916_v32  ;;  %v6879_v39 = vpop.eup %6244 }
 0x5b8   :  { %v922_v41 = vmul.f32 %v6879_v39, %v918_v40 }
 0x5b9   :  { %925 = vrot.lane.b32.xlu1 %v921_v37, %s6481_s9  ;;  %v935_v37 = vsub.f32 1.0, %v6876_v36 }
 0x5bd   :  { %927 = vrot.lane.b32.xlu1 %v922_v41, %s6481_s9  ;;  %v947_v41 = vmul.f32 0.0, %v6876_v36 }
 0x5c1   :  { %952 = vrot.lane.b32.xlu1 %v6598_v0, %s6483_s2 }
 0x5c5   :  { %959 = vperm.xlu1 %6214, %v955_v42  }
 0x614   :  { %v1187_v47 = vpop.xlane.xlu0 %1186 }
 0x615   :  { %v1188_v49 = vcvt.f32.s32 %v1187_v47  ;;  %v936_v47 = vsub.f32 1.0, %v6879_v39 }
 0x617   :  { %v1191_v50 = vadd.s32 %v1190_v48, %v1188_v49 }
 0x619   :  { %vm1192_vm11 = vcmp.eq.s32.totalorder %v6603_v3, %v1191_v50  ;;  %v948_v50 = vmul.f32 0.0, %v6879_v39 }
 0x61a   :  { %v5274_v51 = vsel %vm1192_vm11, 1.0, %v6480_v46  ;;  %vm5065_vm11 = vcmask 1042434  }
 0x61b   :  { %1203 = vperm.xlu0 %6222, %v5274_v51  }
 0x61f   :  { %6223 = vset.pattern.permute.xlu0 %v6477_v14 }
 0x62b   :  { %v926_v53 = vpop.permute.xlu1 %925 }
 0x62c   :  { %v931_v56 = vadd.f32 %v926_v53, %v817_v12 }
 0x62e   :  { %6246 = vtanh.f32 %v931_v56 }
 0x62f   :  { %v928_v54 = vpop.permute.xlu1 %927 }
 0x630   :  { %v932_v59 = vadd.f32 %v928_v54, %v817_v12  ;;  %v6915_v12 = vpack.c.bf16 %v379_v11, %v378_v9 }
 0x632   :  { %6248 = vtanh.f32 %v932_v59  ;;  %6009 = vmatpush3.bf16.msra.mxu0 %v6915_v12 }
 0x633   :  { %v953_v57 = vpop.permute.xlu1 %952  ;;  %6016 = vmatprep.subr.bf16.mxu0 %v6478_v34 }
 0x634   :  { %v956_v58 = vsub.f32 1.0, %v953_v57 }
 0x636   :  { %964 = vperm.xlu1 %6214, %v956_v58  }
 0x638   :  { %v6247_v61 = vpop.eup %6246 }
 0x63a   :  { %970 = vperm.xlu1 %6214, %v6598_v0   ;;  %v6902_v0 = vld [vmem:[%s7961_s11] sm:$0xff] }
 0x63b   :  { %v985_v8 = vsub.f32 1.0, %v6902_v0  ;;  %v7115_v0 = vld [vmem:[%s7943_s17] ss:$0 sm:$0xff] }
 0x63c   :  { %v6249_v62 = vpop.eup %6248 }
 0x63e   :  { %974 = vperm.xlu1 %6214, %v953_v57  }
 0x642   :  { %939 = vrot.lane.b32.xlu1 %v6247_v61, %s6482_s22 }
 0x644   :  { %v960_v28 = vpop.permute.xlu1 %959 }
 0x645   :  { %v967_v53 = vmul.f32 0.0, %v960_v28 }
 0x646   :  { %941 = vrot.lane.b32.xlu1 %v6249_v62, %s6482_s22 }
 0x64a   :  { %1197 = vperm.xlu1 %6214, %v5274_v51  }
 0x64e   :  { %1069 = vperm.xlu1 %6214, %v985_v8  }
 0x69a   :  { %v6957_v4 = vpop.permute.xlu0 %1203 }
 0x6b5   :  { %v965_v29 = vpop.permute.xlu1 %964 }
 0x6b6   :  { %v968_v57 = vmul.f32 0.0, %v965_v29 }
 0x6b9   :  { %v971_v30 = vpop.permute.xlu1 %970 }
 0x6bd   :  { %v975_v32 = vpop.permute.xlu1 %974 }
 0x6c1   :  { %v940_v40 = vpop.permute.xlu1 %939 }
 0x6c2   :  { %v945_v42 = vmul.f32 %v940_v40, %v935_v37  ;;  %v7006_v40 = vld [vmem:[%s7941_s15] ss:$0 sm:$0xff] }
 0x6c4   :  { %v949_v45 = vadd.f32 %v947_v41, %v945_v42 }
 0x6c5   :  { %v942_v48 = vpop.permute.xlu1 %941 }
 0x6c6   :  { %v977_v49 = vmul.f32 %v971_v30, %v949_v45  ;;  %v946_v51 = vmul.f32 %v942_v48, %v936_v47  ;;  %v1165_v47 = vld [vmem:[#allocation4 + $0x8] sm:$0xff] }
 0x6c8   :  { %v950_v54 = vadd.f32 %v948_v50, %v946_v51  ;;  %v6947_v58 = vadd.f32 %v977_v49, %v967_v53 }
 0x6c9   :  { %v6945_v56 = vpop.permute.xlu1 %1197 }
 0x6ca   :  { %v978_v59 = vmul.f32 %v975_v32, %v950_v54  ;;  %v981_v1 = vmul.f32 %v6947_v58, %v6766_v22  ;;  %v1200_v22 = vmul.f32 %v6945_v56, %v6947_v58 }
 0x6cc   :  { %v6949_v61 = vadd.f32 %v978_v59, %v968_v57 }
 0x6cd   :  { %v1070_v36 = vpop.permute.xlu1 %1069 }
 0x6ce   :  { %v6951_v62 = vmul.f32 0.0, %v1070_v36  ;;  %v983_v39 = vmul.f32 %v6949_v61, %v6764_v21  ;;  %v1206_v11 = vmul.f32 %v6957_v4, %v6949_v61 }
 0x6d0   :  { %5632 = vmatmul.mubr.msk.f32.vlgmr.msra.gmra.mrb[10].mxu0 %vm338_vm7, %v6951_v62  ;;  %v984_v9 = vadd.f32 %v983_v39, %v981_v1  ;;  %v1207_v21 = vadd.f32 %v1206_v11, %v1200_v22 }
 0x6d1   :  { %6018 = vmatpush3.bf16.msra.mxu0 %v6644_v27  ;;  %5653 = vmatprep.mubr.msk.f32.mxu0 %vm6479_vm5, %v6480_v46 }
 0x6d2   :  { %993 = vrot.lane.b32.xlu1 %v984_v9, %s6482_s22  ;;  %6019 = vmatprep.subr.bf16.mxu0 %v6478_v34 }
 0x6d5   :  { %6021 = vmatpush3.bf16.msra.mxu0 %v6677_v38 }
 0x6d6   :  { %1209 = vrot.lane.b32.xlu1 %v1207_v21, %s6482_s22  ;;  %6029 = vmatprep.subr.bf16.mxu0 %v6785_v52 }
 0x6d8   :  { %5654 = vmatmul.mubr.msk.f32.vlgmr.msra.gmra.mrb[12].mxu0 %vm338_vm7, %v6836_v10 }
 0x6d9   :  { %6031 = vmatpush3.bf16.msra.mxu0 %v6785_v52 }
 0x6da   :  { %613 = vrot.lane.b32.xlu1 %v5263_v16, %s6484_s26  ;;  %6033 = vmatprep.subr.bf16.mxu0 %v6793_v55 }
 0x6dd   :  { %6035 = vmatpush3.bf16.msra.mxu0 %v6793_v55 }
 0x6de   :  { %6042 = vmatprep.subr.bf16.mxu0 %v6478_v34 }
 0x744   :  { %v994_v18 = vpop.permute.xlu1 %993 }
 0x745   :  { %5621 = vmatmul.mubr.msk.f32.vlgmr.msra.gmra.mrb[10].mxu1 %vm338_vm7, %v994_v18  ;;  %v6485_v18 = vmov -inf  }
 0x746   :  { %6012 = vmatpush3.bf16.msra.mxu1 %v6667_v35  ;;  %5642 = vmatprep.mubr.msk.f32.mxu1 %vm6479_vm5, %v6480_v46 }
 0x747   :  { %6013 = vmatprep.subr.bf16.mxu1 %v6478_v34 }
 0x748   :  { %v1210_v10 = vpop.permute.xlu1 %1209 }
 0x74a   :  { %6015 = vmatpush3.bf16.msra.mxu1 %v6700_v44 }
 0x74b   :  { %6022 = vmatprep.subr.bf16.mxu1 %v6478_v34 }
 0x74c   :  { %v6997_v32 = vpop.permute.xlu1 %613 }
 0x74d   :  { %5643 = vmatmul.mubr.msk.f32.vlgmr.msra.gmra.mrb[12].mxu1 %vm338_vm7, %v1210_v10  ;;  %v616_v37 = vmul.f32 %v6997_v32, %v6803_v60  ;;  %v7030_v10 = vsel %vm345_vm12, -1e+30, %v6485_v18 }
 0x74e   :  { %6024 = vmatpush3.bf16.msra.mxu1 %v6814_v63  ;;  %5664 = vmatprep.mubr.msk.f32.mxu1 %vm6479_vm5, %v6480_v46 }
 0x74f   :  { %6025 = vmatprep.subr.bf16.mxu1 %v6478_v34 }
 0x752   :  { %6027 = vmatpush3.bf16.msra.mxu1 %v6825_v5 }
 0x753   :  { %6036 = vmatprep.subr.bf16.mxu1 %v6478_v34 }
 0x7a3   :  { %v1142_v19 = vpop.f32.mrb[10].mxu0 }
 0x7a4   :  { %v5633_v25 = vpop.f32.mrb[11].mxu0 }
 0x7ab   :  { %v1352_v28 = vpop.f32.mrb[12].mxu0 }
 0x7ac   :  { %v1353_v29 = vadd.f32 %v6757_v17, %v1352_v28  ;;  %v5655_v30 = vpop.f32.mrb[13].mxu0 }
 0x7ae   :  { %1364 = vrot.lane.b32.xlu1 %v1353_v29, %s6481_s9 }
 0x7b2   :  { %618 = vrot.lane.b32.xlu1 %v616_v37, %s6482_s22 }
 0x818   :  { %v1063_v41 = vpop.f32.mrb[10].mxu1 }
 0x819   :  { %v1064_v42 = vadd.f32 %v7006_v40, %v1063_v41  ;;  %v5622_v45 = vpop.f32.mrb[11].mxu1 }
 0x81b   :  { %v7009_v17 = vadd.f32 %v1142_v19, %v1064_v42 }
 0x820   :  { %v1279_v48 = vpop.f32.mrb[12].mxu1  ;;  %v1365_v36 = vpop.permute.xlu1 %1364 }
 0x821   :  { %v1283_v49 = vadd.f32 %v1279_v48, %v1165_v47  ;;  %v5644_v50 = vpop.f32.mrb[13].mxu1 }
 0x823   :  { %v1356_v51 = vadd.f32 %v1353_v29, %v1283_v49 }
 0x824   :  { %v619_v39 = vpop.permute.xlu1 %618 }
 0x825   :  { %v5277_v53 = vmul.f32 -1.442695, %v1356_v51  ;;  %v621_v9 = vsel %vm338_vm7, %v619_v39, 0.0 }
 0x827   :  { %6250 = vpow2.f32 %v5277_v53 }
 0x831   :  { %v6251_v54 = vpop.eup %6250 }
 0x832   :  { %v1360_v57 = vadd.f32 1.0, %v6251_v54 }
 0x834   :  { %6252 = vrcp.f32 %v1360_v57 }
 0x83e   :  { %v6253_v59 = vpop.eup %6252 }
 0x83f   :  { %v1367_v1 = vmul.f32 %v6253_v59, %v1365_v36  ;;  %v1374_v51 = vsub.f32 1.0, %v6253_v59  ;;  %v1380_v54 = vmul.f32 %v6253_v59, %v6803_v60  ;;  %v7058_v60 = vld [vmem:[%s7957_s23 + $0x10] sm:$0xff] }
 0x840   :  { %v1938_v59 = vsel %vm387_vm0, %v7058_v60, -inf }
 0x841   :  { %1369 = vrot.lane.b32.xlu1 %v1367_v1, %s6481_s9 }
 0x865   :  { %622 = vadd.xlane.f32.xlu1 %v621_v9 }
 0x8b3   :  { %v1370_v11 = vpop.permute.xlu1 %1369 }
 0x8b4   :  { %v1372_v22 = vadd.f32 %v1370_v11, %v1283_v49 }
 0x8b6   :  { %6254 = vtanh.f32 %v1372_v22 }
 0x8c0   :  { %v6255_v21 = vpop.eup %6254 }
 0x8c1   :  { %1376 = vrot.lane.b32.xlu0 %v6255_v21, %s6482_s22 }
 0x8c5   :  { %1593 = vrot.lane.b32.xlu0 %v6947_v58, %s6482_s22 }
 0x8c9   :  { %1595 = vrot.lane.b32.xlu0 %v6949_v61, %s6482_s22 }
 0x8f2   :  { %v623_v16 = vpop.xlane.xlu1 %622 }
 0x8f3   :  { %624 = vst.msk [vmem:[#allocation3] sm:$0xff] %vm345_vm12, %v623_v16 }
 0x8fa   :  { %v7032_v19 = vld [vmem:[#allocation3] sm:$0xff] }
 0x8fb   :  { %v1416_v25 = vsel %vm345_vm12, %v7032_v19, -inf }
 0x8fc   :  { %v7037_v28 = vmax.f32 %v1416_v25, %v7030_v10 }
 0x8fe   :  { %v1424_v29 = vmax.f32 %v7037_v28, %v7030_v10 }
 0x900   :  { %v1426_v30 = vmax.f32 %v1424_v29, %v7030_v10 }
 0x902   :  { %v1427_v37 = vsub.f32 %v7032_v19, %v1426_v30 }
 0x904   :  { %v1433_v41 = vmul.f32 1.442695, %v1427_v37 }
 0x906   :  { %6256 = vpow2.f32 %v1433_v41 }
 0x910   :  { %v6257_v42 = vpop.eup %6256 }
 0x911   :  { %v1451_v45 = vsel %vm345_vm12, %v6257_v42, 0.0 }
 0x912   :  { %v1462_v47 = vmax.f32 %v1451_v45, 1e-30 }
 0x914   :  { %6258 = vrcp.f32 %v1462_v47 }
 0x91e   :  { %v6259_v48 = vpop.eup %6258 }
 0x91f   :  { %v1465_v49 = vmul.f32 0.0, %v6259_v48  ;;  %v1464_v50 = vmul.f32 %v6259_v48, %v6257_v42 }
 0x921   :  { %1477 = vperm.xlu1 %6214, %v1465_v49   ;;  %1472 = vperm.xlu0 %6223, %v1464_v50  }
 0x925   :  { %1482 = vperm.xlu0 %6223, %v1465_v49  }
 0x933   :  { %v1377_v53 = vpop.permute.xlu0 %1376 }
 0x934   :  { %v1379_v57 = vmul.f32 %v1377_v53, %v1374_v51 }
 0x936   :  { %v7045_v36 = vadd.f32 %v1380_v54, %v1379_v57 }
 0x937   :  { %v1594_v1 = vpop.permute.xlu0 %1593 }
 0x938   :  { %5675 = vmatprep.mubr.msk.f32.mxu0 %vm338_vm7, %v1594_v1  ;;  %1383 = vrot.lane.b32.xlu0 %v7045_v36, %s6482_s22 }
 0x93b   :  { %v1596_v39 = vpop.permute.xlu0 %1595 }
 0x93c   :  { %5676 = vmatmul.mubr.msk.f32.vlgmr.msra.gmra.mrb[14].mxu0 %vm338_vm7, %v1596_v39  ;;  %1487 = vperm.xlu0 %6223, %v1465_v49  }
 0x93d   :  { %6044 = vmatpush3.bf16.msra.mxu0 %v6904_v7  ;;  %5697 = vmatprep.mubr.msk.f32.mxu0 %vm6479_vm5, %v6480_v46 }
 0x93e   :  { %6045 = vmatprep.subr.bf16.mxu0 %v6478_v34 }
 0x940   :  { %1492 = vperm.xlu0 %6223, %v1465_v49  }
 0x941   :  { %6047 = vmatpush3.bf16.msra.mxu0 %v6915_v12 }
 0x942   :  { %6054 = vmatprep.subr.bf16.mxu0 %v6478_v34 }
 0x944   :  { %1497 = vperm.xlu0 %6223, %v1465_v49  }
 0x945   :  { %1939 = vmax.xlane.f32.xlu1 %v1938_v59 }
 0x9a0   :  { %v1473_v9 = vpop.permute.xlu0 %1472  ;;  %v1478_v16 = vpop.permute.xlu1 %1477 }
 0x9a1   :  { %v1500_v25 = vmul.f32 %v1473_v9, %v6840_v15 }
 0x9a3   :  { %v1506_v37 = vsel %vm338_vm7, %v1500_v25, 0.0 }
 0x9a4   :  { %v1483_v11 = vpop.permute.xlu0 %1482 }
 0x9a5   :  { %v1502_v41 = vmul.f32 %v1483_v11, %v6843_v20 }
 0x9a7   :  { %v1509_v48 = vsel %vm338_vm7, %v1502_v41, 0.0 }
 0x9aa   :  { %v7064_v22 = vpop.permute.xlu0 %1383 }
 0x9ab   :  { %1387 = vst.msk [vmem:[#allocation2 + $0x8] sm:$0xff] %vm338_vm7, %v7064_v22 }
 0x9b2   :  { %v7068_v21 = vld [vmem:[#allocation2 + $0x8] sm:$0xff] }
 0x9b3   :  { %v1501_v18 = vmul.f32 %v1478_v16, %v7068_v21 }
 0x9b5   :  { %v1507_v29 = vsel %vm338_vm7, %v1501_v18, 0.0 }
 0x9b6   :  { %v1508_v45 = vadd.f32 %v1507_v29, %v1506_v37  ;;  %v1167_v29 = vld [vmem:[#allocation5 + $0x8] sm:$0xff] }
 0x9b8   :  { %v1510_v51 = vadd.f32 %v1509_v48, %v1508_v45 }
 0x9bb   :  { %v1488_v30 = vpop.permute.xlu0 %1487 }
 0x9bc   :  { %v1503_v42 = vmul.f32 %v1488_v30, %v6846_v24 }
 0x9be   :  { %v1511_v49 = vsel %vm338_vm7, %v1503_v42, 0.0 }
 0x9bf   :  { %v1493_v47 = vpop.permute.xlu0 %1492  ;;  %v1512_v53 = vadd.f32 %v1511_v49, %v1510_v51 }
 0x9c0   :  { %v1504_v50 = vmul.f32 %v1493_v47, %v6853_v33 }
 0x9c2   :  { %v1513_v15 = vsel %vm338_vm7, %v1504_v50, 0.0 }
 0x9c3   :  { %v1498_v54 = vpop.permute.xlu0 %1497  ;;  %v1514_v1 = vadd.f32 %v1513_v15, %v1512_v53 }
 0x9c4   :  { %v1505_v57 = vmul.f32 %v1498_v54, %v6850_v31 }
 0x9c6   :  { %v1515_v20 = vsel %vm338_vm7, %v1505_v57, 0.0 }
 0x9c7   :  { %v1516_v39 = vadd.f32 %v1515_v20, %v1514_v1 }
 0x9c9   :  { %5665 = vmatmul.mubr.msk.f32.vlgmr.msra.gmra.mrb[14].mxu1 %vm338_vm7, %v1516_v39 }
 0x9ca   :  { %6038 = vmatpush3.bf16.msra.mxu1 %v6930_v23  ;;  %5686 = vmatprep.mubr.msk.f32.mxu1 %vm6479_vm5, %v6480_v46 }
 0x9cb   :  { %6039 = vmatprep.subr.bf16.mxu1 %v6478_v34 }
 0x9ce   :  { %6041 = vmatpush3.bf16.msra.mxu1 %v6936_v26 }
 0x9cf   :  { %6048 = vmatprep.subr.bf16.mxu1 %v6478_v34 }
 0x9d2   :  { %v1940_v24 = vpop.xlane.xlu1 %1939 }
 0x9d3   :  { %vm1941_vm13 = vcmp.ge.f32.partialorder %v7058_v60, %v1940_v24  ;;  %v1732_v24 = vsub.f32 1.0, %v6832_v6 }
 0x9d4   :  { %v1942_v31 = vsel %vm1941_vm13, %v6603_v3, 2  ;;  %vm5069_vm13 = vcmask 1044484  }
 0x9d5   :  { %v1943_v33 = vsel %vm387_vm0, %v1942_v31, 2147483647 }
 0x9d6   :  { %v1945_v59 = vshra.s32 %v1943_v33, 16  ;;  %v1944_v31 = vand.u32 65535, %v1943_v33 }
 0x9d8   :  { %v1947_v9 = vcvt.s32.f32 %v1945_v59  ;;  %v1946_v59 = vcvt.s32.f32 %v1944_v31 }
 0x9da   :  { %1948 = vmin.xlane.f32.xlu0 %v1947_v9 }
 0xa0f   :  { %v5677_v11 = vpop.f32.mrb[14].mxu0 }
 0xa10   :  { %v1673_v16 = vadd.f32 %v5677_v11, %v6862_v43  ;;  %v1667_v18 = vpop.f32.mrb[15].mxu0 }
 0xa11   :  { %v1668_v25 = vadd.f32 %v6862_v43, %v1667_v18 }
 0xa12   :  { %1694 = vrot.lane.b32.xlu1 %v1673_v16, %s6481_s9 }
 0xa13   :  { %1692 = vrot.lane.b32.xlu0 %v1668_v25, %s6481_s9 }
 0xa67   :  { %v1949_v43 = vpop.xlane.xlu0 %1948 }
 0xa68   :  { %vm1950_vm14 = vcmp.eq.f32.partialorder %v1947_v9, %v1949_v43 }
 0xa69   :  { %v1951_v11 = vsel %vm1950_vm14, %v1946_v59, inf  ;;  %vm5071_vm14 = vcmask 1045509  }
 0xa84   :  { %v1695_v1 = vpop.permute.xlu1 %1694 }
 0xa85   :  { %v1693_v54 = vpop.permute.xlu0 %1692 }
 0xa9c   :  { %v1586_v30 = vpop.f32.mrb[14].mxu1 }
 0xa9d   :  { %v1590_v37 = vadd.f32 %v1586_v30, %v1167_v29  ;;  %v5666_v41 = vpop.f32.mrb[15].mxu1 }
 0xa9f   :  { %v1676_v42 = vadd.f32 %v1668_v25, %v1590_v37  ;;  %v1677_v45 = vadd.f32 %v1673_v16, %v1590_v37  ;;  %v1155_v16 = vsub.f32 1.0, %v985_v8  ;;  %v1153_v8 = vadd.f32 %v7115_v0, %v7009_v17  ;;  %v7126_v17 = vld [vmem:[%s7961_s11 + $0x8] sm:$0xff] }
 0xaa1   :  { %v5281_v47 = vmul.f32 -1.442695, %v1676_v42  ;;  %v5282_v48 = vmul.f32 -1.442695, %v1677_v45 }
 0xaa3   :  { %6260 = vpow2.f32 %v5281_v47 }
 0xaa4   :  { %6262 = vpow2.f32 %v5282_v48 }
 0xaad   :  { %v6261_v49 = vpop.eup %6260 }
 0xaae   :  { %v6263_v50 = vpop.eup %6262  ;;  %v1684_v51 = vadd.f32 1.0, %v6261_v49 }
 0xaaf   :  { %v1685_v15 = vadd.f32 1.0, %v6263_v50 }
 0xab0   :  { %6264 = vrcp.f32 %v1684_v51 }
 0xab1   :  { %6266 = vrcp.f32 %v1685_v15 }
 0xaba   :  { %v7096_v53 = vpop.eup %6264 }
 0xabb   :  { %v7098_v57 = vpop.eup %6266  ;;  %v1698_v20 = vmul.f32 %v7096_v53, %v1693_v54  ;;  %v1724_v59 = vmul.f32 %v7096_v53, %v6947_v58 }
 0xabc   :  { %v1699_v39 = vmul.f32 %v7098_v57, %v1695_v1 }
 0xabd   :  { %1702 = vrot.lane.b32.xlu1 %v1698_v20, %s6481_s9 }
 0xabe   :  { %1704 = vrot.lane.b32.xlu0 %v1699_v39, %s6481_s9 }
 0xac2   :  { %1729 = vrot.lane.b32.xlu0 %v6832_v6, %s6483_s2 }
 0xac6   :  { %1736 = vperm.xlu0 %6223, %v1732_v24   ;;  %v1712_v24 = vsub.f32 1.0, %v7096_v53 }
 0xae1   :  { %1952 = vmin.xlane.f32.xlu1 %v1951_v11 }
 0xaf2   :  { %1158 = vperm.xlu1 %6214, %v1155_v16  }
 0xb2f   :  { %v1703_v25 = vpop.permute.xlu1 %1702 }
 0xb30   :  { %v1705_v18 = vpop.permute.xlu0 %1704  ;;  %v1708_v29 = vadd.f32 %v1703_v25, %v1590_v37 }
 0xb31   :  { %v1709_v42 = vadd.f32 %v1705_v18, %v1590_v37  ;;  %v1955_v37 = vcvt.f32.s32 %v1949_v43  ;;  %v1762_v43 = vsub.f32 1.0, %v7126_v17  ;;  %v1713_v18 = vsub.f32 1.0, %v7098_v57 }
 0xb32   :  { %6268 = vtanh.f32 %v1708_v29 }
 0xb33   :  { %6270 = vtanh.f32 %v1709_v42 }
 0xb34   :  { %v1730_v30 = vpop.permute.xlu0 %1729  ;;  %6272 = vtanh.f32 %v1153_v8 }
 0xb35   :  { %v1733_v41 = vsub.f32 1.0, %v1730_v30 }
 0xb37   :  { %1741 = vperm.xlu0 %6223, %v1733_v41  }
 0xb3b   :  { %1747 = vperm.xlu0 %6223, %v6832_v6   ;;  %v1956_v6 = vshll.u32 %v1955_v37, 16 }
 0xb3c   :  { %v6269_v33 = vpop.eup %6268 }
 0xb3d   :  { %v6271_v9 = vpop.eup %6270 }
 0xb3e   :  { %v6273_v49 = vpop.eup %6272 }
 0xb3f   :  { %1751 = vperm.xlu0 %6223, %v1730_v30   ;;  %v1725_v30 = vmul.f32 %v7098_v57, %v6949_v61 }
 0xb43   :  { %1716 = vrot.lane.b32.xlu0 %v6269_v33, %s6482_s22 }
 0xb45   :  { %v1737_v1 = vpop.permute.xlu0 %1736 }
 0xb46   :  { %v1744_v42 = vmul.f32 %v1737_v1, %v6947_v58 }
 0xb47   :  { %1718 = vrot.lane.b32.xlu0 %v6271_v9, %s6482_s22 }
 0xb6e   :  { %v1953_v45 = vpop.xlane.xlu1 %1952 }
 0xb6f   :  { %v1954_v47 = vcvt.f32.s32 %v1953_v45 }
 0xb71   :  { %v1957_v48 = vadd.s32 %v1956_v6, %v1954_v47 }
 0xb72   :  { %v1159_v50 = vpop.permute.xlu1 %1158 }
 0xb73   :  { %v1161_v51 = vmul.f32 %v6273_v49, %v1159_v50  ;;  %vm1958_vm15 = vcmp.eq.s32.totalorder %v6603_v3, %v1957_v48 }
 0xb74   :  { %v5287_v15 = vsel %vm1958_vm15, 1.0, %v6480_v46 }
 0xb75   :  { %1963 = vperm.xlu0 %6223, %v5287_v15   ;;  %v1162_v54 = vadd.f32 %v1161_v51, %v6951_v62 }
 0xb77   :  { %1163 = vst.msk [vmem:[#allocation6] sm:$0xff] %vm338_vm7, %v1162_v54 }
 0xb79   :  { %6224 = vset.pattern.permute.xlu0 %v6476_v13 }
 0xb7a   :  { %1969 = vperm.xlu0 %6224, %v5287_v15  }
 0xb7e   :  { %6225 = vset.pattern.permute.xlu0 %v6477_v14 }
 0xb7f   :  { %1840 = vperm.xlu0 %6225, %v1762_v43  }
 0xbb6   :  { %v1742_v20 = vpop.permute.xlu0 %1741 }
 0xbb7   :  { %v1745_v9 = vmul.f32 %v1742_v20, %v6949_v61 }
 0xbba   :  { %v1748_v62 = vpop.permute.xlu0 %1747 }
 0xbbe   :  { %v1752_v39 = vpop.permute.xlu0 %1751 }
 0xbc2   :  { %v1717_v31 = vpop.permute.xlu0 %1716 }
 0xbc3   :  { %v1722_v11 = vmul.f32 %v1717_v31, %v1712_v24 }
 0xbc5   :  { %v1726_v16 = vadd.f32 %v1724_v59, %v1722_v11 }
 0xbc6   :  { %v1719_v25 = vpop.permute.xlu0 %1718 }
 0xbc7   :  { %v1754_v29 = vmul.f32 %v1748_v62, %v1726_v16  ;;  %v1723_v41 = vmul.f32 %v1719_v25, %v1713_v18 }
 0xbc9   :  { %v1727_v33 = vadd.f32 %v1725_v30, %v1723_v41  ;;  %v7141_v8 = vadd.f32 %v1754_v29, %v1744_v42 }
 0xbcb   :  { %v1755_v37 = vmul.f32 %v1752_v39, %v1727_v33  ;;  %v1758_v53 = vmul.f32 %v7141_v8, %v6945_v56  ;;  %v7196_v39 = vld [vmem:[%s7934_s8] ss:$0 sm:$0xff] }
 0xbcd   :  { %v7143_v45 = vadd.f32 %v1755_v37, %v1745_v9 }
 0xbcf   :  { %v1760_v6 = vmul.f32 %v7143_v45, %v6957_v4  ;;  %v1388_v4 = vmul.f32 %v7045_v36, %v6997_v32 }
 0xbd1   :  { %v1761_v47 = vadd.f32 %v1760_v6, %v1758_v53 }
 0xbd3   :  { %1764 = vrot.lane.b32.xlu0 %v1761_v47, %s6482_s22 }
 0xbf4   :  { %v7150_v57 = vpop.permute.xlu0 %1963 }
 0xbf5   :  { %v1966_v61 = vmul.f32 %v7150_v57, %v7141_v8 }
 0xbf9   :  { %v7152_v58 = vpop.permute.xlu0 %1969 }
 0xbfa   :  { %v1972_v48 = vmul.f32 %v7152_v58, %v7143_v45 }
 0xbfc   :  { %v1973_v49 = vadd.f32 %v1972_v48, %v1966_v61 }
 0xbfe   :  { %1975 = vrot.lane.b32.xlu0 %v1973_v49, %s6482_s22  ;;  %v1841_v56 = vpop.permute.xlu0 %1840 }
 0xbff   :  { %v7159_v50 = vmul.f32 %v1841_v56, %v1162_v54 }
 0xc01   :  { %5698 = vmatmul.mubr.msk.f32.vlgmr.msra.gmra.mrb[16].mxu0 %vm338_vm7, %v7159_v50 }
 0xc02   :  { %6056 = vmatpush3.bf16.msra.mxu0 %v6644_v27  ;;  %1390 = vrot.lane.b32.xlu0 %v1388_v4, %s6482_s22 }
 0xc03   :  { %6057 = vmatprep.subr.bf16.mxu0 %v6478_v34  ;;  %5719 = vmatprep.mubr.msk.f32.mxu0 %vm6479_vm5, %v6480_v46 }
 0xc06   :  { %6059 = vmatpush3.bf16.msra.mxu0 %v6677_v38 }
 0xc07   :  { %6067 = vmatprep.subr.bf16.mxu0 %v6785_v52 }
 0xc09   :  { %5720 = vmatmul.mubr.msk.f32.vlgmr.msra.gmra.mrb[18].mxu0 %vm338_vm7, %v7064_v22 }
 0xc0a   :  { %6069 = vmatpush3.bf16.msra.mxu0 %v6785_v52 }
 0xc0b   :  { %6071 = vmatprep.subr.bf16.mxu0 %v6793_v55 }
 0xc0e   :  { %6073 = vmatpush3.bf16.msra.mxu0 %v6793_v55 }
 0xc0f   :  { %6080 = vmatprep.subr.bf16.mxu0 %v6478_v34 }
 0xc45   :  { %v1765_v51 = vpop.permute.xlu0 %1764 }
 0xc46   :  { %5687 = vmatmul.mubr.msk.f32.vlgmr.msra.gmra.mrb[16].mxu1 %vm338_vm7, %v1765_v51 }
 0xc47   :  { %6050 = vmatpush3.bf16.msra.mxu1 %v6667_v35  ;;  %5708 = vmatprep.mubr.msk.f32.mxu1 %vm6479_vm5, %v6480_v46 }
 0xc48   :  { %6051 = vmatprep.subr.bf16.mxu1 %v6478_v34 }
 0xc4b   :  { %6053 = vmatpush3.bf16.msra.mxu1 %v6700_v44 }
 0xc4c   :  { %6060 = vmatprep.subr.bf16.mxu1 %v6478_v34 }
 0xc70   :  { %v1976_v22 = vpop.permute.xlu0 %1975 }
 0xc71   :  { %5709 = vmatmul.mubr.msk.f32.vlgmr.msra.gmra.mrb[18].mxu1 %vm338_vm7, %v1976_v22 }
 0xc72   :  { %6062 = vmatpush3.bf16.msra.mxu1 %v6814_v63  ;;  %5730 = vmatprep.mubr.msk.f32.mxu1 %vm6479_vm5, %v6480_v46 }
 0xc73   :  { %6063 = vmatprep.subr.bf16.mxu1 %v6478_v34 }
 0xc74   :  { %v1391_v15 = vpop.permute.xlu0 %1390 }
 0xc75   :  { %v1393_v54 = vsel %vm338_vm7, %v1391_v15, 0.0 }
 0xc76   :  { %1394 = vadd.xlane.f32.xlu0 %v1393_v54  ;;  %6065 = vmatpush3.bf16.msra.mxu1 %v6825_v5  ;;  %v1931_v54 = vld [vmem:[#allocation4 + $0x10] sm:$0xff] }
 0xc77   :  { %6074 = vmatprep.subr.bf16.mxu1 %v6478_v34 }
 0xcd4   :  { %v1913_v1 = vpop.f32.mrb[16].mxu0 }
 0xcd5   :  { %v5699_v20 = vpop.f32.mrb[17].mxu0 }
 0xcdc   :  { %v2118_v62 = vpop.f32.mrb[18].mxu0 }
 0xcdd   :  { %v2119_v24 = vadd.f32 %v7196_v39, %v2118_v62  ;;  %v5721_v31 = vpop.f32.mrb[19].mxu0 }
 0xcdf   :  { %2130 = vrot.lane.b32.xlu1 %v2119_v24, %s6481_s9 }
 0xd03   :  { %v1395_v59 = vpop.xlane.xlu0 %1394 }
 0xd04   :  { %1397 = vst.msk [vmem:[#allocation3 + $0x8] sm:$0xff] %vm345_vm12, %v1395_v59 }
 0xd0b   :  { %v7201_v11 = vld [vmem:[#allocation3 + $0x8] sm:$0xff] }
 0xd0c   :  { %v2183_v16 = vsel %vm345_vm12, %v7201_v11, -inf }
 0xd0d   :  { %v2189_v18 = vmax.f32 %v2183_v16, %v7030_v10 }
 0xd0f   :  { %v7207_v25 = vmax.f32 %v7037_v28, %v2189_v18 }
 0xd11   :  { %v2192_v29 = vmax.f32 %v7207_v25, %v7030_v10 }
 0xd13   :  { %v2193_v30 = vsub.f32 %v7032_v19, %v2192_v29  ;;  %v2194_v41 = vsub.f32 %v7201_v11, %v2192_v29 }
 0xd15   :  { %v2199_v42 = vmul.f32 1.442695, %v2193_v30  ;;  %v2201_v33 = vmul.f32 1.442695, %v2194_v41 }
 0xd17   :  { %6274 = vpow2.f32 %v2199_v42 }
 0xd18   :  { %6276 = vpow2.f32 %v2201_v33 }
 0xd19   :  { %v1834_v9 = vpop.f32.mrb[16].mxu1 }
 0xd1a   :  { %v1835_v37 = vadd.f32 %v7006_v40, %v1834_v9  ;;  %v5688_v53 = vpop.f32.mrb[17].mxu1 }
 0xd1c   :  { %v7214_v6 = vadd.f32 %v1913_v1, %v1835_v37 }
 0xd21   :  { %v6275_v47 = vpop.eup %6274 }
 0xd22   :  { %v6277_v28 = vpop.eup %6276  ;;  %v2217_v61 = vsel %vm345_vm12, %v6275_v47, 0.0 }
 0xd23   :  { %v2218_v48 = vsel %vm345_vm12, %v6277_v28, 0.0 }
 0xd24   :  { %v2219_v49 = vadd.f32 %v2218_v48, %v2217_v61 }
 0xd26   :  { %v2228_v56 = vmax.f32 %v2219_v49, 1e-30 }
 0xd28   :  { %6278 = vrcp.f32 %v2228_v56 }
 0xd32   :  { %v6279_v4 = vpop.eup %6278 }
 0xd33   :  { %v2232_v51 = vmul.f32 0.0, %v6279_v4  ;;  %v2230_v22 = vmul.f32 %v6279_v4, %v6275_v47  ;;  %v2231_v15 = vmul.f32 %v6279_v4, %v6277_v28 }
 0xd35   :  { %2258 = vperm.xlu0 %6225, %v2232_v51  }
 0xd44   :  { %v2045_v20 = vpop.f32.mrb[18].mxu1 }
 0xd45   :  { %v2049_v40 = vadd.f32 %v2045_v20, %v1931_v54  ;;  %v5710_v62 = vpop.f32.mrb[19].mxu1  ;;  %v7251_v54 = vld [vmem:[#allocation2] sm:$0xff] }
 0xd47   :  { %v2122_v1 = vadd.f32 %v2119_v24, %v2049_v40 }
 0xd49   :  { %v5290_v31 = vmul.f32 -1.442695, %v2122_v1 }
 0xd4b   :  { %6280 = vpow2.f32 %v5290_v31  ;;  %v2173_v31 = vld [vmem:[#allocation2 + $0x18] sm:$0xff] }
 0xd51   :  { %v2131_v29 = vpop.permute.xlu1 %2130 }
 0xd55   :  { %v6281_v59 = vpop.eup %6280 }
 0xd56   :  { %v2126_v16 = vadd.f32 1.0, %v6281_v59 }
 0xd58   :  { %6282 = vrcp.f32 %v2126_v16 }
 0xd62   :  { %v6283_v18 = vpop.eup %6282 }
 0xd63   :  { %v2133_v30 = vmul.f32 %v6283_v18, %v2131_v29  ;;  %v2140_v24 = vsub.f32 1.0, %v6283_v18  ;;  %v2146_v37 = vmul.f32 %v6283_v18, %v7045_v36  ;;  %v7240_v36 = vld [vmem:[%s7957_s23 + $0x18] sm:$0xff] }
 0xd64   :  { %v2704_v48 = vsel %vm387_vm0, %v7240_v36, -inf }
 0xd65   :  { %2135 = vrot.lane.b32.xlu1 %v2133_v30, %s6481_s9  ;;  %v6415_v30 = vld [vmem:[#allocation2 + $0x20] sm:$0xff] }
 0xdb4   :  { %v2259_v1 = vpop.permute.xlu0 %2258 }
 0xdd7   :  { %v2136_v41 = vpop.permute.xlu1 %2135 }
 0xdd8   :  { %v2138_v42 = vadd.f32 %v2136_v41, %v2049_v40  ;;  %v2270_v41 = vmul.f32 %v6415_v30, %v2259_v1  ;;  %v7277_v1 = vld [vmem:[%s7939_s13] ss:$0 sm:$0xff] }
 0xdda   :  { %6284 = vtanh.f32 %v2138_v42 }
 0xde4   :  { %v6285_v33 = vpop.eup %6284 }
 0xde5   :  { %2142 = vrot.lane.b32.xlu1 %v6285_v33, %s6482_s22  ;;  %v7258_v33 = vld [vmem:[#allocation2 + $0x28] sm:$0xff] }
 0xde9   :  { %2359 = vrot.lane.b32.xlu1 %v7141_v8, %s6482_s22 }
 0xded   :  { %2361 = vrot.lane.b32.xlu1 %v7143_v45, %s6482_s22 }
 0xdf1   :  { %2238 = vperm.xlu1 %6214, %v2230_v22  }
 0xdf5   :  { %2243 = vperm.xlu1 %6214, %v2231_v15  }
 0xdf9   :  { %2248 = vperm.xlu1 %6214, %v2232_v51  }
 0xe57   :  { %v2143_v9 = vpop.permute.xlu1 %2142 }
 0xe58   :  { %v2145_v53 = vmul.f32 %v2143_v9, %v2140_v24 }
 0xe5a   :  { %v7225_v47 = vadd.f32 %v2146_v37, %v2145_v53  ;;  %v2279_v53 = vsel %vm338_vm7, %v2270_v41, 0.0 }
 0xe5b   :  { %v2360_v28 = vpop.permute.xlu1 %2359 }
 0xe5c   :  { %2149 = vrot.lane.b32.xlu1 %v7225_v47, %s6482_s22  ;;  %5741 = vmatprep.mubr.msk.f32.mxu0 %vm338_vm7, %v2360_v28 }
 0xe5f   :  { %v2362_v61 = vpop.permute.xlu1 %2361 }
 0xe60   :  { %2253 = vperm.xlu1 %6214, %v2232_v51   ;;  %5742 = vmatmul.mubr.msk.f32.vlgmr.msra.gmra.mrb[20].mxu0 %vm338_vm7, %v2362_v61 }
 0xe61   :  { %6082 = vmatpush3.bf16.msra.mxu0 %v6904_v7  ;;  %5763 = vmatprep.mubr.msk.f32.mxu0 %vm6479_vm5, %v6480_v46 }
 0xe62   :  { %6083 = vmatprep.subr.bf16.mxu0 %v6478_v34 }
 0xe64   :  { %2263 = vperm.xlu1 %6214, %v2232_v51  }
 0xe65   :  { %6085 = vmatpush3.bf16.msra.mxu0 %v6915_v12 }
 0xe66   :  { %6092 = vmatprep.subr.bf16.mxu0 %v6478_v34 }
 0xe70   :  { %v2239_v49 = vpop.permute.xlu1 %2238 }
 0xe71   :  { %v2266_v20 = vmul.f32 %v2239_v49, %v7251_v54 }
 0xe73   :  { %v2272_v59 = vsel %vm338_vm7, %v2266_v20, 0.0 }
 0xe74   :  { %v2244_v56 = vpop.permute.xlu1 %2243 }
 0xe75   :  { %v2267_v15 = vmul.f32 %v2244_v56, %v7068_v21 }
 0xe77   :  { %v2273_v62 = vsel %vm338_vm7, %v2267_v15, 0.0 }
 0xe78   :  { %v2249_v4 = vpop.permute.xlu1 %2248  ;;  %v2274_v18 = vadd.f32 %v2273_v62, %v2272_v59 }
 0xe88   :  { %2705 = vmax.xlane.f32.xlu1 %v2704_v48 }
 0xece   :  { %v7244_v22 = vpop.permute.xlu1 %2149 }
 0xecf   :  { %2153 = vst.msk [vmem:[#allocation2 + $0x10] sm:$0xff] %vm338_vm7, %v7244_v22 }
 0xed6   :  { %v7248_v51 = vld [vmem:[#allocation2 + $0x10] sm:$0xff] }
 0xed7   :  { %v2268_v40 = vmul.f32 %v2249_v4, %v7248_v51 }
 0xed9   :  { %v2275_v16 = vsel %vm338_vm7, %v2268_v40, 0.0 }
 0xeda   :  { %v2276_v21 = vadd.f32 %v2275_v16, %v2274_v18  ;;  %v2498_v18 = vsub.f32 1.0, %v7058_v60 }
 0xedf   :  { %v2254_v29 = vpop.permute.xlu1 %2253 }
 0xee0   :  { %v2269_v42 = vmul.f32 %v2254_v29, %v2173_v31 }
 0xee2   :  { %v2277_v24 = vsel %vm338_vm7, %v2269_v42, 0.0 }
 0xee3   :  { %v2278_v9 = vadd.f32 %v2277_v24, %v2276_v21  ;;  %v2264_v37 = vpop.permute.xlu1 %2263  ;;  %v1933_v21 = vld [vmem:[#allocation5 + $0x10] sm:$0xff] }
 0xee4   :  { %v2271_v28 = vmul.f32 %v2264_v37, %v7258_v33 }
 0xee5   :  { %v2280_v61 = vadd.f32 %v2279_v53, %v2278_v9 }
 0xee6   :  { %v2281_v48 = vsel %vm338_vm7, %v2271_v28, 0.0 }
 0xee7   :  { %v2282_v49 = vadd.f32 %v2281_v48, %v2280_v61 }
 0xee9   :  { %5731 = vmatmul.mubr.msk.f32.vlgmr.msra.gmra.mrb[20].mxu1 %vm338_vm7, %v2282_v49 }
 0xeea   :  { %6076 = vmatpush3.bf16.msra.mxu1 %v6930_v23  ;;  %5752 = vmatprep.mubr.msk.f32.mxu1 %vm6479_vm5, %v6480_v46 }
 0xeeb   :  { %6077 = vmatprep.subr.bf16.mxu1 %v6478_v34 }
 0xeee   :  { %6079 = vmatpush3.bf16.msra.mxu1 %v6936_v26 }
 0xeef   :  { %6086 = vmatprep.subr.bf16.mxu1 %v6478_v34 }
 0xf15   :  { %v2706_v56 = vpop.xlane.xlu1 %2705 }
 0xf16   :  { %vm2707_vm1 = vcmp.ge.f32.partialorder %v7240_v36, %v2706_v56 }
 0xf17   :  { %v2708_v4 = vsel %vm2707_vm1, %v6603_v3, 2 }
 0xf18   :  { %v2709_v15 = vsel %vm387_vm0, %v2708_v4, 2147483647 }
 0xf19   :  { %v2711_v20 = vshra.s32 %v2709_v15, 16 }
 0xf1b   :  { %v2713_v40 = vcvt.s32.f32 %v2711_v20 }
 0xf1d   :  { %2714 = vmin.xlane.f32.xlu0 %v2713_v40 }
 0xf33   :  { %v5743_v62 = vpop.f32.mrb[20].mxu0 }
 0xf34   :  { %v2439_v31 = vadd.f32 %v7277_v1, %v5743_v62  ;;  %v2433_v59 = vpop.f32.mrb[21].mxu0 }
 0xf35   :  { %v2434_v16 = vadd.f32 %v7277_v1, %v2433_v59 }
 0xf36   :  { %2460 = vrot.lane.b32.xlu0 %v2439_v31, %s6481_s9 }
 0xf37   :  { %2458 = vrot.lane.b32.xlu1 %v2434_v16, %s6481_s9 }
 0xf3a   :  { %2495 = vrot.lane.b32.xlu0 %v7058_v60, %s6483_s2 }
 0xf3e   :  { %2502 = vperm.xlu0 %6225, %v2498_v18  }
 0xfa9   :  { %v2459_v62 = vpop.permute.xlu1 %2458 }
 0xfaa   :  { %v2715_v29 = vpop.xlane.xlu0 %2714 }
 0xfab   :  { %vm2716_vm2 = vcmp.eq.f32.partialorder %v2713_v40, %v2715_v29 }
 0xfae   :  { %v2461_v30 = vpop.permute.xlu0 %2460 }
 0xfb2   :  { %v2496_v41 = vpop.permute.xlu0 %2495 }
 0xfb3   :  { %v2499_v42 = vsub.f32 1.0, %v2496_v41 }
 0xfb5   :  { %2507 = vperm.xlu0 %6225, %v2499_v42  }
 0xfb9   :  { %2513 = vperm.xlu0 %6225, %v7058_v60  }
 0xfbc   :  { %v2352_v24 = vpop.f32.mrb[20].mxu1 }
 0xfbd   :  { %v2356_v9 = vadd.f32 %v2352_v24, %v1933_v21  ;;  %2517 = vperm.xlu0 %6225, %v2496_v41   ;;  %v5732_v37 = vpop.f32.mrb[21].mxu1 }
 0xfbf   :  { %v2442_v53 = vadd.f32 %v2434_v16, %v2356_v9  ;;  %v2443_v28 = vadd.f32 %v2439_v31, %v2356_v9  ;;  %v2710_v31 = vand.u32 65535, %v2709_v15 }
 0xfc1   :  { %v5294_v61 = vmul.f32 -1.442695, %v2442_v53  ;;  %v5295_v48 = vmul.f32 -1.442695, %v2443_v28  ;;  %6226 = vset.pattern.permute.xlu0 %v6476_v13  ;;  %v2712_v41 = vcvt.s32.f32 %v2710_v31 }
 0xfc3   :  { %6286 = vpow2.f32 %v5294_v61  ;;  %v2717_v42 = vsel %vm2716_vm2, %v2712_v41, inf }
 0xfc4   :  { %6288 = vpow2.f32 %v5295_v48 }
 0xfcd   :  { %v6287_v49 = vpop.eup %6286 }
 0xfce   :  { %v6289_v56 = vpop.eup %6288  ;;  %v2450_v4 = vadd.f32 1.0, %v6287_v49 }
 0xfcf   :  { %v2451_v20 = vadd.f32 1.0, %v6289_v56 }
 0xfd0   :  { %6290 = vrcp.f32 %v2450_v4  ;;  %v7299_v4 = vld [vmem:[%s7961_s11 + $0x10] sm:$0xff] }
 0xfd1   :  { %6292 = vrcp.f32 %v2451_v20  ;;  %v2503_v20 = vpop.permute.xlu0 %2502 }
 0xfda   :  { %v6291_v60 = vpop.eup %6290 }
 0xfdb   :  { %v2464_v59 = vmul.f32 %v6291_v60, %v2459_v62  ;;  %v6293_v18 = vpop.eup %6292  ;;  %v2478_v31 = vsub.f32 1.0, %v6291_v60 }
 0xfdc   :  { %v2465_v16 = vmul.f32 %v6293_v18, %v2461_v30  ;;  %v2721_v30 = vcvt.f32.s32 %v2715_v29  ;;  %v2528_v29 = vsub.f32 1.0, %v7299_v4 }
 0xfdd   :  { %2468 = vrot.lane.b32.xlu1 %v2464_v59, %s6481_s9 }
 0xfde   :  { %v2722_v49 = vshll.u32 %v2721_v30, 16 }
 0xfe1   :  { %2470 = vrot.lane.b32.xlu1 %v2465_v16, %s6481_s9 }
0x1005   :  { %2718 = vmin.xlane.f32.xlu1 %v2717_v42 }
0x1034   :  { %v2508_v62 = vpop.permute.xlu0 %2507 }
0x1038   :  { %v2514_v59 = vpop.permute.xlu0 %2513 }
0x103c   :  { %v2518_v16 = vpop.permute.xlu0 %2517 }
0x104f   :  { %v2469_v21 = vpop.permute.xlu1 %2468 }
0x1050   :  { %v2474_v24 = vadd.f32 %v2469_v21, %v2356_v9  ;;  %v2479_v21 = vsub.f32 1.0, %v6293_v18 }
0x1052   :  { %6294 = vtanh.f32 %v2474_v24 }
0x1053   :  { %v2471_v37 = vpop.permute.xlu1 %2470 }
0x1054   :  { %v2475_v53 = vadd.f32 %v2471_v37, %v2356_v9  ;;  %v1920_v9 = vsub.f32 1.0, %v1762_v43  ;;  %v2490_v43 = vmul.f32 %v6291_v60, %v7141_v8 }
0x1056   :  { %6296 = vtanh.f32 %v2475_v53  ;;  %v2491_v53 = vmul.f32 %v6293_v18, %v7143_v45 }
0x105c   :  { %v6295_v28 = vpop.eup %6294 }
0x105d   :  { %2482 = vrot.lane.b32.xlu0 %v6295_v28, %s6482_s22 }
0x1060   :  { %v6297_v61 = vpop.eup %6296 }
0x1061   :  { %2484 = vrot.lane.b32.xlu0 %v6297_v61, %s6482_s22  ;;  %v2510_v61 = vmul.f32 %v2503_v20, %v7141_v8  ;;  %v1918_v8 = vadd.f32 %v7115_v0, %v7214_v6  ;;  %v2154_v0 = vmul.f32 %v7225_v47, %v6997_v32 }
0x1063   :  { %6298 = vtanh.f32 %v1918_v8 }
0x1092   :  { %v2719_v48 = vpop.xlane.xlu1 %2718 }
0x1093   :  { %v2720_v15 = vcvt.f32.s32 %v2719_v48  ;;  %v2511_v48 = vmul.f32 %v2508_v62, %v7143_v45 }
0x1095   :  { %v2723_v40 = vadd.s32 %v2722_v49, %v2720_v15 }
0x1097   :  { %vm2724_vm3 = vcmp.eq.s32.totalorder %v6603_v3, %v2723_v40 }
0x1098   :  { %v5300_v56 = vsel %vm2724_vm3, 1.0, %v6480_v46 }
0x1099   :  { %2735 = vperm.xlu0 %6226, %v5300_v56   ;;  %2729 = vperm.xlu1 %6214, %v5300_v56  }
0x109d   :  { %6227 = vset.pattern.permute.xlu0 %v6477_v14 }
0x109e   :  { %1923 = vperm.xlu0 %6227, %v1920_v9  }
0x10a2   :  { %2606 = vperm.xlu0 %6227, %v2528_v29  }
0x10cf   :  { %v2483_v17 = vpop.permute.xlu0 %2482 }
0x10d0   :  { %v2488_v41 = vmul.f32 %v2483_v17, %v2478_v31 }
0x10d2   :  { %v2492_v42 = vadd.f32 %v2490_v43, %v2488_v41 }
0x10d3   :  { %v2485_v24 = vpop.permute.xlu0 %2484 }
0x10d4   :  { %v2520_v37 = vmul.f32 %v2514_v59, %v2492_v42  ;;  %v2489_v28 = vmul.f32 %v2485_v24, %v2479_v21  ;;  %v6299_v59 = vpop.eup %6298 }
0x10d6   :  { %v2493_v30 = vadd.f32 %v2491_v53, %v2489_v28  ;;  %v7309_v49 = vadd.f32 %v2520_v37, %v2510_v61 }
0x10d8   :  { %v2521_v15 = vmul.f32 %v2518_v16, %v2493_v30  ;;  %v2524_v60 = vmul.f32 %v7309_v49, %v7150_v57  ;;  %v7371_v30 = vld [vmem:[%s7941_s15] ss:$0 sm:$0xff] }
0x10da   :  { %v7311_v40 = vadd.f32 %v2521_v15, %v2511_v48 }
0x10dc   :  { %v2526_v56 = vmul.f32 %v7311_v40, %v7152_v58 }
0x10de   :  { %v2527_v9 = vadd.f32 %v2526_v56, %v2524_v60 }
0x10e0   :  { %2530 = vrot.lane.b32.xlu1 %v2527_v9, %s6482_s22 }
0x1118   :  { %v7320_v18 = vpop.permute.xlu0 %2735  ;;  %v7322_v45 = vpop.permute.xlu1 %2729 }
0x1119   :  { %v2738_v20 = vmul.f32 %v7320_v18, %v7311_v40  ;;  %v2732_v57 = vmul.f32 %v7322_v45, %v7309_v49 }
0x111b   :  { %v2739_v62 = vadd.f32 %v2738_v20, %v2732_v57 }
0x111d   :  { %v1924_v58 = vpop.permute.xlu0 %1923  ;;  %2741 = vrot.lane.b32.xlu0 %v2739_v62, %s6482_s22 }
0x111e   :  { %v1926_v16 = vmul.f32 %v6299_v59, %v1924_v58 }
0x1120   :  { %v1927_v6 = vadd.f32 %v1926_v16, %v7159_v50 }
0x1121   :  { %v2607_v31 = vpop.permute.xlu0 %2606  ;;  %2156 = vrot.lane.b32.xlu0 %v2154_v0, %s6482_s22 }
0x1122   :  { %1929 = vst.msk [vmem:[#allocation6 + $0x8] sm:$0xff] %vm338_vm7, %v1927_v6  ;;  %v7334_v17 = vmul.f32 %v2607_v31, %v1927_v6 }
0x1124   :  { %5764 = vmatmul.mubr.msk.f32.vlgmr.msra.gmra.mrb[22].mxu0 %vm338_vm7, %v7334_v17 }
0x1125   :  { %6094 = vmatpush3.bf16.msra.mxu0 %v6644_v27  ;;  %5785 = vmatprep.mubr.msk.f32.mxu0 %vm6479_vm5, %v6480_v46 }
0x1126   :  { %6095 = vmatprep.subr.bf16.mxu0 %v6478_v34 }
0x1129   :  { %6097 = vmatpush3.bf16.msra.mxu0 %v6677_v38 }
0x112a   :  { %6105 = vmatprep.subr.bf16.mxu0 %v6785_v52 }
0x112c   :  { %5786 = vmatmul.mubr.msk.f32.vlgmr.msra.gmra.mrb[24].mxu0 %vm338_vm7, %v7244_v22 }
0x112d   :  { %6107 = vmatpush3.bf16.msra.mxu0 %v6785_v52 }
0x112e   :  { %6109 = vmatprep.subr.bf16.mxu0 %v6793_v55 }
0x1131   :  { %6111 = vmatpush3.bf16.msra.mxu0 %v6793_v55 }
0x1132   :  { %6118 = vmatprep.subr.bf16.mxu0 %v6478_v34 }
0x1152   :  { %v2531_v50 = vpop.permute.xlu1 %2530 }
0x1153   :  { %5753 = vmatmul.mubr.msk.f32.vlgmr.msra.gmra.mrb[22].mxu1 %vm338_vm7, %v2531_v50 }
0x1154   :  { %6088 = vmatpush3.bf16.msra.mxu1 %v6667_v35  ;;  %5774 = vmatprep.mubr.msk.f32.mxu1 %vm6479_vm5, %v6480_v46 }
0x1155   :  { %6089 = vmatprep.subr.bf16.mxu1 %v6478_v34 }
0x1158   :  { %6091 = vmatpush3.bf16.msra.mxu1 %v6700_v44 }
0x1159   :  { %6098 = vmatprep.subr.bf16.mxu1 %v6478_v34 }
0x118f   :  { %v2742_v22 = vpop.permute.xlu0 %2741 }
0x1190   :  { %5775 = vmatmul.mubr.msk.f32.vlgmr.msra.gmra.mrb[24].mxu1 %vm338_vm7, %v2742_v22 }
0x1191   :  { %6100 = vmatpush3.bf16.msra.mxu1 %v6814_v63  ;;  %5796 = vmatprep.mubr.msk.f32.mxu1 %vm6479_vm5, %v6480_v46 }
0x1192   :  { %6101 = vmatprep.subr.bf16.mxu1 %v6478_v34 }
0x1193   :  { %v2157_v43 = vpop.permute.xlu0 %2156 }
0x1194   :  { %v2159_v41 = vsel %vm338_vm7, %v2157_v43, 0.0 }
0x1195   :  { %2160 = vadd.xlane.f32.xlu0 %v2159_v41  ;;  %6103 = vmatpush3.bf16.msra.mxu1 %v6825_v5 }
0x1196   :  { %6112 = vmatprep.subr.bf16.mxu1 %v6478_v34 }
0x11f7   :  { %v2679_v42 = vpop.f32.mrb[22].mxu0 }
0x11f8   :  { %v5765_v21 = vpop.f32.mrb[23].mxu0 }
0x11ff   :  { %v2884_v24 = vpop.f32.mrb[24].mxu0 }
0x1200   :  { %v2885_v37 = vadd.f32 %v7196_v39, %v2884_v24  ;;  %v5787_v53 = vpop.f32.mrb[25].mxu0 }
0x1202   :  { %2896 = vrot.lane.b32.xlu1 %v2885_v37, %s6481_s9 }
0x1222   :  { %v2161_v28 = vpop.xlane.xlu0 %2160 }
0x1223   :  { %2163 = vst.msk [vmem:[#allocation3 + $0x10] sm:$0xff] %vm345_vm12, %v2161_v28 }
0x1226   :  { %v2600_v61 = vpop.f32.mrb[22].mxu1 }
0x1227   :  { %v2601_v48 = vadd.f32 %v7371_v30, %v2600_v61  ;;  %v5754_v15 = vpop.f32.mrb[23].mxu1  ;;  %v2697_v61 = vld [vmem:[#allocation4 + $0x18] sm:$0xff] }
0x1229   :  { %v7374_v60 = vadd.f32 %v2679_v42, %v2601_v48 }
0x122a   :  { %v7376_v56 = vld [vmem:[#allocation3 + $0x10] sm:$0xff] }
0x122b   :  { %v7380_v39 = vsel %vm345_vm12, %v7376_v56, -inf }
0x122c   :  { %v2957_v9 = vmax.f32 %v7380_v39, %v7030_v10 }
0x122e   :  { %v2958_v8 = vmax.f32 %v7207_v25, %v2957_v9 }
0x1230   :  { %v2959_v20 = vsub.f32 %v7032_v19, %v2958_v8  ;;  %v2960_v57 = vsub.f32 %v7201_v11, %v2958_v8  ;;  %v2961_v62 = vsub.f32 %v7376_v56, %v2958_v8 }
0x1232   :  { %v2965_v59 = vmul.f32 1.442695, %v2959_v20  ;;  %v2967_v58 = vmul.f32 1.442695, %v2960_v57  ;;  %v2969_v16 = vmul.f32 1.442695, %v2961_v62 }
0x1234   :  { %6300 = vpow2.f32 %v2965_v59 }
0x1235   :  { %6302 = vpow2.f32 %v2967_v58 }
0x1236   :  { %6304 = vpow2.f32 %v2969_v16 }
0x123e   :  { %v6301_v0 = vpop.eup %6300 }
0x123f   :  { %v6303_v6 = vpop.eup %6302  ;;  %v2983_v31 = vsel %vm345_vm12, %v6301_v0, 0.0 }
0x1240   :  { %v6305_v50 = vpop.eup %6304  ;;  %v2984_v22 = vsel %vm345_vm12, %v6303_v6, 0.0 }
0x1241   :  { %v2985_v43 = vadd.f32 %v2984_v22, %v2983_v31  ;;  %v2986_v19 = vsel %vm345_vm12, %v6305_v50, 0.0 }
0x1243   :  { %v2987_v41 = vadd.f32 %v2986_v19, %v2985_v43 }
0x1245   :  { %v2994_v11 = vmax.f32 %v2987_v41, 1e-30 }
0x1247   :  { %6306 = vrcp.f32 %v2994_v11 }
0x1251   :  { %v6307_v42 = vpop.eup %6306 }
0x1252   :  { %v2999_v21 = vmul.f32 0.0, %v6307_v42  ;;  %v2996_v24 = vmul.f32 %v6307_v42, %v6301_v0  ;;  %v2997_v53 = vmul.f32 %v6307_v42, %v6303_v6  ;;  %v2998_v28 = vmul.f32 %v6307_v42, %v6305_v50 }
0x1254   :  { %3024 = vperm.xlu0 %6227, %v2999_v21  }
0x1263   :  { %v2811_v48 = vpop.f32.mrb[24].mxu1 }
0x1264   :  { %v2815_v15 = vadd.f32 %v2811_v48, %v2697_v61  ;;  %v5776_v9 = vpop.f32.mrb[25].mxu1 }
0x1266   :  { %v2888_v8 = vadd.f32 %v2885_v37, %v2815_v15 }
0x1268   :  { %v5303_v20 = vmul.f32 -1.442695, %v2888_v8 }
0x126a   :  { %6308 = vpow2.f32 %v5303_v20  ;;  %v2940_v20 = vld [vmem:[#allocation2 + $0x20] sm:$0xff] }
0x1274   :  { %v6309_v57 = vpop.eup %6308  ;;  %v2897_v58 = vpop.permute.xlu1 %2896 }
0x1275   :  { %v2892_v62 = vadd.f32 1.0, %v6309_v57 }
0x1277   :  { %6310 = vrcp.f32 %v2892_v62 }
0x1281   :  { %v6311_v59 = vpop.eup %6310 }
0x1282   :  { %v2899_v16 = vmul.f32 %v6311_v59, %v2897_v58  ;;  %v2906_v37 = vsub.f32 1.0, %v6311_v59  ;;  %v2912_v22 = vmul.f32 %v6311_v59, %v7225_v47  ;;  %v7413_v47 = vld [vmem:[%s7957_s23 + $0x20] sm:$0xff] }
0x1283   :  { %v3470_v42 = vsel %vm387_vm0, %v7413_v47, -inf }
0x1284   :  { %2901 = vrot.lane.b32.xlu1 %v2899_v16, %s6481_s9 }
0x12d3   :  { %v3025_v57 = vpop.permute.xlu0 %3024 }
0x12f6   :  { %v2902_v31 = vpop.permute.xlu1 %2901 }
0x12f7   :  { %v2904_v0 = vadd.f32 %v2902_v31, %v2815_v15 }
0x12f9   :  { %6312 = vtanh.f32 %v2904_v0  ;;  %v3036_v0 = vmul.f32 %v3025_v57, %v2940_v20  ;;  %v3264_v20 = vsub.f32 1.0, %v7240_v36 }
0x1303   :  { %v6313_v6 = vpop.eup %6312 }
0x1304   :  { %2908 = vrot.lane.b32.xlu1 %v6313_v6, %s6482_s22 }
0x1308   :  { %3125 = vrot.lane.b32.xlu1 %v7309_v49, %s6482_s22 }
0x130c   :  { %3127 = vrot.lane.b32.xlu1 %v7311_v40, %s6482_s22 }
0x1310   :  { %3004 = vperm.xlu1 %6214, %v2996_v24  }
0x1314   :  { %3009 = vperm.xlu1 %6214, %v2997_v53  }
0x1318   :  { %3014 = vperm.xlu1 %6214, %v2998_v28  }
0x1376   :  { %v2909_v50 = vpop.permute.xlu1 %2908 }
0x1377   :  { %v2911_v43 = vmul.f32 %v2909_v50, %v2906_v37 }
0x1379   :  { %v7398_v19 = vadd.f32 %v2912_v22, %v2911_v43  ;;  %v3045_v22 = vsel %vm338_vm7, %v3036_v0, 0.0 }
0x137a   :  { %v3126_v41 = vpop.permute.xlu1 %3125 }
0x137b   :  { %2915 = vrot.lane.b32.xlu1 %v7398_v19, %s6482_s22  ;;  %5807 = vmatprep.mubr.msk.f32.mxu0 %vm338_vm7, %v3126_v41 }
0x137e   :  { %v3128_v11 = vpop.permute.xlu1 %3127 }
0x137f   :  { %3019 = vperm.xlu1 %6214, %v2999_v21   ;;  %5808 = vmatmul.mubr.msk.f32.vlgmr.msra.gmra.mrb[26].mxu0 %vm338_vm7, %v3128_v11 }
0x1380   :  { %6120 = vmatpush3.bf16.msra.mxu0 %v6904_v7  ;;  %5829 = vmatprep.mubr.msk.f32.mxu0 %vm6479_vm5, %v6480_v46 }
0x1381   :  { %6121 = vmatprep.subr.bf16.mxu0 %v6478_v34 }
0x1383   :  { %3029 = vperm.xlu1 %6214, %v2999_v21   ;;  %v6418_v21 = vld [vmem:[#allocation2 + $0x8] sm:$0xff] }
0x1384   :  { %6123 = vmatpush3.bf16.msra.mxu0 %v6915_v12 }
0x1385   :  { %6130 = vmatprep.subr.bf16.mxu0 %v6478_v34 }
0x138f   :  { %v3005_v24 = vpop.permute.xlu1 %3004 }
0x1390   :  { %v3032_v15 = vmul.f32 %v3005_v24, %v7251_v54 }
0x1392   :  { %v3038_v62 = vsel %vm338_vm7, %v3032_v15, 0.0 }
0x1393   :  { %v3010_v53 = vpop.permute.xlu1 %3009 }
0x1394   :  { %v3033_v48 = vmul.f32 %v6418_v21, %v3010_v53 }
0x1396   :  { %v3039_v8 = vsel %vm338_vm7, %v3033_v48, 0.0 }
0x1397   :  { %v3015_v28 = vpop.permute.xlu1 %3014  ;;  %v3040_v58 = vadd.f32 %v3039_v8, %v3038_v62 }
0x1398   :  { %v3034_v9 = vmul.f32 %v3015_v28, %v7248_v51 }
0x139a   :  { %v3041_v59 = vsel %vm338_vm7, %v3034_v9, 0.0 }
0x139b   :  { %v3042_v37 = vadd.f32 %v3041_v59, %v3040_v58 }
0x13a7   :  { %3471 = vmax.xlane.f32.xlu1 %v3470_v42 }
0x13ed   :  { %v7417_v61 = vpop.permute.xlu1 %2915 }
0x13ee   :  { %2919 = vst.msk [vmem:[#allocation2 + $0x18] sm:$0xff] %vm338_vm7, %v7417_v61 }
0x13f5   :  { %v7426_v16 = vld [vmem:[#allocation2 + $0x18] sm:$0xff] }
0x13fe   :  { %v3020_v31 = vpop.permute.xlu1 %3019 }
0x13ff   :  { %v3035_v6 = vmul.f32 %v3020_v31, %v7426_v16  ;;  %v2699_v31 = vld [vmem:[#allocation5 + $0x18] sm:$0xff] }
0x1401   :  { %v3043_v54 = vsel %vm338_vm7, %v3035_v6, 0.0 }
0x1402   :  { %v3044_v50 = vadd.f32 %v3043_v54, %v3042_v37  ;;  %v3030_v51 = vpop.permute.xlu1 %3029 }
0x1403   :  { %v3037_v43 = vmul.f32 %v3030_v51, %v7258_v33 }
0x1404   :  { %v3046_v41 = vadd.f32 %v3045_v22, %v3044_v50 }
0x1405   :  { %v3047_v11 = vsel %vm338_vm7, %v3037_v43, 0.0 }
0x1406   :  { %v3048_v42 = vadd.f32 %v3047_v11, %v3046_v41 }
0x1408   :  { %5797 = vmatmul.mubr.msk.f32.vlgmr.msra.gmra.mrb[26].mxu1 %vm338_vm7, %v3048_v42 }
0x1409   :  { %6114 = vmatpush3.bf16.msra.mxu1 %v6930_v23  ;;  %5818 = vmatprep.mubr.msk.f32.mxu1 %vm6479_vm5, %v6480_v46 }
0x140a   :  { %6115 = vmatprep.subr.bf16.mxu1 %v6478_v34 }
0x140d   :  { %6117 = vmatpush3.bf16.msra.mxu1 %v6936_v26 }
0x140e   :  { %6124 = vmatprep.subr.bf16.mxu1 %v6478_v34 }
0x1434   :  { %v3472_v24 = vpop.xlane.xlu1 %3471 }
0x1435   :  { %vm3473_vm4 = vcmp.ge.f32.partialorder %v7413_v47, %v3472_v24 }
0x1436   :  { %v3474_v33 = vsel %vm3473_vm4, %v6603_v3, 2 }
0x1437   :  { %v3475_v53 = vsel %vm387_vm0, %v3474_v33, 2147483647 }
0x1438   :  { %v3477_v28 = vshra.s32 %v3475_v53, 16 }
0x143a   :  { %v3479_v21 = vcvt.s32.f32 %v3477_v28 }
0x143c   :  { %3480 = vmin.xlane.f32.xlu0 %v3479_v21 }
0x1452   :  { %v5809_v48 = vpop.f32.mrb[26].mxu0 }
0x1453   :  { %v3205_v15 = vadd.f32 %v7277_v1, %v5809_v48  ;;  %v3199_v9 = vpop.f32.mrb[27].mxu0  ;;  %v3476_v48 = vand.u32 65535, %v3475_v53 }
0x1454   :  { %v3200_v8 = vadd.f32 %v7277_v1, %v3199_v9 }
0x1455   :  { %3226 = vrot.lane.b32.xlu0 %v3205_v15, %s6481_s9 }
0x1456   :  { %3224 = vrot.lane.b32.xlu1 %v3200_v8, %s6481_s9 }
0x1459   :  { %3261 = vrot.lane.b32.xlu0 %v7240_v36, %s6483_s2 }
0x145d   :  { %3268 = vperm.xlu0 %6227, %v3264_v20  }
0x14c8   :  { %v3225_v42 = vpop.permute.xlu1 %3224 }
0x14c9   :  { %v3481_v57 = vpop.xlane.xlu0 %3480 }
0x14ca   :  { %vm3482_vm6 = vcmp.eq.f32.partialorder %v3479_v21, %v3481_v57 }
0x14cd   :  { %v3227_v62 = vpop.permute.xlu0 %3226 }
0x14d1   :  { %v3262_v59 = vpop.permute.xlu0 %3261 }
0x14d2   :  { %v3265_v58 = vsub.f32 1.0, %v3262_v59 }
0x14d4   :  { %3273 = vperm.xlu0 %6227, %v3265_v58  }
0x14d8   :  { %3279 = vperm.xlu0 %6227, %v7240_v36  }
0x14db   :  { %v3118_v0 = vpop.f32.mrb[26].mxu1 }
0x14dc   :  { %v3122_v1 = vadd.f32 %v3118_v0, %v2699_v31  ;;  %3283 = vperm.xlu0 %6227, %v3262_v59   ;;  %v5798_v6 = vpop.f32.mrb[27].mxu1 }
0x14de   :  { %v3208_v37 = vadd.f32 %v3200_v8, %v3122_v1  ;;  %v3209_v54 = vadd.f32 %v3205_v15, %v3122_v1  ;;  %v3478_v15 = vcvt.s32.f32 %v3476_v48 }
0x14e0   :  { %v5307_v50 = vmul.f32 -1.442695, %v3208_v37  ;;  %v5308_v51 = vmul.f32 -1.442695, %v3209_v54  ;;  %6228 = vset.pattern.permute.xlu0 %v6476_v13  ;;  %v3483_v9 = vsel %vm3482_vm6, %v3478_v15, inf  ;;  %vm5080_vm6 = vcmask 62464  }
0x14e2   :  { %6314 = vpow2.f32 %v5307_v50  ;;  %v7463_v50 = vld [vmem:[%s7961_s11 + $0x18] sm:$0xff] }
0x14e3   :  { %6316 = vpow2.f32 %v5308_v51  ;;  %v3269_v51 = vpop.permute.xlu0 %3268 }
0x14ec   :  { %v6315_v22 = vpop.eup %6314 }
0x14ed   :  { %v6317_v43 = vpop.eup %6316  ;;  %v3216_v41 = vadd.f32 1.0, %v6315_v22 }
0x14ee   :  { %v3217_v11 = vadd.f32 1.0, %v6317_v43 }
0x14ef   :  { %6318 = vrcp.f32 %v3216_v41 }
0x14f0   :  { %6320 = vrcp.f32 %v3217_v11 }
0x14f9   :  { %v6319_v36 = vpop.eup %6318 }
0x14fa   :  { %v3230_v24 = vmul.f32 %v6319_v36, %v3225_v42  ;;  %v6321_v33 = vpop.eup %6320  ;;  %v3244_v11 = vsub.f32 1.0, %v6319_v36 }
0x14fb   :  { %v3231_v28 = vmul.f32 %v6321_v33, %v3227_v62  ;;  %v3487_v62 = vcvt.f32.s32 %v3481_v57  ;;  %v3294_v57 = vsub.f32 1.0, %v7463_v50 }
0x14fc   :  { %3234 = vrot.lane.b32.xlu1 %v3230_v24, %s6481_s9 }
0x14fd   :  { %v3488_v37 = vshll.u32 %v3487_v62, 16 }
0x1500   :  { %3236 = vrot.lane.b32.xlu1 %v3231_v28, %s6481_s9  ;;  %v3245_v28 = vsub.f32 1.0, %v6321_v33 }
0x1524   :  { %3484 = vmin.xlane.f32.xlu1 %v3483_v9  ;;  %v3257_v9 = vmul.f32 %v6321_v33, %v7311_v40 }
0x1553   :  { %v3274_v22 = vpop.permute.xlu0 %3273 }
0x1557   :  { %v3280_v43 = vpop.permute.xlu0 %3279 }
0x155b   :  { %v3284_v41 = vpop.permute.xlu0 %3283 }
0x156e   :  { %v3235_v8 = vpop.permute.xlu1 %3234 }
0x156f   :  { %v3240_v20 = vadd.f32 %v3235_v8, %v3122_v1 }
0x1571   :  { %6322 = vtanh.f32 %v3240_v20  ;;  %v3276_v20 = vmul.f32 %v3269_v51, %v7309_v49 }
0x1572   :  { %v3237_v59 = vpop.permute.xlu1 %3236 }
0x1573   :  { %v3241_v58 = vadd.f32 %v3237_v59, %v3122_v1  ;;  %v2686_v1 = vsub.f32 1.0, %v2528_v29  ;;  %v3256_v29 = vmul.f32 %v6319_v36, %v7309_v49  ;;  %v7485_v49 = vld [vmem:[%s7943_s17] ss:$0 sm:$0xff] }
0x1575   :  { %6324 = vtanh.f32 %v3241_v58  ;;  %v3277_v58 = vmul.f32 %v3274_v22, %v7311_v40  ;;  %v2684_v40 = vadd.f32 %v7485_v49, %v7374_v60  ;;  %v2920_v60 = vmul.f32 %v7398_v19, %v6997_v32 }
0x1577   :  { %6326 = vtanh.f32 %v2684_v40  ;;  %v6421_v40 = vld [vmem:[#allocation3] sm:$0xff] }
0x157b   :  { %v6323_v31 = vpop.eup %6322 }
0x157c   :  { %3248 = vrot.lane.b32.xlu0 %v6323_v31, %s6482_s22 }
0x157f   :  { %v6325_v0 = vpop.eup %6324 }
0x1580   :  { %3250 = vrot.lane.b32.xlu0 %v6325_v0, %s6482_s22 }
0x15b1   :  { %v3485_v6 = vpop.xlane.xlu1 %3484 }
0x15b2   :  { %v3486_v53 = vcvt.f32.s32 %v3485_v6 }
0x15b4   :  { %v3489_v21 = vadd.s32 %v3488_v37, %v3486_v53 }
0x15b6   :  { %vm3490_vm8 = vcmp.eq.s32.totalorder %v6603_v3, %v3489_v21 }
0x15b7   :  { %v5313_v54 = vsel %vm3490_vm8, 1.0, %v6480_v46 }
0x15b8   :  { %3501 = vperm.xlu0 %6228, %v5313_v54   ;;  %3495 = vperm.xlu1 %6214, %v5313_v54   ;;  %v6327_v54 = vpop.eup %6326 }
0x15bc   :  { %6229 = vset.pattern.permute.xlu0 %v6477_v14 }
0x15bd   :  { %2689 = vperm.xlu0 %6229, %v2686_v1  }
0x15c1   :  { %3372 = vperm.xlu0 %6229, %v3294_v57  }
0x15ee   :  { %v3249_v4 = vpop.permute.xlu0 %3248 }
0x15ef   :  { %v3254_v42 = vmul.f32 %v3249_v4, %v3244_v11 }
0x15f1   :  { %v3258_v24 = vadd.f32 %v3256_v29, %v3254_v42 }
0x15f2   :  { %v3251_v48 = vpop.permute.xlu0 %3250 }
0x15f3   :  { %v3286_v15 = vmul.f32 %v3280_v43, %v3258_v24  ;;  %v3255_v8 = vmul.f32 %v3251_v48, %v3245_v28  ;;  %v7537_v28 = vld [vmem:[%s7934_s8] ss:$0 sm:$0xff] }
0x15f5   :  { %v3259_v59 = vadd.f32 %v3257_v9, %v3255_v8  ;;  %v7473_v31 = vadd.f32 %v3286_v15, %v3276_v20 }
0x15f7   :  { %v3287_v0 = vmul.f32 %v3284_v41, %v3259_v59  ;;  %v3290_v36 = vmul.f32 %v7473_v31, %v7322_v45 }
0x15f9   :  { %v7475_v62 = vadd.f32 %v3287_v0, %v3277_v58 }
0x15fb   :  { %v3292_v6 = vmul.f32 %v7475_v62, %v7320_v18 }
0x15fd   :  { %v3293_v37 = vadd.f32 %v3292_v6, %v3290_v36 }
0x15ff   :  { %3296 = vrot.lane.b32.xlu1 %v3293_v37, %s6482_s22 }
0x1637   :  { %v7489_v33 = vpop.permute.xlu0 %3501  ;;  %v7491_v53 = vpop.permute.xlu1 %3495 }
0x1638   :  { %v3504_v45 = vmul.f32 %v7489_v33, %v7475_v62  ;;  %v3498_v18 = vmul.f32 %v7491_v53, %v7473_v31 }
0x163a   :  { %v3505_v21 = vadd.f32 %v3504_v45, %v3498_v18  ;;  %v6422_v18 = vld [vmem:[#allocation3 + $0x8] sm:$0xff] }
0x163c   :  { %v2690_v1 = vpop.permute.xlu0 %2689  ;;  %3507 = vrot.lane.b32.xlu0 %v3505_v21, %s6482_s22 }
0x163d   :  { %v2692_v51 = vmul.f32 %v6327_v54, %v2690_v1 }
0x163f   :  { %v2693_v22 = vadd.f32 %v2692_v51, %v7334_v17 }
0x1640   :  { %v3373_v43 = vpop.permute.xlu0 %3372  ;;  %2922 = vrot.lane.b32.xlu0 %v2920_v60, %s6482_s22 }
0x1641   :  { %2695 = vst.msk [vmem:[#allocation6 + $0x10] sm:$0xff] %vm338_vm7, %v2693_v22  ;;  %v7503_v41 = vmul.f32 %v3373_v43, %v2693_v22 }
0x1643   :  { %5830 = vmatmul.mubr.msk.f32.vlgmr.msra.gmra.mrb[28].mxu0 %vm338_vm7, %v7503_v41 }
0x1644   :  { %6132 = vmatpush3.bf16.msra.mxu0 %v6644_v27  ;;  %5851 = vmatprep.mubr.msk.f32.mxu0 %vm6479_vm5, %v6480_v46 }
0x1645   :  { %6133 = vmatprep.subr.bf16.mxu0 %v6478_v34 }
0x1648   :  { %6135 = vmatpush3.bf16.msra.mxu0 %v6677_v38 }
0x1649   :  { %6143 = vmatprep.subr.bf16.mxu0 %v6785_v52 }
0x164b   :  { %5852 = vmatmul.mubr.msk.f32.vlgmr.msra.gmra.mrb[30].mxu0 %vm338_vm7, %v7417_v61 }
0x164c   :  { %6145 = vmatpush3.bf16.msra.mxu0 %v6785_v52 }
0x164d   :  { %6147 = vmatprep.subr.bf16.mxu0 %v6793_v55 }
0x1650   :  { %6149 = vmatpush3.bf16.msra.mxu0 %v6793_v55 }
0x1651   :  { %6156 = vmatprep.subr.bf16.mxu0 %v6478_v34 }
0x1671   :  { %v3297_v17 = vpop.permute.xlu1 %3296 }
0x1672   :  { %5819 = vmatmul.mubr.msk.f32.vlgmr.msra.gmra.mrb[28].mxu1 %vm338_vm7, %v3297_v17 }
0x1673   :  { %6126 = vmatpush3.bf16.msra.mxu1 %v6667_v35  ;;  %5840 = vmatprep.mubr.msk.f32.mxu1 %vm6479_vm5, %v6480_v46 }
0x1674   :  { %6127 = vmatprep.subr.bf16.mxu1 %v6478_v34 }
0x1677   :  { %6129 = vmatpush3.bf16.msra.mxu1 %v6700_v44 }
0x1678   :  { %6136 = vmatprep.subr.bf16.mxu1 %v6478_v34 }
0x16ae   :  { %v3508_v61 = vpop.permute.xlu0 %3507 }
0x16af   :  { %5841 = vmatmul.mubr.msk.f32.vlgmr.msra.gmra.mrb[30].mxu1 %vm338_vm7, %v3508_v61 }
0x16b0   :  { %6138 = vmatpush3.bf16.msra.mxu1 %v6814_v63  ;;  %5862 = vmatprep.mubr.msk.f32.mxu1 %vm6479_vm5, %v6480_v46 }
0x16b1   :  { %6139 = vmatprep.subr.bf16.mxu1 %v6478_v34 }
0x16b2   :  { %v2923_v11 = vpop.permute.xlu0 %2922 }
0x16b3   :  { %v2925_v4 = vsel %vm338_vm7, %v2923_v11, 0.0 }
0x16b4   :  { %2926 = vadd.xlane.f32.xlu0 %v2925_v4  ;;  %6141 = vmatpush3.bf16.msra.mxu1 %v6825_v5 }
0x16b5   :  { %6150 = vmatprep.subr.bf16.mxu1 %v6478_v34 }
0x1716   :  { %v3445_v29 = vpop.f32.mrb[28].mxu0 }
0x1717   :  { %v5831_v42 = vpop.f32.mrb[29].mxu0 }
0x171e   :  { %v3650_v24 = vpop.f32.mrb[30].mxu0 }
0x171f   :  { %v3651_v48 = vadd.f32 %v7537_v28, %v3650_v24  ;;  %v5853_v15 = vpop.f32.mrb[31].mxu0 }
0x1721   :  { %3662 = vrot.lane.b32.xlu1 %v3651_v48, %s6481_s9 }
0x1741   :  { %v2927_v9 = vpop.xlane.xlu0 %2926 }
0x1742   :  { %2929 = vst.msk [vmem:[#allocation3 + $0x18] sm:$0xff] %vm345_vm12, %v2927_v9 }
0x1745   :  { %v3366_v8 = vpop.f32.mrb[28].mxu1 }
0x1746   :  { %v3367_v20 = vadd.f32 %v7371_v30, %v3366_v8  ;;  %v5820_v59 = vpop.f32.mrb[29].mxu1 }
0x1748   :  { %v7543_v58 = vadd.f32 %v3445_v29, %v3367_v20 }
0x1749   :  { %v7545_v0 = vld [vmem:[#allocation3 + $0x18] sm:$0xff] }
0x174a   :  { %v7549_v36 = vsel %vm345_vm12, %v7545_v0, -inf }
0x174b   :  { %v3723_v6 = vmax.f32 %v7380_v39, %v7549_v36 }
0x174d   :  { %v3724_v37 = vmax.f32 %v7207_v25, %v3723_v6 }
0x174f   :  { %v3725_v45 = vsub.f32 %v6421_v40, %v3724_v37  ;;  %v3726_v21 = vsub.f32 %v6422_v18, %v3724_v37  ;;  %v3727_v30 = vsub.f32 %v7376_v56, %v3724_v37  ;;  %v3728_v54 = vsub.f32 %v7545_v0, %v3724_v37  ;;  %v3463_v40 = vld [vmem:[#allocation4 + $0x20] sm:$0xff] }
0x1751   :  { %v3731_v1 = vmul.f32 1.442695, %v3725_v45  ;;  %v3733_v51 = vmul.f32 1.442695, %v3726_v21  ;;  %v3735_v60 = vmul.f32 1.442695, %v3727_v30 }
0x1752   :  { %v3737_v22 = vmul.f32 1.442695, %v3728_v54 }
0x1753   :  { %6328 = vpow2.f32 %v3731_v1 }
0x1754   :  { %6330 = vpow2.f32 %v3733_v51 }
0x1755   :  { %6332 = vpow2.f32 %v3735_v60 }
0x1756   :  { %6334 = vpow2.f32 %v3737_v22 }
0x175d   :  { %v6329_v43 = vpop.eup %6328 }
0x175e   :  { %v6331_v39 = vpop.eup %6330  ;;  %v3749_v25 = vsel %vm345_vm12, %v6329_v43, 0.0 }
0x175f   :  { %v6333_v17 = vpop.eup %6332  ;;  %v3750_v61 = vsel %vm345_vm12, %v6331_v39, 0.0 }
0x1760   :  { %v6335_v11 = vpop.eup %6334  ;;  %v3751_v4 = vadd.f32 %v3750_v61, %v3749_v25  ;;  %v3752_v56 = vsel %vm345_vm12, %v6333_v17, 0.0 }
0x1761   :  { %v3754_v42 = vsel %vm345_vm12, %v6335_v11, 0.0 }
0x1762   :  { %v3753_v29 = vadd.f32 %v3752_v56, %v3751_v4 }
0x1764   :  { %v3755_v24 = vadd.f32 %v3754_v42, %v3753_v29 }
0x1766   :  { %v3760_v15 = vmax.f32 %v3755_v24, 1e-30 }
0x1768   :  { %6336 = vrcp.f32 %v3760_v15 }
0x1772   :  { %v6337_v9 = vpop.eup %6336 }
0x1773   :  { %v3766_v8 = vmul.f32 0.0, %v6337_v9  ;;  %v3762_v20 = vmul.f32 %v6337_v9, %v6329_v43  ;;  %v3763_v59 = vmul.f32 %v6337_v9, %v6331_v39  ;;  %v3764_v6 = vmul.f32 %v6337_v9, %v6333_v17 }
0x1774   :  { %v3765_v37 = vmul.f32 %v6337_v9, %v6335_v11 }
0x1775   :  { %3790 = vperm.xlu0 %6229, %v3766_v8  }
0x1782   :  { %v3577_v45 = vpop.f32.mrb[30].mxu1 }
0x1783   :  { %v3581_v18 = vadd.f32 %v3577_v45, %v3463_v40  ;;  %v5842_v21 = vpop.f32.mrb[31].mxu1  ;;  %v7593_v40 = vld [vmem:[#allocation2] sm:$0xff] }
0x1785   :  { %v3654_v30 = vadd.f32 %v3651_v48, %v3581_v18 }
0x1787   :  { %v5316_v54 = vmul.f32 -1.442695, %v3654_v30 }
0x1789   :  { %6338 = vpow2.f32 %v5316_v54 }
0x1793   :  { %v6339_v1 = vpop.eup %6338  ;;  %v3663_v22 = vpop.permute.xlu1 %3662 }
0x1794   :  { %v3658_v51 = vadd.f32 1.0, %v6339_v1 }
0x1796   :  { %6340 = vrcp.f32 %v3658_v51 }
0x17a0   :  { %v6341_v60 = vpop.eup %6340 }
0x17a1   :  { %v3665_v25 = vmul.f32 %v6341_v60, %v3663_v22  ;;  %v3672_v48 = vsub.f32 1.0, %v6341_v60  ;;  %v3678_v11 = vmul.f32 %v6341_v60, %v7398_v19  ;;  %v7582_v19 = vld [vmem:[%s7957_s23 + $0x28] sm:$0xff] }
0x17a2   :  { %v4236_v24 = vsel %vm387_vm0, %v7582_v19, -inf }
0x17a3   :  { %3667 = vrot.lane.b32.xlu1 %v3665_v25, %s6481_s9 }
0x17f4   :  { %v3791_v51 = vpop.permute.xlu0 %3790 }
0x1815   :  { %v3668_v43 = vpop.permute.xlu1 %3667 }
0x1816   :  { %v3670_v39 = vadd.f32 %v3668_v43, %v3581_v18  ;;  %v6423_v18 = vld [vmem:[#allocation2 + $0x10] sm:$0xff] }
0x1818   :  { %6342 = vtanh.f32 %v3670_v39 }
0x1822   :  { %v6343_v17 = vpop.eup %6342 }
0x1823   :  { %3674 = vrot.lane.b32.xlu1 %v6343_v17, %s6482_s22 }
0x1827   :  { %3891 = vrot.lane.b32.xlu1 %v7473_v31, %s6482_s22 }
0x182b   :  { %3893 = vrot.lane.b32.xlu1 %v7475_v62, %s6482_s22 }
0x182f   :  { %3770 = vperm.xlu1 %6214, %v3762_v20  }
0x1833   :  { %3775 = vperm.xlu1 %6214, %v3763_v59  }
0x1837   :  { %3780 = vperm.xlu1 %6214, %v3764_v6   ;;  %v7590_v6 = vld [vmem:[#allocation2 + $0x8] sm:$0xff] }
0x183b   :  { %3785 = vperm.xlu1 %6214, %v3765_v37  }
0x1895   :  { %v3675_v61 = vpop.permute.xlu1 %3674 }
0x1896   :  { %v3677_v4 = vmul.f32 %v3675_v61, %v3672_v48  ;;  %v3707_v48 = vld [vmem:[#allocation2 + $0x28] sm:$0xff] }
0x1898   :  { %v7567_v56 = vadd.f32 %v3678_v11, %v3677_v4 }
0x1899   :  { %v3892_v29 = vpop.permute.xlu1 %3891 }
0x189a   :  { %3681 = vrot.lane.b32.xlu1 %v7567_v56, %s6482_s22  ;;  %5873 = vmatprep.mubr.msk.f32.mxu0 %vm338_vm7, %v3892_v29 }
0x189d   :  { %v3894_v42 = vpop.permute.xlu1 %3893 }
0x189e   :  { %3795 = vperm.xlu1 %6214, %v3766_v8   ;;  %5874 = vmatmul.mubr.msk.f32.vlgmr.msra.gmra.mrb[32].mxu0 %vm338_vm7, %v3894_v42 }
0x189f   :  { %6158 = vmatpush3.bf16.msra.mxu0 %v6904_v7  ;;  %5895 = vmatprep.mubr.msk.f32.mxu0 %vm6479_vm5, %v6480_v46 }
0x18a0   :  { %6159 = vmatprep.subr.bf16.mxu0 %v6478_v34 }
0x18a3   :  { %6161 = vmatpush3.bf16.msra.mxu0 %v6915_v12 }
0x18a4   :  { %6168 = vmatprep.subr.bf16.mxu0 %v6478_v34 }
0x18ae   :  { %v3771_v15 = vpop.permute.xlu1 %3770 }
0x18af   :  { %v3798_v45 = vmul.f32 %v3771_v15, %v7593_v40 }
0x18b1   :  { %v3804_v60 = vsel %vm338_vm7, %v3798_v45, 0.0 }
0x18b2   :  { %v3776_v9 = vpop.permute.xlu1 %3775 }
0x18b3   :  { %v3799_v37 = vmul.f32 %v3776_v9, %v7590_v6 }
0x18b5   :  { %v3805_v54 = vsel %vm338_vm7, %v3799_v37, 0.0 }
0x18b6   :  { %v3781_v8 = vpop.permute.xlu1 %3780  ;;  %v3806_v43 = vadd.f32 %v3805_v54, %v3804_v60 }
0x18b7   :  { %v3800_v21 = vmul.f32 %v6423_v18, %v3781_v8  ;;  %v7619_v18 = vld [vmem:[%s7939_s13] ss:$0 sm:$0xff] }
0x18b9   :  { %v3807_v22 = vsel %vm338_vm7, %v3800_v21, 0.0 }
0x18ba   :  { %v3786_v20 = vpop.permute.xlu1 %3785  ;;  %v3808_v17 = vadd.f32 %v3807_v22, %v3806_v43 }
0x18bb   :  { %v3801_v1 = vmul.f32 %v3786_v20, %v7426_v16 }
0x18bd   :  { %v3809_v39 = vsel %vm338_vm7, %v3801_v1, 0.0 }
0x18be   :  { %v3810_v11 = vadd.f32 %v3809_v39, %v3808_v17 }
0x18c2   :  { %4237 = vmax.xlane.f32.xlu1 %v4236_v24 }
0x190c   :  { %v7586_v59 = vpop.permute.xlu1 %3681 }
0x190d   :  { %3685 = vst.msk [vmem:[#allocation2 + $0x20] sm:$0xff] %vm338_vm7, %v7586_v59 }
0x1914   :  { %v7596_v30 = vld [vmem:[#allocation2 + $0x20] sm:$0xff] }
0x1915   :  { %v3802_v25 = vmul.f32 %v3791_v51, %v7596_v30  ;;  %v4030_v51 = vsub.f32 1.0, %v7413_v47 }
0x1917   :  { %v3811_v61 = vsel %vm338_vm7, %v3802_v25, 0.0 }
0x1918   :  { %v3812_v42 = vadd.f32 %v3811_v61, %v3810_v11  ;;  %v3465_v61 = vld [vmem:[#allocation5 + $0x20] sm:$0xff] }
0x191d   :  { %v3796_v4 = vpop.permute.xlu1 %3795 }
0x191e   :  { %v3803_v29 = vmul.f32 %v3796_v4, %v3707_v48 }
0x1920   :  { %v3813_v16 = vsel %vm338_vm7, %v3803_v29, 0.0 }
0x1921   :  { %v3814_v24 = vadd.f32 %v3813_v16, %v3812_v42 }
0x1923   :  { %5863 = vmatmul.mubr.msk.f32.vlgmr.msra.gmra.mrb[32].mxu1 %vm338_vm7, %v3814_v24 }
0x1924   :  { %6152 = vmatpush3.bf16.msra.mxu1 %v6930_v23  ;;  %5884 = vmatprep.mubr.msk.f32.mxu1 %vm6479_vm5, %v6480_v46 }
0x1925   :  { %6153 = vmatprep.subr.bf16.mxu1 %v6478_v34 }
0x1928   :  { %6155 = vmatpush3.bf16.msra.mxu1 %v6936_v26 }
0x1929   :  { %6162 = vmatprep.subr.bf16.mxu1 %v6478_v34 }
0x194f   :  { %v4238_v15 = vpop.xlane.xlu1 %4237 }
0x1950   :  { %vm4239_vm9 = vcmp.ge.f32.partialorder %v7582_v19, %v4238_v15 }
0x1951   :  { %v4240_v9 = vsel %vm4239_vm9, %v6603_v3, 2 }
0x1952   :  { %v4241_v8 = vsel %vm387_vm0, %v4240_v9, 2147483647 }
0x1953   :  { %v4243_v20 = vshra.s32 %v4241_v8, 16  ;;  %v4242_v60 = vand.u32 65535, %v4241_v8 }
0x1955   :  { %v4245_v37 = vcvt.s32.f32 %v4243_v20  ;;  %v4244_v25 = vcvt.s32.f32 %v4242_v60 }
0x1957   :  { %4246 = vmin.xlane.f32.xlu0 %v4245_v37 }
0x1971   :  { %v5875_v45 = vpop.f32.mrb[32].mxu0 }
0x1972   :  { %v3971_v21 = vadd.f32 %v7619_v18, %v5875_v45  ;;  %v3965_v54 = vpop.f32.mrb[33].mxu0 }
0x1973   :  { %v3966_v1 = vadd.f32 %v7619_v18, %v3965_v54 }
0x1974   :  { %3992 = vrot.lane.b32.xlu0 %v3971_v21, %s6481_s9 }
0x1975   :  { %3990 = vrot.lane.b32.xlu1 %v3966_v1, %s6481_s9 }
0x1978   :  { %4027 = vrot.lane.b32.xlu0 %v7413_v47, %s6483_s2 }
0x197c   :  { %4034 = vperm.xlu0 %6229, %v4030_v51  }
0x19e4   :  { %v4247_v22 = vpop.xlane.xlu0 %4246 }
0x19e5   :  { %vm4248_vm0 = vcmp.eq.f32.partialorder %v4245_v37, %v4247_v22 }
0x19e6   :  { %v4249_v43 = vsel %vm4248_vm0, %v4244_v25, inf }
0x19e7   :  { %v3991_v45 = vpop.permute.xlu1 %3990 }
0x19e8   :  { %v3993_v39 = vpop.permute.xlu0 %3992 }
0x19ec   :  { %v4028_v17 = vpop.permute.xlu0 %4027 }
0x19ed   :  { %v4031_v48 = vsub.f32 1.0, %v4028_v17 }
0x19ef   :  { %4039 = vperm.xlu0 %6229, %v4031_v48  }
0x19f3   :  { %4045 = vperm.xlu0 %6229, %v7413_v47  }
0x19f6   :  { %v3884_v11 = vpop.f32.mrb[32].mxu1 }
0x19f7   :  { %v3888_v4 = vadd.f32 %v3884_v11, %v3465_v61  ;;  %4049 = vperm.xlu0 %6229, %v4028_v17   ;;  %v5864_v29 = vpop.f32.mrb[33].mxu1  ;;  %v4253_v61 = vcvt.f32.s32 %v4247_v22 }
0x19f9   :  { %v3974_v42 = vadd.f32 %v3966_v1, %v3888_v4  ;;  %v3975_v16 = vadd.f32 %v3971_v21, %v3888_v4  ;;  %v4254_v29 = vshll.u32 %v4253_v61, 16 }
0x19fb   :  { %v5320_v24 = vmul.f32 -1.442695, %v3974_v42  ;;  %v5321_v15 = vmul.f32 -1.442695, %v3975_v16  ;;  %6230 = vset.pattern.permute.xlu0 %v6476_v13  ;;  %v7641_v16 = vld [vmem:[%s7961_s11 + $0x20] sm:$0xff] }
0x19fc   :  { %v4060_v22 = vsub.f32 1.0, %v7641_v16 }
0x19fd   :  { %6344 = vpow2.f32 %v5320_v24  ;;  %v4035_v24 = vpop.permute.xlu0 %4034 }
0x19fe   :  { %6346 = vpow2.f32 %v5321_v15 }
0x1a07   :  { %v6345_v9 = vpop.eup %6344 }
0x1a08   :  { %v6347_v8 = vpop.eup %6346  ;;  %v3982_v20 = vadd.f32 1.0, %v6345_v9 }
0x1a09   :  { %v3983_v37 = vadd.f32 1.0, %v6347_v8 }
0x1a0a   :  { %6348 = vrcp.f32 %v3982_v20 }
0x1a0b   :  { %6350 = vrcp.f32 %v3983_v37 }
0x1a14   :  { %v6349_v47 = vpop.eup %6348 }
0x1a15   :  { %v3996_v54 = vmul.f32 %v6349_v47, %v3991_v45  ;;  %v6351_v51 = vpop.eup %6350  ;;  %v4010_v20 = vsub.f32 1.0, %v6349_v47 }
0x1a16   :  { %v3997_v1 = vmul.f32 %v6351_v51, %v3993_v39 }
0x1a17   :  { %4000 = vrot.lane.b32.xlu1 %v3996_v54, %s6481_s9  ;;  %v4011_v54 = vsub.f32 1.0, %v6351_v51 }
0x1a1b   :  { %4002 = vrot.lane.b32.xlu1 %v3997_v1, %s6481_s9 }
0x1a3f   :  { %4250 = vmin.xlane.f32.xlu1 %v4249_v43 }
0x1a6e   :  { %v4040_v15 = vpop.permute.xlu0 %4039 }
0x1a72   :  { %v4046_v9 = vpop.permute.xlu0 %4045 }
0x1a76   :  { %v4050_v8 = vpop.permute.xlu0 %4049 }
0x1a89   :  { %v4001_v21 = vpop.permute.xlu1 %4000 }
0x1a8a   :  { %v4006_v13 = vadd.f32 %v4001_v21, %v3888_v4 }
0x1a8c   :  { %6352 = vtanh.f32 %v4006_v13 }
0x1a8d   :  { %v4003_v60 = vpop.permute.xlu1 %4002 }
0x1a8e   :  { %v4007_v25 = vadd.f32 %v4003_v60, %v3888_v4  ;;  %v3452_v4 = vsub.f32 1.0, %v3294_v57  ;;  %v4022_v57 = vmul.f32 %v6349_v47, %v7473_v31  ;;  %v4042_v60 = vmul.f32 %v4035_v24, %v7473_v31 }
0x1a8f   :  { %v3450_v31 = vadd.f32 %v7485_v49, %v7543_v58  ;;  %v3686_v49 = vmul.f32 %v7567_v56, %v6997_v32 }
0x1a90   :  { %6354 = vtanh.f32 %v4007_v25 }
0x1a91   :  { %6356 = vtanh.f32 %v3450_v31 }
0x1a96   :  { %v6353_v17 = vpop.eup %6352 }
0x1a97   :  { %4014 = vrot.lane.b32.xlu0 %v6353_v17, %s6482_s22  ;;  %v4043_v17 = vmul.f32 %v4040_v15, %v7475_v62 }
0x1a9a   :  { %v6355_v48 = vpop.eup %6354 }
0x1a9b   :  { %4016 = vrot.lane.b32.xlu0 %v6355_v48, %s6482_s22 }
0x1acc   :  { %v4251_v11 = vpop.xlane.xlu1 %4250 }
0x1acd   :  { %v4252_v42 = vcvt.f32.s32 %v4251_v11 }
0x1acf   :  { %v4255_v39 = vadd.s32 %v4254_v29, %v4252_v42 }
0x1ad1   :  { %vm4256_vm10 = vcmp.eq.s32.totalorder %v6603_v3, %v4255_v39 }
0x1ad2   :  { %v5326_v43 = vsel %vm4256_vm10, 1.0, %v6480_v46 }
0x1ad3   :  { %4267 = vperm.xlu0 %6230, %v5326_v43   ;;  %4261 = vperm.xlu1 %6214, %v5326_v43  }
0x1ad7   :  { %6231 = vset.pattern.permute.xlu0 %v6477_v14  ;;  %v4023_v14 = vmul.f32 %v6351_v51, %v7475_v62 }
0x1ad8   :  { %3455 = vperm.xlu0 %6231, %v3452_v4   ;;  %v6357_v4 = vpop.eup %6356 }
0x1adc   :  { %4138 = vperm.xlu0 %6231, %v4060_v22  }
0x1b09   :  { %v4015_v50 = vpop.permute.xlu0 %4014 }
0x1b0a   :  { %v4020_v37 = vmul.f32 %v4015_v50, %v4010_v20  ;;  %v7712_v20 = vld [vmem:[%s7941_s15] ss:$0 sm:$0xff] }
0x1b0c   :  { %v4024_v45 = vadd.f32 %v4022_v57, %v4020_v37  ;;  %v4229_v37 = vld [vmem:[#allocation4 + $0x28] sm:$0xff] }
0x1b0d   :  { %v4017_v1 = vpop.permute.xlu0 %4016 }
0x1b0e   :  { %v4052_v21 = vmul.f32 %v4046_v9, %v4024_v45  ;;  %v4021_v13 = vmul.f32 %v4017_v1, %v4011_v54 }
0x1b10   :  { %v4025_v25 = vadd.f32 %v4023_v14, %v4021_v13  ;;  %v7651_v48 = vadd.f32 %v4052_v21, %v4042_v60 }
0x1b12   :  { %v4053_v61 = vmul.f32 %v4050_v8, %v4025_v25  ;;  %v4056_v47 = vmul.f32 %v7651_v48, %v7491_v53 }
0x1b14   :  { %v7653_v11 = vadd.f32 %v4053_v61, %v4043_v17 }
0x1b16   :  { %v4058_v29 = vmul.f32 %v7653_v11, %v7489_v33 }
0x1b18   :  { %v4059_v42 = vadd.f32 %v4058_v29, %v4056_v47  ;;  %v4462_v29 = vld [vmem:[#allocation3] sm:$0xff] }
0x1b1a   :  { %4062 = vrot.lane.b32.xlu1 %v4059_v42, %s6482_s22  ;;  %v4463_v42 = vld [vmem:[#allocation3 + $0x8] sm:$0xff] }
0x1b52   :  { %v7662_v51 = vpop.permute.xlu0 %4267  ;;  %v7664_v62 = vpop.permute.xlu1 %4261 }
0x1b53   :  { %v4270_v39 = vmul.f32 %v7662_v51, %v7653_v11  ;;  %v4264_v53 = vmul.f32 %v7664_v62, %v7651_v48 }
0x1b55   :  { %v4271_v43 = vadd.f32 %v4270_v39, %v4264_v53  ;;  %v4480_v39 = vsel %vm345_vm12, %v4462_v29, -inf  ;;  %v4481_v53 = vsel %vm345_vm12, %v4463_v42, -inf }
0x1b57   :  { %v3456_v33 = vpop.permute.xlu0 %3455  ;;  %4273 = vrot.lane.b32.xlu0 %v4271_v43, %s6482_s22 }
0x1b58   :  { %v3458_v24 = vmul.f32 %v6357_v4, %v3456_v33  ;;  %v4464_v4 = vld [vmem:[#allocation3 + $0x10] sm:$0xff]  ;;  %v4487_v33 = vmax.f32 %v4481_v53, %v7030_v10 }
0x1b5a   :  { %v3459_v58 = vadd.f32 %v3458_v24, %v7503_v41 }
0x1b5b   :  { %v4139_v15 = vpop.permute.xlu0 %4138  ;;  %3688 = vrot.lane.b32.xlu0 %v3686_v49, %s6482_s22  ;;  %v4482_v49 = vsel %vm345_vm12, %v4464_v4, -inf }
0x1b5c   :  { %3461 = vst.msk [vmem:[#allocation6 + $0x18] sm:$0xff] %vm338_vm7, %v3459_v58  ;;  %v7676_v9 = vmul.f32 %v4139_v15, %v3459_v58  ;;  %v4489_v58 = vmax.f32 %v4482_v49, %v7549_v36 }
0x1b5e   :  { %5896 = vmatmul.mubr.msk.f32.vlgmr.msra.gmra.mrb[34].mxu0 %vm338_vm7, %v7676_v9 }
0x1b5f   :  { %6170 = vmatpush3.bf16.msra.mxu0 %v6644_v27  ;;  %5917 = vmatprep.mubr.msk.f32.mxu0 %vm6479_vm5, %v6480_v46 }
0x1b60   :  { %6171 = vmatprep.subr.bf16.mxu0 %v6478_v34 }
0x1b63   :  { %6173 = vmatpush3.bf16.msra.mxu0 %v6677_v38 }
0x1b64   :  { %6181 = vmatprep.subr.bf16.mxu0 %v6785_v52 }
0x1b66   :  { %5918 = vmatmul.mubr.msk.f32.vlgmr.msra.gmra.mrb[36].mxu0 %vm338_vm7, %v7586_v59 }
0x1b67   :  { %6183 = vmatpush3.bf16.msra.mxu0 %v6785_v52 }
0x1b68   :  { %6185 = vmatprep.subr.bf16.mxu0 %v6793_v55 }
0x1b6b   :  { %6187 = vmatpush3.bf16.msra.mxu0 %v6793_v55 }
0x1b6c   :  { %6194 = vmatprep.subr.bf16.mxu0 %v6478_v34 }
0x1b8c   :  { %v4063_v27 = vpop.permute.xlu1 %4062 }
0x1b8d   :  { %5885 = vmatmul.mubr.msk.f32.vlgmr.msra.gmra.mrb[34].mxu1 %vm338_vm7, %v4063_v27 }
0x1b8e   :  { %6164 = vmatpush3.bf16.msra.mxu1 %v6667_v35  ;;  %5906 = vmatprep.mubr.msk.f32.mxu1 %vm6479_vm5, %v6480_v46 }
0x1b8f   :  { %6165 = vmatprep.subr.bf16.mxu1 %v6478_v34 }
0x1b92   :  { %6167 = vmatpush3.bf16.msra.mxu1 %v6700_v44 }
0x1b93   :  { %6174 = vmatprep.subr.bf16.mxu1 %v6478_v34 }
0x1bc9   :  { %v4274_v38 = vpop.permute.xlu0 %4273 }
0x1bca   :  { %5907 = vmatmul.mubr.msk.f32.vlgmr.msra.gmra.mrb[36].mxu1 %vm338_vm7, %v4274_v38 }
0x1bcb   :  { %6176 = vmatpush3.bf16.msra.mxu1 %v6814_v63  ;;  %5928 = vmatprep.mubr.msk.f32.mxu1 %vm6479_vm5, %v6480_v46 }
0x1bcc   :  { %6177 = vmatprep.subr.bf16.mxu1 %v6478_v34 }
0x1bcd   :  { %v3689_v59 = vpop.permute.xlu0 %3688 }
0x1bce   :  { %v3691_v63 = vsel %vm338_vm7, %v3689_v59, 0.0 }
0x1bcf   :  { %6179 = vmatpush3.bf16.msra.mxu1 %v6825_v5 }
0x1bd0   :  { %6188 = vmatprep.subr.bf16.mxu1 %v6478_v34 }
0x1c31   :  { %v4211_v35 = vpop.f32.mrb[34].mxu0 }
0x1c32   :  { %v5897_v52 = vpop.f32.mrb[35].mxu0 }
0x1c39   :  { %v4416_v55 = vpop.f32.mrb[36].mxu0 }
0x1c3a   :  { %v4417_v44 = vadd.f32 %v7537_v28, %v4416_v55  ;;  %v5919_v41 = vpop.f32.mrb[37].mxu0 }
0x1c3c   :  { %4428 = vrot.lane.b32.xlu1 %v4417_v44, %s6481_s9 }
0x1c60   :  { %3692 = vadd.xlane.f32.xlu1 %v3691_v63  ;;  %v4132_v8 = vpop.f32.mrb[34].mxu1 }
0x1c61   :  { %v4133_v5 = vadd.f32 %v7712_v20, %v4132_v8  ;;  %v5886_v50 = vpop.f32.mrb[35].mxu1 }
0x1c63   :  { %v7715_v57 = vadd.f32 %v4211_v35, %v4133_v5 }
0x1c9d   :  { %v4343_v28 = vpop.f32.mrb[36].mxu1 }
0x1c9e   :  { %v4347_v45 = vadd.f32 %v4343_v28, %v4229_v37  ;;  %v5908_v54 = vpop.f32.mrb[37].mxu1 }
0x1ca0   :  { %v4420_v1 = vadd.f32 %v4417_v44, %v4347_v45 }
0x1ca2   :  { %v5329_v21 = vmul.f32 -1.442695, %v4420_v1 }
0x1ca4   :  { %6358 = vpow2.f32 %v5329_v21 }
0x1cae   :  { %v6359_v14 = vpop.eup %6358  ;;  %v4429_v25 = vpop.permute.xlu1 %4428 }
0x1caf   :  { %v4424_v13 = vadd.f32 1.0, %v6359_v14 }
0x1cb1   :  { %6360 = vrcp.f32 %v4424_v13 }
0x1cbb   :  { %v7717_v60 = vpop.eup %6360 }
0x1cbc   :  { %v4431_v17 = vmul.f32 %v7717_v60, %v4429_v25 }
0x1cbe   :  { %4433 = vrot.lane.b32.xlu0 %v4431_v17, %s6481_s9 }
0x1ced   :  { %v3693_v61 = vpop.xlane.xlu1 %3692 }
0x1cee   :  { %3695 = vst.msk [vmem:[#allocation3 + $0x20] sm:$0xff] %vm345_vm12, %v3693_v61 }
0x1cf5   :  { %v4466_v47 = vld [vmem:[#allocation3 + $0x20] sm:$0xff] }
0x1cf6   :  { %v4484_v31 = vsel %vm345_vm12, %v4466_v47, -inf }
0x1cf7   :  { %v4485_v43 = vmax.f32 %v4480_v39, %v4484_v31 }
0x1cf9   :  { %v4488_v24 = vmax.f32 %v4485_v43, %v4487_v33 }
0x1cfb   :  { %v4490_v15 = vmax.f32 %v4488_v24, %v4489_v58  ;;  %v4438_v24 = vsub.f32 1.0, %v7717_v60  ;;  %v4444_v58 = vmul.f32 %v7717_v60, %v7567_v56 }
0x1cfd   :  { %v4491_v27 = vsub.f32 %v4462_v29, %v4490_v15  ;;  %v4492_v38 = vsub.f32 %v4463_v42, %v4490_v15  ;;  %v4493_v55 = vsub.f32 %v4464_v4, %v4490_v15  ;;  %v4494_v44 = vsub.f32 %v7545_v0, %v4490_v15 }
0x1cfe   :  { %v4495_v59 = vsub.f32 %v4466_v47, %v4490_v15 }
0x1cff   :  { %v4497_v35 = vmul.f32 1.442695, %v4491_v27  ;;  %v4499_v52 = vmul.f32 1.442695, %v4492_v38  ;;  %v4501_v41 = vmul.f32 1.442695, %v4493_v55 }
0x1d00   :  { %v4503_v63 = vmul.f32 1.442695, %v4494_v44  ;;  %v4505_v5 = vmul.f32 1.442695, %v4495_v59 }
0x1d01   :  { %6362 = vpow2.f32 %v4497_v35 }
0x1d02   :  { %6364 = vpow2.f32 %v4499_v52 }
0x1d03   :  { %6366 = vpow2.f32 %v4501_v41  ;;  %v7754_v41 = vld [vmem:[#allocation2 + $0x10] sm:$0xff] }
0x1d04   :  { %6368 = vpow2.f32 %v4503_v63 }
0x1d05   :  { %6370 = vpow2.f32 %v4505_v5 }
0x1d0b   :  { %v6363_v10 = vpop.eup %6362 }
0x1d0c   :  { %v6365_v8 = vpop.eup %6364  ;;  %v4515_v36 = vsel %vm345_vm12, %v6363_v10, 0.0 }
0x1d0d   :  { %v4516_v50 = vsel %vm345_vm12, %v6365_v8, 0.0  ;;  %v6367_v37 = vpop.eup %6366 }
0x1d0e   :  { %v4517_v28 = vadd.f32 %v4516_v50, %v4515_v36  ;;  %v4518_v54 = vsel %vm345_vm12, %v6367_v37, 0.0  ;;  %v6369_v1 = vpop.eup %6368 }
0x1d0f   :  { %v4520_v0 = vsel %vm345_vm12, %v6369_v1, 0.0  ;;  %v6371_v14 = vpop.eup %6370 }
0x1d10   :  { %v4519_v21 = vadd.f32 %v4518_v54, %v4517_v28  ;;  %v4522_v61 = vsel %vm345_vm12, %v6371_v14, 0.0  ;;  %vm5067_vm12 = vcmask 1043459  }
0x1d12   :  { %v4521_v13 = vadd.f32 %v4520_v0, %v4519_v21 }
0x1d14   :  { %v4523_v47 = vadd.f32 %v4522_v61, %v4521_v13 }
0x1d16   :  { %v4526_v29 = vmax.f32 %v4523_v47, 1e-30 }
0x1d30   :  { %v4434_v25 = vpop.permute.xlu0 %4433 }
0x1d31   :  { %v4436_v17 = vadd.f32 %v4434_v25, %v4347_v45 }
0x1d33   :  { %6372 = vtanh.f32 %v4436_v17 }
0x1d34   :  { %6374 = vrcp.f32 %v4526_v29 }
0x1d3d   :  { %v6373_v42 = vpop.eup %6372 }
0x1d3e   :  { %4440 = vrot.lane.b32.xlu0 %v6373_v42, %s6482_s22  ;;  %v6375_v31 = vpop.eup %6374 }
0x1d3f   :  { %v4528_v39 = vmul.f32 %v6375_v31, %v6363_v10  ;;  %v4529_v53 = vmul.f32 %v6375_v31, %v6365_v8  ;;  %v4530_v45 = vmul.f32 %v6375_v31, %v6367_v37  ;;  %v4531_v43 = vmul.f32 %v6375_v31, %v6369_v1 }
0x1d40   :  { %v4532_v4 = vmul.f32 %v6375_v31, %v6371_v14  ;;  %v4533_v33 = vmul.f32 0.0, %v6375_v31 }
0x1d42   :  { %4657 = vrot.lane.b32.xlu0 %v7651_v48, %s6482_s22 }
0x1d46   :  { %4659 = vrot.lane.b32.xlu0 %v7653_v11, %s6482_s22 }
0x1d4a   :  { %4536 = vperm.xlu0 %6231, %v4528_v39  }
0x1d4e   :  { %4541 = vperm.xlu0 %6231, %v4529_v53   ;;  %v4231_v53 = vld [vmem:[#allocation5 + $0x28] sm:$0xff] }
0x1d52   :  { %4546 = vperm.xlu0 %6231, %v4530_v45  }
0x1d56   :  { %4551 = vperm.xlu0 %6231, %v4531_v43  }
0x1d5a   :  { %4556 = vperm.xlu0 %6231, %v4532_v4  }
0x1d5e   :  { %4561 = vperm.xlu0 %6231, %v4533_v33  }
0x1db0   :  { %v4441_v49 = vpop.permute.xlu0 %4440 }
0x1db1   :  { %v4443_v15 = vmul.f32 %v4441_v49, %v4438_v24 }
0x1db3   :  { %v7742_v27 = vadd.f32 %v4444_v58, %v4443_v15 }
0x1db4   :  { %v4658_v38 = vpop.permute.xlu0 %4657 }
0x1db5   :  { %4447 = vrot.lane.b32.xlu1 %v7742_v27, %s6482_s22  ;;  %5939 = vmatprep.mubr.msk.f32.mxu0 %vm338_vm7, %v4658_v38 }
0x1db8   :  { %v4660_v35 = vpop.permute.xlu0 %4659 }
0x1db9   :  { %5940 = vmatmul.mubr.msk.f32.vlgmr.msra.gmra.mrb[38].mxu0 %vm338_vm7, %v4660_v35 }
0x1dba   :  { %6196 = vmatpush3.bf16.msra.mxu0 %v6904_v7  ;;  %5961 = vmatprep.mubr.msk.f32.mxu0 %vm6479_vm5, %v6480_v46  ;;  %v7758_v7 = vld [vmem:[#allocation2 + $0x18] sm:$0xff] }
0x1dbb   :  { %6197 = vmatprep.subr.bf16.mxu0 %v6478_v34 }
0x1dbe   :  { %6199 = vmatpush3.bf16.msra.mxu0 %v6915_v12 }
0x1dc9   :  { %v4537_v56 = vpop.permute.xlu0 %4536 }
0x1dca   :  { %v4564_v59 = vmul.f32 %v4537_v56, %v7593_v40 }
0x1dcc   :  { %v4570_v36 = vsel %vm338_vm7, %v4564_v59, 0.0 }
0x1dcd   :  { %v4542_v60 = vpop.permute.xlu0 %4541 }
0x1dce   :  { %v4565_v44 = vmul.f32 %v4542_v60, %v7590_v6 }
0x1dd0   :  { %v4571_v5 = vsel %vm338_vm7, %v4565_v44, 0.0 }
0x1dd1   :  { %v4547_v52 = vpop.permute.xlu0 %4546  ;;  %v4572_v28 = vadd.f32 %v4571_v5, %v4570_v36 }
0x1dd2   :  { %v4566_v63 = vmul.f32 %v4547_v52, %v7754_v41 }
0x1dd4   :  { %v4573_v50 = vsel %vm338_vm7, %v4566_v63, 0.0 }
0x1dd5   :  { %v4552_v55 = vpop.permute.xlu0 %4551  ;;  %v4574_v1 = vadd.f32 %v4573_v50, %v4572_v28  ;;  %v6426_v28 = vld [vmem:[%s7944_s18] ss:$0 sm:$0xff] }
0x1dd6   :  { %v4567_v12 = vmul.f32 %v4552_v55, %v7758_v7  ;;  %v4796_v55 = vsub.f32 1.0, %v7582_v19 }
0x1dd8   :  { %v4575_v54 = vsel %vm338_vm7, %v4567_v12, 0.0  ;;  %v7791_v12 = vld [vmem:[%s7961_s11 + $0x28] sm:$0xff] }
0x1dd9   :  { %v4557_v10 = vpop.permute.xlu0 %4556  ;;  %v4576_v0 = vadd.f32 %v4575_v54, %v4574_v1  ;;  %v5001_v54 = vmul.f32 %v6426_v28, %v7593_v40 }
0x1dda   :  { %v4568_v37 = vmul.f32 %v4557_v10, %v7596_v30 }
0x1ddb   :  { %v5007_v1 = vsel %vm338_vm7, %v5001_v54, 0.0 }
0x1ddc   :  { %v4577_v21 = vsel %vm338_vm7, %v4568_v37, 0.0  ;;  %v4826_v37 = vsub.f32 1.0, %v7791_v12 }
0x1ddd   :  { %v4562_v14 = vpop.permute.xlu0 %4561  ;;  %v4578_v17 = vadd.f32 %v4577_v21, %v4576_v0  ;;  %v5003_v21 = vmul.f32 %v6426_v28, %v7754_v41  ;;  %v7814_v41 = vld [vmem:[%s7943_s17] ss:$0 sm:$0xff]  ;;  %s6486_s17 = smov [#allocation8]  }
0x1ddf   :  { %v5013_v16 = vsel %vm338_vm7, %v5003_v21, 0.0 }
0x1e27   :  { %v4448_v8 = vpop.permute.xlu1 %4447 }
0x1e28   :  { %4451 = vst.msk [vmem:[#allocation2 + $0x28] sm:$0xff] %vm338_vm7, %v4448_v8 }
0x1e2f   :  { %v7768_v13 = vld [vmem:[#allocation2 + $0x28] sm:$0xff] }
0x1e30   :  { %v4569_v25 = vmul.f32 %v4562_v14, %v7768_v13  ;;  %v5006_v14 = vmul.f32 %v6426_v28, %v7768_v13 }
0x1e32   :  { %v4579_v61 = vsel %vm338_vm7, %v4569_v25, 0.0  ;;  %v5022_v25 = vsel %vm338_vm7, %v5006_v14, 0.0 }
0x1e33   :  { %v4580_v47 = vadd.f32 %v4579_v61, %v4578_v17  ;;  %v4216_v61 = vadd.f32 %v7814_v41, %v7715_v57 }
0x1e35   :  { %5929 = vmatmul.mubr.msk.f32.vlgmr.msra.gmra.mrb[38].mxu1 %vm338_vm7, %v4580_v47 }
0x1e36   :  { %6190 = vmatpush3.bf16.msra.mxu1 %v6930_v23  ;;  %5950 = vmatprep.mubr.msk.f32.mxu1 %vm6479_vm5, %v6480_v46  ;;  %vm5063_vm5 = vcmask 1041409  }
0x1e37   :  { %6191 = vmatprep.subr.bf16.mxu1 %v6478_v34 }
0x1e3a   :  { %6193 = vmatpush3.bf16.msra.mxu1 %v6936_v26 }
0x1e8c   :  { %v5941_v29 = vpop.f32.mrb[38].mxu0 }
0x1e8d   :  { %v4731_v42 = vpop.f32.mrb[39].mxu0  ;;  %v4737_v39 = vadd.f32 %v7619_v18, %v5941_v29 }
0x1e8e   :  { %v4732_v31 = vadd.f32 %v7619_v18, %v4731_v42 }
0x1e90   :  { %4756 = vrot.lane.b32.xlu0 %v4732_v31, %s6481_s9 }
0x1e94   :  { %4758 = vrot.lane.b32.xlu0 %v4737_v39, %s6481_s9 }
0x1f02   :  { %v4757_v38 = vpop.permute.xlu0 %4756 }
0x1f06   :  { %v4759_v56 = vpop.permute.xlu0 %4758 }
0x1f08   :  { %v4650_v45 = vpop.f32.mrb[38].mxu1 }
0x1f09   :  { %v4654_v23 = vadd.f32 %v4650_v45, %v4231_v53  ;;  %v5930_v43 = vpop.f32.mrb[39].mxu1 }
0x1f0b   :  { %v4740_v4 = vadd.f32 %v4732_v31, %v4654_v23  ;;  %v4741_v33 = vadd.f32 %v4737_v39, %v4654_v23 }
0x1f0d   :  { %v5333_v24 = vmul.f32 -1.442695, %v4740_v4  ;;  %v5334_v34 = vmul.f32 -1.442695, %v4741_v33 }
0x1f0f   :  { %6376 = vpow2.f32 %v5333_v24 }
0x1f10   :  { %6378 = vpow2.f32 %v5334_v34 }
0x1f19   :  { %v6377_v26 = vpop.eup %6376 }
0x1f1a   :  { %v6379_v49 = vpop.eup %6378  ;;  %v4748_v58 = vadd.f32 1.0, %v6377_v26 }
0x1f1b   :  { %v4749_v15 = vadd.f32 1.0, %v6379_v49 }
0x1f1c   :  { %6380 = vrcp.f32 %v4748_v58 }
0x1f1d   :  { %6382 = vrcp.f32 %v4749_v15 }
0x1f26   :  { %v6381_v18 = vpop.eup %6380 }
0x1f27   :  { %v6383_v35 = vpop.eup %6382  ;;  %v4762_v60 = vmul.f32 %v6381_v18, %v4757_v38  ;;  %v4776_v47 = vsub.f32 1.0, %v6381_v18  ;;  %v4788_v13 = vmul.f32 %v6381_v18, %v7651_v48 }
0x1f28   :  { %v4763_v52 = vmul.f32 %v6383_v35, %v4759_v56  ;;  %v4777_v53 = vsub.f32 1.0, %v6383_v35  ;;  %v4789_v43 = vmul.f32 %v6383_v35, %v7653_v11 }
0x1f29   :  { %4766 = vrot.lane.b32.xlu0 %v4762_v60, %s6481_s9 }
0x1f2a   :  { %4768 = vrot.lane.b32.xlu1 %v4763_v52, %s6481_s9 }
0x1f2d   :  { %4793 = vrot.lane.b32.xlu0 %v7582_v19, %s6483_s2 }
0x1f2e   :  { %4800 = vperm.xlu1 %6214, %v4796_v55   ;;  %v5005_v55 = vmul.f32 %v6426_v28, %v7596_v30 }
0x1f32   :  { %4811 = vperm.xlu1 %6214, %v7582_v19   ;;  %v4218_v19 = vsub.f32 1.0, %v4060_v22  ;;  %v5004_v22 = vmul.f32 %v6426_v28, %v7758_v7 }
0x1f34   :  { %v5016_v0 = vsel %vm338_vm7, %v5004_v22, 0.0 }
0x1f9b   :  { %v4767_v44 = vpop.permute.xlu0 %4766 }
0x1f9c   :  { %v4769_v59 = vpop.permute.xlu1 %4768  ;;  %v4772_v63 = vadd.f32 %v4767_v44, %v4654_v23  ;;  %v5019_v44 = vsel %vm338_vm7, %v5005_v55, 0.0 }
0x1f9d   :  { %v4773_v10 = vadd.f32 %v4769_v59, %v4654_v23 }
0x1f9e   :  { %6384 = vtanh.f32 %v4772_v63 }
0x1f9f   :  { %6386 = vtanh.f32 %v4773_v10  ;;  %v4794_v8 = vpop.permute.xlu0 %4793 }
0x1fa0   :  { %v4797_v5 = vsub.f32 1.0, %v4794_v8  ;;  %6388 = vtanh.f32 %v4216_v61 }
0x1fa2   :  { %4805 = vperm.xlu0 %6231, %v4797_v5  }
0x1fa6   :  { %4815 = vperm.xlu0 %6231, %v4794_v8  }
0x1fa8   :  { %v6385_v36 = vpop.eup %6384 }
0x1fa9   :  { %v6387_v50 = vpop.eup %6386  ;;  %4780 = vrot.lane.b32.xlu1 %v6385_v36, %s6482_s22 }
0x1faa   :  { %4782 = vrot.lane.b32.xlu0 %v6387_v50, %s6482_s22  ;;  %v6389_v33 = vpop.eup %6388 }
0x1fad   :  { %4221 = vperm.xlu1 %6214, %v4218_v19   ;;  %v4801_v17 = vpop.permute.xlu1 %4800 }
0x1fae   :  { %4904 = vperm.xlu0 %6231, %v4826_v37   ;;  %v4808_v24 = vmul.f32 %v4801_v17, %v7651_v48 }
0x1fb1   :  { %v4812_v40 = vpop.permute.xlu1 %4811 }
0x1fcd   :  { %5008 = vadd.xlane.f32.xlu0 %v5007_v1 }
0x1fd1   :  { %5014 = vadd.xlane.f32.xlu0 %v5013_v16 }
0x1fd5   :  { %5017 = vadd.xlane.f32.xlu0 %v5016_v0 }
0x1fd9   :  { %5023 = vadd.xlane.f32.xlu0 %v5022_v25 }
0x201b   :  { %v4781_v7 = vpop.permute.xlu1 %4780 }
0x201c   :  { %v4786_v42 = vmul.f32 %v4781_v7, %v4776_v47 }
0x201e   :  { %v4790_v39 = vadd.f32 %v4788_v13, %v4786_v42 }
0x2020   :  { %v4818_v23 = vmul.f32 %v4812_v40, %v4790_v39 }
0x2021   :  { %v4806_v29 = vpop.permute.xlu0 %4805 }
0x2022   :  { %v4820_v49 = vadd.f32 %v4818_v23, %v4808_v24  ;;  %v4809_v58 = vmul.f32 %v4806_v29, %v7653_v11  ;;  %v5002_v11 = vmul.f32 %v6426_v28, %v7590_v6  ;;  %v7840_v6 = vshrl.u32 %v385_v2, 7 }
0x2024   :  { %v4822_v35 = vmul.f32 %v4820_v49, %v7664_v62  ;;  %v4452_v62 = vmul.f32 %v7742_v27, %v6997_v32  ;;  %v5041_v30 = vsub.s32 %v6603_v3, %v7840_v6  ;;  %vm5028_vm15 = vcmp.lt.s32.totalorder %v7840_v6, 1 }
0x2025   :  { %v4816_v31 = vpop.permute.xlu0 %4815  ;;  %vm5029_vm1 = vcmp.lt.s32.totalorder %v7840_v6, 2  ;;  %vm5030_vm2 = vcmp.lt.s32.totalorder %v7840_v6, 3  ;;  %vm5031_vm3 = vcmp.lt.s32.totalorder %v7840_v6, 4  ;;  %vm5032_vm4 = vcmp.lt.s32.totalorder %v7840_v6, 5 }
0x2029   :  { %v4783_v45 = vpop.permute.xlu0 %4782 }
0x202a   :  { %v4787_v4 = vmul.f32 %v4783_v45, %v4777_v53 }
0x202c   :  { %v4791_v34 = vadd.f32 %v4789_v43, %v4787_v4  ;;  %v4222_v57 = vpop.permute.xlu1 %4221 }
0x202d   :  { %v4224_v26 = vmul.f32 %v6389_v33, %v4222_v57  ;;  %v4905_v56 = vpop.permute.xlu0 %4904 }
0x202e   :  { %v4819_v15 = vmul.f32 %v4816_v31, %v4791_v34 }
0x202f   :  { %v4225_v38 = vadd.f32 %v4224_v26, %v7676_v9  ;;  %v5010_v9 = vsel %vm338_vm7, %v5002_v11, 0.0 }
0x2030   :  { %v4821_v18 = vadd.f32 %v4819_v15, %v4809_v58 }
0x2031   :  { %4227 = vst.msk [vmem:[#allocation6 + $0x20] sm:$0xff] %vm338_vm7, %v4225_v38  ;;  %v7824_v60 = vmul.f32 %v4905_v56, %v4225_v38 }
0x2032   :  { %v4824_v52 = vmul.f32 %v4821_v18, %v7662_v51 }
0x2033   :  { %5962 = vmatmul.mubr.msk.f32.vlgmr.msra.gmra.mrb[40].mxu0 %vm338_vm7, %v7824_v60 }
0x2034   :  { %v4825_v48 = vadd.f32 %v4824_v52, %v4822_v35 }
0x2036   :  { %4828 = vrot.lane.b32.xlu1 %v4825_v48, %s6482_s22 }
0x205a   :  { %5011 = vadd.xlane.f32.xlu1 %v5010_v9  ;;  %v5009_v59 = vpop.xlane.xlu0 %5008 }
0x205b   :  { %v5042_v5 = vrot.slane %v5009_v59, %v5041_v30 }
0x205e   :  { %5020 = vadd.xlane.f32.xlu1 %v5019_v44  ;;  %v5015_v63 = vpop.xlane.xlu0 %5014 }
0x205f   :  { %v5050_v32 = vrot.slane %v5015_v63, %v5041_v30 }
0x2062   :  { %v5018_v10 = vpop.xlane.xlu0 %5017 }
0x2063   :  { %v5054_v27 = vrot.slane %v5018_v10, %v5041_v30 }
0x2066   :  { %v5024_v50 = vpop.xlane.xlu0 %5023 }
0x2067   :  { %v5062_v21 = vrot.slane %v5024_v50, %v5041_v30 }
0x206f   :  { %4454 = vrot.lane.b32.xlu1 %v4452_v62, %s6482_s22  ;;  %s5230_s22 = sshll.u32 %s6486_s17, 4  ;;  %s5231_s22 = int_to_ptr.vmem [resolvable:$true] %s5230_s22 }
0x2070   :  { %s6428_s10 = scalar_lea.vmem %s5231_s22, 768  ;;  %p6433_p1 = scmp.lt.s32.totalorder %s5231_s22, %s5231_s22 }
0x2071   :  { %p6429_p0 = scmp.ne.s32.totalorder %s5231_s22, %s6428_s10  ;;  %p6434_p2 = scmp.lt.s32.totalorder %s6428_s10, %s6428_s10 }
0x2073   :  { %p6435_p3 = por %p6434_p2, %p6433_p1 }
0x2075   :  { %p6436_p4 = pnand %p6435_p3, %p6429_p0 }
0x20a8   :  { %v4829_v51 = vpop.permute.xlu1 %4828 }
0x20a9   :  { %5951 = vmatmul.mubr.msk.f32.vlgmr.msra.gmra.mrb[40].mxu1 %vm338_vm7, %v4829_v51 }
0x20e7   :  { %v5012_v8 = vpop.xlane.xlu1 %5011 }
0x20e8   :  { %v5046_v36 = vrot.slane %v5012_v8, %v5041_v30 }
0x20ea   :  { %v5064_v19 = vsel %vm5063_vm5, %v5046_v36, %v5042_v5  ;;  %v5148_v5 = vrot.slane %v6480_v46, 4  ;;  %v4984_v46 = vsub.f32 1.0, %v4826_v37 }
0x20eb   :  { %v5066_v28 = vsel %vm5065_vm11, %v5050_v32, %v5064_v19  ;;  %v5021_v54 = vpop.xlane.xlu1 %5020 }
0x20ec   :  { %v5058_v2 = vrot.slane %v5021_v54, %v5041_v30  ;;  %v5068_v1 = vsel %vm5067_vm12, %v5054_v27, %v5066_v28  ;;  %v5150_v28 = vrot.slane %v5148_v5, 2 }
0x20ee   :  { %v5070_v3 = vsel %vm5069_vm13, %v5058_v2, %v5068_v1 }
0x20ef   :  { %v5072_v16 = vsel %vm5071_vm14, %v5062_v21, %v5070_v3  ;;  %v4455_v25 = vpop.permute.xlu1 %4454  ;;  %v5151_v21 = vadd.f32 %v5150_v28, %v5148_v5 }
0x20f0   :  { %v5075_v22 = vsel %vm5028_vm15, %v5072_v16, -1e+30  ;;  %v5076_v0 = vsel %vm5029_vm1, %v5072_v16, -1e+30  ;;  %v5077_v14 = vsel %vm5030_vm2, %v5072_v16, -1e+30 }
0x20f1   :  { %v5078_v17 = vsel %vm5031_vm3, %v5072_v16, -1e+30  ;;  %v5079_v40 = vsel %vm5032_vm4, %v5072_v16, -1e+30  ;;  %v5088_v61 = vsel %vm5080_vm6, %v5075_v22, -inf  ;;  %v5095_v7 = vsel %vm5080_vm6, %v5076_v0, -inf }
0x20f2   :  { %v5089_v47 = vrot.slane %v5088_v61, 4  ;;  %v5096_v29 = vrot.slane %v5095_v7, 4  ;;  %v5102_v42 = vsel %vm5080_vm6, %v5077_v14, -inf  ;;  %v5109_v13 = vsel %vm5080_vm6, %v5078_v17, -inf }
0x20f3   :  { %v5103_v31 = vrot.slane %v5102_v42, 4  ;;  %v5110_v39 = vrot.slane %v5109_v13, 4  ;;  %v5116_v53 = vsel %vm5080_vm6, %v5079_v40, -inf  ;;  %v4457_v45 = vsel %vm338_vm7, %v4455_v25, 0.0 }
0x20f4   :  { %v5090_v23 = vmax.f32 %v5088_v61, %v5089_v47  ;;  %v5097_v43 = vmax.f32 %v5095_v7, %v5096_v29  ;;  %v5117_v4 = vrot.slane %v5116_v53, 4  ;;  %4458 = vadd.xlane.f32.xlu0 %v4457_v45  ;;  %v5152_v3 = vrot.slane %v5151_v21, 1 }
0x20f5   :  { %v5104_v33 = vmax.f32 %v5102_v42, %v5103_v31  ;;  %v5111_v24 = vmax.f32 %v5109_v13, %v5110_v39 }
0x20f6   :  { %v5091_v34 = vrot.slane %v5090_v23, 2  ;;  %v5098_v57 = vrot.slane %v5097_v43, 2  ;;  %v5118_v26 = vmax.f32 %v5116_v53, %v5117_v4 }
0x20f7   :  { %v5105_v49 = vrot.slane %v5104_v33, 2  ;;  %v5112_v58 = vrot.slane %v5111_v24, 2 }
0x20f8   :  { %v5092_v15 = vmax.f32 %v5090_v23, %v5091_v34  ;;  %v5099_v38 = vmax.f32 %v5097_v43, %v5098_v57  ;;  %v5119_v18 = vrot.slane %v5118_v26, 2 }
0x20f9   :  { %v5106_v56 = vmax.f32 %v5104_v33, %v5105_v49  ;;  %v5113_v35 = vmax.f32 %v5111_v24, %v5112_v58 }
0x20fa   :  { %v5093_v52 = vrot.slane %v5092_v15, 1  ;;  %v5100_v48 = vrot.slane %v5099_v38, 1  ;;  %v5120_v11 = vmax.f32 %v5118_v26, %v5119_v18 }
0x20fb   :  { %v5107_v9 = vrot.slane %v5106_v56, 1  ;;  %v5114_v55 = vrot.slane %v5113_v35, 1 }
0x20fc   :  { %v5094_v44 = vmax.f32 %v5092_v15, %v5093_v52  ;;  %v5101_v62 = vmax.f32 %v5099_v38, %v5100_v48  ;;  %v5121_v51 = vrot.slane %v5120_v11, 1 }
0x20fd   :  { %v5108_v59 = vmax.f32 %v5106_v56, %v5107_v9  ;;  %v5115_v63 = vmax.f32 %v5113_v35, %v5114_v55 }
0x20fe   :  { %v5122_v30 = vmax.f32 %v5120_v11, %v5121_v51  ;;  %v5124_v10 = vsub.f32 %v5075_v22, %v5094_v44  ;;  %v5125_v8 = vsub.f32 %v5076_v0, %v5101_v62  ;;  %v5153_v22 = vadd.f32 %v5152_v3, %v5151_v21 }
0x20ff   :  { %v5126_v36 = vsub.f32 %v5077_v14, %v5108_v59  ;;  %v5127_v32 = vsub.f32 %v5078_v17, %v5115_v63 }
0x2100   :  { %v5128_v27 = vsub.f32 %v5079_v40, %v5122_v30  ;;  %v5131_v50 = vmul.f32 1.442695, %v5124_v10  ;;  %v5133_v19 = vmul.f32 1.442695, %v5125_v8  ;;  %v5189_v14 = vmax.f32 %v5153_v22, 1e-30 }
0x2101   :  { %v5135_v54 = vmul.f32 1.442695, %v5126_v36  ;;  %v5137_v2 = vmul.f32 1.442695, %v5127_v32 }
0x2102   :  { %6390 = vpow2.f32 %v5131_v50  ;;  %v5139_v1 = vmul.f32 1.442695, %v5128_v27 }
0x2103   :  { %6392 = vpow2.f32 %v5133_v19 }
0x2104   :  { %6394 = vpow2.f32 %v5135_v54 }
0x2105   :  { %6396 = vpow2.f32 %v5137_v2 }
0x2106   :  { %6398 = vpow2.f32 %v5139_v1  ;;  %v7866_v16 = vpop.f32.mrb[40].mxu0 }
0x2107   :  { %v5963_v0 = vpop.f32.mrb[41].mxu0  ;;  %6400 = vrcp.f32 %v5189_v14 }
0x210a   :  { %4987 = vperm.xlu0 %6231, %v4984_v46  }
0x210c   :  { %v6391_v25 = vpop.eup %6390 }
0x210d   :  { %v6393_v17 = vpop.eup %6392  ;;  %v5142_v40 = vsel %vm5028_vm15, %v6391_v25, 0.0 }
0x210e   :  { %v6395_v61 = vpop.eup %6394  ;;  %v5143_v7 = vsel %vm5029_vm1, %v6393_v17, 0.0  ;;  %v5154_v47 = vsel %vm5080_vm6, %v5142_v40, 0.0 }
0x210f   :  { %v6397_v29 = vpop.eup %6396  ;;  %v5144_v12 = vsel %vm5030_vm2, %v6395_v61, 0.0  ;;  %v5155_v37 = vrot.slane %v5154_v47, 4  ;;  %v5161_v42 = vsel %vm5080_vm6, %v5143_v7, 0.0 }
0x2110   :  { %v6399_v13 = vpop.eup %6398  ;;  %v5145_v31 = vsel %vm5031_vm3, %v6397_v29, 0.0  ;;  %v5162_v39 = vrot.slane %v5161_v42, 4  ;;  %v5168_v53 = vsel %vm5080_vm6, %v5144_v12, 0.0 }
0x2111   :  { %v5146_v45 = vsel %vm5032_vm4, %v6399_v13, 0.0  ;;  %v5156_v23 = vadd.f32 %v5155_v37, %v5154_v47  ;;  %v5169_v43 = vrot.slane %v5168_v53, 4  ;;  %v5175_v4 = vsel %vm5080_vm6, %v5145_v31, 0.0  ;;  %v6401_v58 = vpop.eup %6400 }
0x2112   :  { %v5163_v33 = vadd.f32 %v5162_v39, %v5161_v42  ;;  %v5176_v24 = vrot.slane %v5175_v4, 4  ;;  %v5182_v34 = vsel %vm5080_vm6, %v5146_v45, 0.0  ;;  %v5201_v52 = vmul.f32 0.0, %v6401_v58 }
0x2113   :  { %v5157_v57 = vrot.slane %v5156_v23, 2  ;;  %v5170_v26 = vadd.f32 %v5169_v43, %v5168_v53  ;;  %v5183_v49 = vrot.slane %v5182_v34, 4 }
0x2114   :  { %v5164_v15 = vrot.slane %v5163_v33, 2  ;;  %v5177_v38 = vadd.f32 %v5176_v24, %v5175_v4  ;;  %5207 = vst.msk [vmem:[#allocation8] sm:$0x3f] %vm5080_vm6, %v5201_v52 }
0x2115   :  { %v5158_v18 = vadd.f32 %v5157_v57, %v5156_v23  ;;  %v5171_v56 = vrot.slane %v5170_v26, 2  ;;  %v5184_v35 = vadd.f32 %v5183_v49, %v5182_v34 }
0x2116   :  { %v5165_v6 = vadd.f32 %v5164_v15, %v5163_v33  ;;  %v5178_v48 = vrot.slane %v5177_v38, 2 }
0x2117   :  { %v5159_v11 = vrot.slane %v5158_v18, 1  ;;  %v5172_v9 = vadd.f32 %v5171_v56, %v5170_v26  ;;  %v5185_v55 = vrot.slane %v5184_v35, 2 }
0x2118   :  { %v5166_v44 = vrot.slane %v5165_v6, 1  ;;  %v5179_v62 = vadd.f32 %v5178_v48, %v5177_v38 }
0x2119   :  { %v5160_v51 = vadd.f32 %v5159_v11, %v5158_v18  ;;  %v5173_v59 = vrot.slane %v5172_v9, 1  ;;  %v5186_v63 = vadd.f32 %v5185_v55, %v5184_v35 }
0x211a   :  { %v5167_v30 = vadd.f32 %v5166_v44, %v5165_v6  ;;  %v5180_v10 = vrot.slane %v5179_v62, 1 }
0x211b   :  { %v5174_v8 = vadd.f32 %v5173_v59, %v5172_v9  ;;  %v5187_v5 = vrot.slane %v5186_v63, 1  ;;  %v5190_v36 = vmax.f32 %v5160_v51, 1e-30 }
0x211c   :  { %v5181_v32 = vadd.f32 %v5180_v10, %v5179_v62  ;;  %v5191_v27 = vmax.f32 %v5167_v30, 1e-30 }
0x211d   :  { %v5188_v50 = vadd.f32 %v5187_v5, %v5186_v63  ;;  %v5192_v19 = vmax.f32 %v5174_v8, 1e-30  ;;  %6402 = vrcp.f32 %v5190_v36 }
0x211e   :  { %v5193_v28 = vmax.f32 %v5181_v32, 1e-30  ;;  %6404 = vrcp.f32 %v5191_v27 }
0x211f   :  { %v5194_v54 = vmax.f32 %v5188_v50, 1e-30  ;;  %6406 = vrcp.f32 %v5192_v19 }
0x2120   :  { %6408 = vrcp.f32 %v5193_v28 }
0x2121   :  { %6410 = vrcp.f32 %v5194_v54 }
0x2127   :  { %v6403_v2 = vpop.eup %6402 }
0x2128   :  { %v6405_v1 = vpop.eup %6404  ;;  %v5202_v21 = vmul.f32 %v6403_v2, %v5142_v40 }
0x2129   :  { %v6407_v3 = vpop.eup %6406  ;;  %v5203_v46 = vmul.f32 %v6405_v1, %v5143_v7 }
0x212a   :  { %v6409_v22 = vpop.eup %6408  ;;  %v5204_v0 = vmul.f32 %v6407_v3, %v5144_v12  ;;  %5208 = vst.msk [vmem:[#allocation8 + $0x8] sm:$0x3f] %vm5080_vm6, %v5202_v21 }
0x212b   :  { %v6411_v14 = vpop.eup %6410  ;;  %v5205_v25 = vmul.f32 %v6409_v22, %v5145_v31  ;;  %5209 = vst.msk [vmem:[#allocation8 + $0x10] sm:$0x3f] %vm5080_vm6, %v5203_v46 }
0x212c   :  { %v5206_v17 = vmul.f32 %v6411_v14, %v5146_v45  ;;  %5210 = vst.msk [vmem:[#allocation8 + $0x18] sm:$0x3f] %vm5080_vm6, %v5204_v0 }
0x212d   :  { %5211 = vst.msk [vmem:[#allocation8 + $0x20] sm:$0x3f] %vm5080_vm6, %v5205_v25 }
0x212e   :  { %5212 = vst.msk [vmem:[#allocation8 + $0x28] sm:$0x3f] %vm5080_vm6, %v5206_v17 }
0x212f   :  { %6439 = shalt.err (!%p6436_p4)
}
0x2130   :  { %s6440_s14 = scalar_lea.hbm %s7946_s20, 768 }
0x2131   :  { %p6441_p5 = scmp.ne.s32.totalorder %s7946_s20, %s6440_s14  ;;  %p6444_p6 = scmp.lt.u32.totalorder %s6440_s14, %s7946_s20 }
0x2133   :  { %p6446_p7 = pnand %p6444_p6, %p6441_p5 }
0x2135   :  { %6449 = shalt.err (!%p6446_p7)
}
0x2136   :  { %s6487_s27 = smov 128   ;;  %s6488_s29 = smov 8  }
0x2137   :  { %5236 = dma.vmem_to_hbm [thread:$0]  %s5231_s22, 768, %s7946_s20, [#allocation9], %s6487_s27, %s6487_s27, %s6488_s29  }
0x2138   :  { %s6489_s0 = smov [#allocation6]  }
0x2139   :  { %s5218_s8 = sshll.u32 %s6489_s0, 4  ;;  %s5219_s8 = int_to_ptr.vmem [resolvable:$true] %s5218_s8 }
0x213a   :  { %s6450_s20 = scalar_lea.vmem %s5219_s8, 768  ;;  %p6455_p9 = scmp.lt.s32.totalorder %s5219_s8, %s5219_s8 }
0x213b   :  { %p6451_p8 = scmp.ne.s32.totalorder %s5219_s8, %s6450_s20  ;;  %p6456_p10 = scmp.lt.s32.totalorder %s6450_s20, %s6450_s20 }
0x213d   :  { %p6457_p11 = por %p6456_p10, %p6455_p9 }
0x213f   :  { %p6458_p12 = pnand %p6457_p11, %p6451_p8 }
0x217c   :  { %v4898_v40 = vpop.f32.mrb[40].mxu1 }
0x217d   :  { %v4899_v61 = vadd.f32 %v7712_v20, %v4898_v40  ;;  %v5952_v7 = vpop.f32.mrb[41].mxu1 }
0x217f   :  { %v4981_v47 = vadd.f32 %v7866_v16, %v4899_v61 }
0x2181   :  { %v4982_v29 = vadd.f32 %v7814_v41, %v4981_v47  ;;  %v4459_v12 = vpop.xlane.xlu0 %4458 }
0x2183   :  { %6412 = vtanh.f32 %v4982_v29 }
0x2189   :  { %v4988_v42 = vpop.permute.xlu0 %4987 }
0x218d   :  { %v6413_v37 = vpop.eup %6412 }
0x218e   :  { %v4990_v13 = vmul.f32 %v6413_v37, %v4988_v42 }
0x2190   :  { %v4991_v31 = vadd.f32 %v4990_v13, %v7824_v60 }
0x2192   :  { %4993 = vst.msk [vmem:[#allocation6 + $0x28] sm:$0xff] %vm338_vm7, %v4991_v31 }
0x2193   :  { %6461 = shalt.err (!%p6458_p12)
}
0x2194   :  { %s6462_s6 = scalar_lea.hbm %s7945_s19, 768 }
0x2195   :  { %p6463_p13 = scmp.ne.s32.totalorder %s7945_s19, %s6462_s6  ;;  %p6466_p0 = scmp.lt.u32.totalorder %s6462_s6, %s7945_s19 }
0x2197   :  { %p6468_p1 = pnand %p6466_p0, %p6463_p13 }
0x2199   :  { %6471 = shalt.err (!%p6468_p1)
}
0x219a   :  { %5224 = dma.vmem_to_hbm [thread:$0]  %s5219_s8, 768, %s7945_s19, [#allocation7], %s6487_s27, %s6487_s27, %s6488_s29  }
0x219b   :  { %6472 = dma.done.wait [#allocation7], 768  }
0x219c   :  { %6473 = vsyncadd [#allocation7], 4294966528 }
0x219d   :  { %6474 = dma.done.wait [#allocation9], 768  }
0x219e   :  { %6475 = vsyncadd [#allocation9], 4294966528 }
0x219f   :  { %5243 = vsyncpa [#allocation7], 1 }
0x21a0   :  { %5244 = vsyncpa [#allocation9], 1 }

</bundles_post_ra>
